<compile_context>
chip_gen: v7x
topology: tpu7x:2x2x1
jax: 0.10.0
libtpu: 0.0.40
codegen_flags: <defaults>
</compile_context>

<pallas_src>
import functools
import numpy as np
import jax
import jax.numpy as jnp
from jax.experimental import pallas as pl
from jax.experimental.pallas import tpu as pltpu


# ----------------------------- Pallas kernels ------------------------------

def _elu(x):
    # clamp the exp argument so the unselected branch never produces inf
    return jnp.where(x > 0, x, jnp.exp(jnp.minimum(x, 0.0)) - 1.0)


def conv_act_kernel(cols_ref, w_ref, b_ref, o_ref, *, activation):
    # cols_ref: (tm, 9*Cin) bf16   w_ref: (9*Cin, Cout) bf16
    # b_ref:    (1, Cout)   f32    o_ref: (tm, Cout)
    acc = jnp.dot(cols_ref[...], w_ref[...], preferred_element_type=jnp.float32)
    acc = acc + b_ref[...]
    if activation == "elu":
        acc = _elu(acc)
    elif activation == "tanh":
        acc = jnp.tanh(acc)
    o_ref[...] = acc.astype(o_ref.dtype)


def conv_elu_pool_kernel(cols_ref, w_ref, b_ref, p_ref, o_ref):
    # One image per grid step: conv (single GEMM) + bias + ELU, then the
    # 2x2/stride-2 average pool as a second in-VMEM GEMM against the constant
    # pooling matrix P (HoWo, HW).  The pre-pool activation never hits HBM.
    acc = jnp.dot(cols_ref[...], w_ref[...], preferred_element_type=jnp.float32)
    acc = _elu(acc + b_ref[...])
    o_ref[...] = jnp.dot(p_ref[...], acc.astype(p_ref.dtype),
                         preferred_element_type=jnp.float32).astype(o_ref.dtype)


def fc_kernel(x_ref, w_ref, b_ref, o_ref):
    # x_ref: (N, F) bf16  w_ref: (F, K) bf16  b_ref: (1, K) f32  o_ref: (N, K)
    acc = jnp.dot(x_ref[...], w_ref[...], preferred_element_type=jnp.float32)
    o_ref[...] = (acc + b_ref[...]).astype(o_ref.dtype)


# ------------------------------- wrappers ----------------------------------

def im2col_3x3(x_nhwc, dtype=jnp.bfloat16):
    # glue: shifted copies of the zero-padded input, taps concatenated along
    # the channel axis -> a single K = 9*Cin contraction inside the kernel.
    N, H, W, C = x_nhwc.shape
    xp = jnp.pad(x_nhwc, ((0, 0), (1, 1), (1, 1), (0, 0)))
    cols = jnp.concatenate(
        [xp[:, dy:dy + H, dx:dx + W, :] for dy in range(3) for dx in range(3)],
        axis=-1)                                   # (N, H, W, 9*C)
    return cols.reshape(N * H * W, 9 * C).astype(dtype)
    # TODO(synk): the im2col slab still round-trips HBM (9x activation bytes);
    # building the 9 shifted views inside the kernel needs (H,W,C)->(H*W,C)
    # VMEM reshapes / masked rolls, which is left out at these tiny sizes.


def _choose_tile(m, target=256):
    if m <= target:
        return m
    tm = target
    while m % tm:
        tm //= 2
    return max(tm, 8)


def conv3x3_act(x_nhwc, w9, b, activation="elu", out_dtype=jnp.bfloat16):
    N, H, W, Cin = x_nhwc.shape
    Cout = w9.shape[-1]
    M = N * H * W
    cols = im2col_3x3(x_nhwc)                      # (M, 9*Cin)
    tm = _choose_tile(M)
    kern = functools.partial(conv_act_kernel, activation=activation)
    out = pl.pallas_call(
        kern,
        out_shape=jax.ShapeDtypeStruct((M, Cout), out_dtype),
        grid=(M // tm,),
        in_specs=[
            pl.BlockSpec((tm, 9 * Cin), lambda i: (i, 0)),
            pl.BlockSpec((9 * Cin, Cout), lambda i: (0, 0)),
            pl.BlockSpec((1, Cout), lambda i: (0, 0)),
        ],
        out_specs=pl.BlockSpec((tm, Cout), lambda i: (i, 0)),
        compiler_params=pltpu.CompilerParams(dimension_semantics=("parallel",)),
    )(cols, w9, b)
    return out.reshape(N, H, W, Cout)


@functools.lru_cache(maxsize=None)
def make_pool_matrix(H, W):
    Ho, Wo = H // 2, W // 2
    P = np.zeros((Ho * Wo, H * W), np.float32)
    for oy in range(Ho):
        for ox in range(Wo):
            for dy in range(2):
                for dx in range(2):
                    P[oy * Wo + ox, (2 * oy + dy) * W + (2 * ox + dx)] = 0.25
    return jnp.asarray(P, dtype=jnp.bfloat16)


def conv3x3_elu_pool(x_nhwc, w9, b, out_dtype=jnp.bfloat16):
    N, H, W, Cin = x_nhwc.shape
    Cout = w9.shape[-1]
    Ho, Wo = H // 2, W // 2
    cols = im2col_3x3(x_nhwc)                      # (N*H*W, 9*Cin)
    P = make_pool_matrix(H, W)
    out = pl.pallas_call(
        conv_elu_pool_kernel,
        out_shape=jax.ShapeDtypeStruct((N * Ho * Wo, Cout), out_dtype),
        grid=(N,),
        in_specs=[
            pl.BlockSpec((H * W, 9 * Cin), lambda n: (n, 0)),
            pl.BlockSpec((9 * Cin, Cout), lambda n: (0, 0)),
            pl.BlockSpec((1, Cout), lambda n: (0, 0)),
            pl.BlockSpec((Ho * Wo, H * W), lambda n: (0, 0)),
        ],
        out_specs=pl.BlockSpec((Ho * Wo, Cout), lambda n: (n, 0)),
        compiler_params=pltpu.CompilerParams(dimension_semantics=("parallel",)),
    )(cols, w9, b, P)
    return out.reshape(N, Ho, Wo, Cout)


def fc(x, w, b, out_dtype=jnp.float32):
    N, F = x.shape
    K = w.shape[1]
    return pl.pallas_call(
        fc_kernel,
        out_shape=jax.ShapeDtypeStruct((N, K), out_dtype),
        grid=(1,),
        in_specs=[
            pl.BlockSpec((N, F), lambda i: (0, 0)),
            pl.BlockSpec((F, K), lambda i: (0, 0)),
            pl.BlockSpec((1, K), lambda i: (0, 0)),
        ],
        out_specs=pl.BlockSpec((N, K), lambda i: (0, 0)),
    )(x, w, b)


def upsample_nearest2x(x_nhwc):
    # glue: UpsamplingNearest2d(scale_factor=2) is pure data movement; XLA
    # fuses it into the next layer's im2col.
    return jnp.repeat(jnp.repeat(x_nhwc, 2, axis=1), 2, axis=2)


# ----------------------- parameters (deterministic) ------------------------

def _conv_params(key, cin, cout):
    kw, kb = jax.random.split(key)
    bound = 1.0 / float(np.sqrt(cin * 9))
    w_pt = jax.random.uniform(kw, (cout, cin, 3, 3), jnp.float32, -bound, bound)
    b = jax.random.uniform(kb, (cout,), jnp.float32, -bound, bound)
    # PyTorch (Cout, Cin, kh, kw) -> (kh, kw, Cin, Cout) -> (9*Cin, Cout);
    # the (dy, dx, cin) row order matches the im2col channel-concat order.
    w9 = jnp.transpose(w_pt, (2, 3, 1, 0)).reshape(9 * cin, cout)
    return w9.astype(jnp.bfloat16), b.reshape(1, cout)


def init_params(key, num_channels, hidden_size, noise_size, image_size):
    h = hidden_size
    mult = image_size // 4
    enc_ch = [(num_channels, h), (h, h), (h, 2 * h), (2 * h, 2 * h),
              (2 * h, 3 * h), (3 * h, 3 * h), (3 * h, 3 * h)]
    dec_ch = [(h, h)] * 6 + [(h, num_channels)]
    keys = jax.random.split(key, len(enc_ch) + len(dec_ch) + 2)
    enc_convs = [_conv_params(keys[i], ci, co) for i, (ci, co) in enumerate(enc_ch)]
    dec_convs = [_conv_params(keys[len(enc_ch) + i], ci, co)
                 for i, (ci, co) in enumerate(dec_ch)]

    # encoder fc: Linear(3*h*mult^2 -> noise).  PyTorch flattens NCHW (c,y,x);
    # our features flatten (y,x,c) -> permute the weight columns to match.
    kf_e, kf_d = keys[-2], keys[-1]
    Fe = 3 * h * mult * mult
    kw, kb = jax.random.split(kf_e)
    bound = 1.0 / float(np.sqrt(Fe))
    w_pt = jax.random.uniform(kw, (noise_size, Fe), jnp.float32, -bound, bound)
    b_e = jax.random.uniform(kb, (noise_size,), jnp.float32, -bound, bound)
    w_e = jnp.transpose(w_pt.reshape(noise_size, 3 * h, mult, mult),
                        (0, 2, 3, 1)).reshape(noise_size, Fe).T      # (Fe, noise)

    # decoder fc: Linear(noise -> h*mult^2).  PyTorch views the output as NCHW
    # (c,y,x); permute output columns (and bias) to (y,x,c) == NHWC flatten.
    Fd = h * mult * mult
    kw, kb = jax.random.split(kf_d)
    bound = 1.0 / float(np.sqrt(noise_size))
    w_pt = jax.random.uniform(kw, (Fd, noise_size), jnp.float32, -bound, bound)
    b_pt = jax.random.uniform(kb, (Fd,), jnp.float32, -bound, bound)
    w_d = jnp.transpose(w_pt.T.reshape(noise_size, h, mult, mult),
                        (0, 2, 3, 1)).reshape(noise_size, Fd)        # (noise, Fd)
    b_d = jnp.transpose(b_pt.reshape(h, mult, mult), (1, 2, 0)).reshape(1, Fd)

    return {
        "enc_convs": enc_convs,
        "enc_fc": (w_e.astype(jnp.bfloat16), b_e.reshape(1, noise_size)),
        "dec_convs": dec_convs,
        "dec_fc": (w_d.astype(jnp.bfloat16), b_d),
        "hidden_size": h,
        "multiplier": mult,
    }


# ------------------------------ forward pass -------------------------------

def encoder_forward(params, img_nchw):
    x = jnp.transpose(img_nchw, (0, 2, 3, 1)).astype(jnp.float32)   # NCHW->NHWC
    c = params["enc_convs"]
    x = conv3x3_act(x, *c[0])
    x = conv3x3_act(x, *c[1])
    x = conv3x3_elu_pool(x, *c[2])      # conv + ELU + 2x2 avgpool in one kernel
    x = conv3x3_act(x, *c[3])
    x = conv3x3_elu_pool(x, *c[4])
    x = conv3x3_act(x, *c[5])
    x = conv3x3_act(x, *c[6])
    N = x.shape[0]
    w, b = params["enc_fc"]
    return fc(x.reshape(N, -1), w, b, out_dtype=jnp.bfloat16)


def decoder_forward(params, noise):
    N = noise.shape[0]
    h, m = params["hidden_size"], params["multiplier"]
    w, b = params["dec_fc"]
    x = fc(noise.astype(jnp.bfloat16), w, b, out_dtype=jnp.bfloat16)
    x = x.reshape(N, m, m, h)                                       # NHWC
    c = params["dec_convs"]
    x = conv3x3_act(x, *c[0])
    x = conv3x3_act(x, *c[1])
    x = upsample_nearest2x(x)
    x = conv3x3_act(x, *c[2])
    x = conv3x3_act(x, *c[3])
    x = upsample_nearest2x(x)
    x = conv3x3_act(x, *c[4])
    x = conv3x3_act(x, *c[5])
    x = conv3x3_act(x, *c[6], activation="tanh", out_dtype=jnp.float32)
    return jnp.transpose(x, (0, 3, 1, 2))                           # NHWC->NCHW


def discriminator_forward(params, img_nchw):
    code = encoder_forward(params, img_nchw)
    return decoder_forward(params, code)


if __name__ == "__main__":
    num_channels, hidden_size, noise_size, image_size = 4, 8, 16, 16
    batch = 2
    key = jax.random.PRNGKey(0)
    pkey, xkey = jax.random.split(key)
    params = init_params(pkey, num_channels, hidden_size, noise_size, image_size)
    img = jax.random.normal(xkey, (batch, num_channels, image_size, image_size),
                            jnp.float32)
    out = jax.jit(functools.partial(discriminator_forward, params))(img)
    jax.block_until_ready(out)
    assert out.shape == (batch, num_channels, image_size, image_size)
    assert out.dtype == jnp.float32
    print("KERNEL_OK")
</pallas_src>

<mosaic_0001>
module attributes {stable_mosaic.version = 11 : i64} {
  func.func @conv_act_kernel(%arg0: i32, %arg1: memref<256x36xbf16, #tpu.memory_space<vmem>>, %arg2: memref<36x8xbf16, #tpu.memory_space<vmem>>, %arg3: memref<1x8xf32, #tpu.memory_space<vmem>>, %arg4: memref<256x8xbf16, #tpu.memory_space<vmem>>) attributes {dimension_semantics = [#tpu.dimension_semantics<parallel>], iteration_bounds = array<i64: 2>, scalar_prefetch = 0 : i64, scratch_operands = 0 : i64, tpu.core_type = #tpu.core_type<tc>, window_params = [{transform_indices = @transform_0, window_bounds = array<i64: 256, 36>}, {pipeline_mode = #tpu.pipeline_mode<synchronous>, transform_indices = @transform_1, window_bounds = array<i64: 36, 8>}, {pipeline_mode = #tpu.pipeline_mode<synchronous>, transform_indices = @transform_2, window_bounds = array<i64: 1, 8>}, {transform_indices = @transform_3, window_bounds = array<i64: 256, 8>}]} {
    %c0 = arith.constant 0 : index
    %c0_0 = arith.constant 0 : index
    %0 = vector.load %arg1[%c0, %c0_0] : memref<256x36xbf16, #tpu.memory_space<vmem>>, vector<256x36xbf16>
    %c0_1 = arith.constant 0 : index
    %c0_2 = arith.constant 0 : index
    %1 = vector.load %arg2[%c0_1, %c0_2] : memref<36x8xbf16, #tpu.memory_space<vmem>>, vector<36x8xbf16>
    %cst = arith.constant dense<0.000000e+00> : vector<256x8xf32>
    %2 = tpu.matmul %0, %1, %cst {dimension_numbers = #tpu.dot_dimension_numbers<[1], [0], [0], [1], [0, 0, 1, 1], [], []>} : vector<256x36xbf16>, vector<36x8xbf16>, vector<256x8xf32> -> vector<256x8xf32>
    %c0_3 = arith.constant 0 : index
    %c0_4 = arith.constant 0 : index
    %3 = vector.load %arg3[%c0_3, %c0_4] : memref<1x8xf32, #tpu.memory_space<vmem>>, vector<1x8xf32>
    %4 = vector.broadcast %3 : vector<1x8xf32> to vector<256x8xf32>
    %5 = arith.addf %2, %4 : vector<256x8xf32>
    %cst_5 = arith.constant 0.000000e+00 : f32
    %6 = vector.broadcast %cst_5 : f32 to vector<256x8xf32>
    %7 = arith.cmpf ogt, %5, %6 : vector<256x8xf32>
    %cst_6 = arith.constant 0.000000e+00 : f32
    %8 = vector.broadcast %cst_6 : f32 to vector<256x8xf32>
    %9 = arith.minimumf %5, %8 : vector<256x8xf32>
    %10 = math.exp %9 : vector<256x8xf32>
    %cst_7 = arith.constant 1.000000e+00 : f32
    %11 = vector.broadcast %cst_7 : f32 to vector<256x8xf32>
    %12 = arith.subf %10, %11 : vector<256x8xf32>
    %13 = arith.select %7, %5, %12 : vector<256x8xi1>, vector<256x8xf32>
    %14 = arith.truncf %13 : vector<256x8xf32> to vector<256x8xbf16>
    %c0_8 = arith.constant 0 : index
    %c0_9 = arith.constant 0 : index
    %15 = vector.load %arg4[%c0_8, %c0_9] : memref<256x8xbf16, #tpu.memory_space<vmem>>, vector<256x8xbf16>
    tpu.vector_store %arg4[%c0_8, %c0_9], %14 {strides = array<i32>} : memref<256x8xbf16, #tpu.memory_space<vmem>>, vector<256x8xbf16>,
    return
  }
  func.func @transform_0(%arg0: i32) -> (i32, i32) {
    %c0_i32 = arith.constant 0 : i32
    %c0_i32_0 = arith.constant 0 : i32
    return %arg0, %c0_i32 : i32, i32
  }
  func.func @transform_1(%arg0: i32) -> (i32, i32) {
    %c0_i32 = arith.constant 0 : i32
    %c0_i32_0 = arith.constant 0 : i32
    %c0_i32_1 = arith.constant 0 : i32
    return %c0_i32, %c0_i32_0 : i32, i32
  }
  func.func @transform_2(%arg0: i32) -> (i32, i32) {
    %c0_i32 = arith.constant 0 : i32
    %c0_i32_0 = arith.constant 0 : i32
    %c0_i32_1 = arith.constant 0 : i32
    return %c0_i32, %c0_i32_0 : i32, i32
  }
  func.func @transform_3(%arg0: i32) -> (i32, i32) {
    %c0_i32 = arith.constant 0 : i32
    %c0_i32_0 = arith.constant 0 : i32
    return %arg0, %c0_i32 : i32, i32
  }
}

module attributes {stable_mosaic.version = 11 : i64} {
  func.func @conv_act_kernel(%arg0: i32, %arg1: memref<256x72xbf16, #tpu.memory_space<vmem>>, %arg2: memref<72x8xbf16, #tpu.memory_space<vmem>>, %arg3: memref<1x8xf32, #tpu.memory_space<vmem>>, %arg4: memref<256x8xbf16, #tpu.memory_space<vmem>>) attributes {dimension_semantics = [#tpu.dimension_semantics<parallel>], iteration_bounds = array<i64: 2>, scalar_prefetch = 0 : i64, scratch_operands = 0 : i64, tpu.core_type = #tpu.core_type<tc>, window_params = [{transform_indices = @transform_0, window_bounds = array<i64: 256, 72>}, {pipeline_mode = #tpu.pipeline_mode<synchronous>, transform_indices = @transform_1, window_bounds = array<i64: 72, 8>}, {pipeline_mode = #tpu.pipeline_mode<synchronous>, transform_indices = @transform_2, window_bounds = array<i64: 1, 8>}, {transform_indices = @transform_3, window_bounds = array<i64: 256, 8>}]} {
    %c0 = arith.constant 0 : index
    %c0_0 = arith.constant 0 : index
    %0 = vector.load %arg1[%c0, %c0_0] : memref<256x72xbf16, #tpu.memory_space<vmem>>, vector<256x72xbf16>
    %c0_1 = arith.constant 0 : index
    %c0_2 = arith.constant 0 : index
    %1 = vector.load %arg2[%c0_1, %c0_2] : memref<72x8xbf16, #tpu.memory_space<vmem>>, vector<72x8xbf16>
    %cst = arith.constant dense<0.000000e+00> : vector<256x8xf32>
    %2 = tpu.matmul %0, %1, %cst {dimension_numbers = #tpu.dot_dimension_numbers<[1], [0], [0], [1], [0, 0, 1, 1], [], []>} : vector<256x72xbf16>, vector<72x8xbf16>, vector<256x8xf32> -> vector<256x8xf32>
    %c0_3 = arith.constant 0 : index
    %c0_4 = arith.constant 0 : index
    %3 = vector.load %arg3[%c0_3, %c0_4] : memref<1x8xf32, #tpu.memory_space<vmem>>, vector<1x8xf32>
    %4 = vector.broadcast %3 : vector<1x8xf32> to vector<256x8xf32>
    %5 = arith.addf %2, %4 : vector<256x8xf32>
    %cst_5 = arith.constant 0.000000e+00 : f32
    %6 = vector.broadcast %cst_5 : f32 to vector<256x8xf32>
    %7 = arith.cmpf ogt, %5, %6 : vector<256x8xf32>
    %cst_6 = arith.constant 0.000000e+00 : f32
    %8 = vector.broadcast %cst_6 : f32 to vector<256x8xf32>
    %9 = arith.minimumf %5, %8 : vector<256x8xf32>
    %10 = math.exp %9 : vector<256x8xf32>
    %cst_7 = arith.constant 1.000000e+00 : f32
    %11 = vector.broadcast %cst_7 : f32 to vector<256x8xf32>
    %12 = arith.subf %10, %11 : vector<256x8xf32>
    %13 = arith.select %7, %5, %12 : vector<256x8xi1>, vector<256x8xf32>
    %14 = arith.truncf %13 : vector<256x8xf32> to vector<256x8xbf16>
    %c0_8 = arith.constant 0 : index
    %c0_9 = arith.constant 0 : index
    %15 = vector.load %arg4[%c0_8, %c0_9] : memref<256x8xbf16, #tpu.memory_space<vmem>>, vector<256x8xbf16>
    tpu.vector_store %arg4[%c0_8, %c0_9], %14 {strides = array<i32>} : memref<256x8xbf16, #tpu.memory_space<vmem>>, vector<256x8xbf16>,
    return
  }
  func.func @transform_0(%arg0: i32) -> (i32, i32) {
    %c0_i32 = arith.constant 0 : i32
    %c0_i32_0 = arith.constant 0 : i32
    return %arg0, %c0_i32 : i32, i32
  }
  func.func @transform_1(%arg0: i32) -> (i32, i32) {
    %c0_i32 = arith.constant 0 : i32
    %c0_i32_0 = arith.constant 0 : i32
    %c0_i32_1 = arith.constant 0 : i32
    return %c0_i32, %c0_i32_0 : i32, i32
  }
  func.func @transform_2(%arg0: i32) -> (i32, i32) {
    %c0_i32 = arith.constant 0 : i32
    %c0_i32_0 = arith.constant 0 : i32
    %c0_i32_1 = arith.constant 0 : i32
    return %c0_i32, %c0_i32_0 : i32, i32
  }
  func.func @transform_3(%arg0: i32) -> (i32, i32) {
    %c0_i32 = arith.constant 0 : i32
    %c0_i32_0 = arith.constant 0 : i32
    return %arg0, %c0_i32 : i32, i32
  }
}

module attributes {stable_mosaic.version = 11 : i64} {
  func.func @conv_elu_pool_kernel(%arg0: i32, %arg1: memref<256x72xbf16, #tpu.memory_space<vmem>>, %arg2: memref<72x16xbf16, #tpu.memory_space<vmem>>, %arg3: memref<1x16xf32, #tpu.memory_space<vmem>>, %arg4: memref<64x256xbf16, #tpu.memory_space<vmem>>, %arg5: memref<64x16xbf16, #tpu.memory_space<vmem>>) attributes {dimension_semantics = [#tpu.dimension_semantics<parallel>], iteration_bounds = array<i64: 2>, scalar_prefetch = 0 : i64, scratch_operands = 0 : i64, tpu.core_type = #tpu.core_type<tc>, window_params = [{transform_indices = @transform_0, window_bounds = array<i64: 256, 72>}, {pipeline_mode = #tpu.pipeline_mode<synchronous>, transform_indices = @transform_1, window_bounds = array<i64: 72, 16>}, {pipeline_mode = #tpu.pipeline_mode<synchronous>, transform_indices = @transform_2, window_bounds = array<i64: 1, 16>}, {pipeline_mode = #tpu.pipeline_mode<synchronous>, transform_indices = @transform_3, window_bounds = array<i64: 64, 256>}, {transform_indices = @transform_4, window_bounds = array<i64: 64, 16>}]} {
    %c0 = arith.constant 0 : index
    %c0_0 = arith.constant 0 : index
    %0 = vector.load %arg1[%c0, %c0_0] : memref<256x72xbf16, #tpu.memory_space<vmem>>, vector<256x72xbf16>
    %c0_1 = arith.constant 0 : index
    %c0_2 = arith.constant 0 : index
    %1 = vector.load %arg2[%c0_1, %c0_2] : memref<72x16xbf16, #tpu.memory_space<vmem>>, vector<72x16xbf16>
    %cst = arith.constant dense<0.000000e+00> : vector<256x16xf32>
    %2 = tpu.matmul %0, %1, %cst {dimension_numbers = #tpu.dot_dimension_numbers<[1], [0], [0], [1], [0, 0, 1, 1], [], []>} : vector<256x72xbf16>, vector<72x16xbf16>, vector<256x16xf32> -> vector<256x16xf32>
    %c0_3 = arith.constant 0 : index
    %c0_4 = arith.constant 0 : index
    %3 = vector.load %arg3[%c0_3, %c0_4] : memref<1x16xf32, #tpu.memory_space<vmem>>, vector<1x16xf32>
    %4 = vector.broadcast %3 : vector<1x16xf32> to vector<256x16xf32>
    %5 = arith.addf %2, %4 : vector<256x16xf32>
    %cst_5 = arith.constant 0.000000e+00 : f32
    %6 = vector.broadcast %cst_5 : f32 to vector<256x16xf32>
    %7 = arith.cmpf ogt, %5, %6 : vector<256x16xf32>
    %cst_6 = arith.constant 0.000000e+00 : f32
    %8 = vector.broadcast %cst_6 : f32 to vector<256x16xf32>
    %9 = arith.minimumf %5, %8 : vector<256x16xf32>
    %10 = math.exp %9 : vector<256x16xf32>
    %cst_7 = arith.constant 1.000000e+00 : f32
    %11 = vector.broadcast %cst_7 : f32 to vector<256x16xf32>
    %12 = arith.subf %10, %11 : vector<256x16xf32>
    %13 = arith.select %7, %5, %12 : vector<256x16xi1>, vector<256x16xf32>
    %c0_8 = arith.constant 0 : index
    %c0_9 = arith.constant 0 : index
    %14 = vector.load %arg4[%c0_8, %c0_9] : memref<64x256xbf16, #tpu.memory_space<vmem>>, vector<64x256xbf16>
    %15 = arith.truncf %13 : vector<256x16xf32> to vector<256x16xbf16>
    %cst_10 = arith.constant dense<0.000000e+00> : vector<64x16xf32>
    %16 = tpu.matmul %14, %15, %cst_10 {dimension_numbers = #tpu.dot_dimension_numbers<[1], [0], [0], [1], [0, 0, 1, 1], [], []>} : vector<64x256xbf16>, vector<256x16xbf16>, vector<64x16xf32> -> vector<64x16xf32>
    %17 = arith.truncf %16 : vector<64x16xf32> to vector<64x16xbf16>
    %c0_11 = arith.constant 0 : index
    %c0_12 = arith.constant 0 : index
    %18 = vector.load %arg5[%c0_11, %c0_12] : memref<64x16xbf16, #tpu.memory_space<vmem>>, vector<64x16xbf16>
    tpu.vector_store %arg5[%c0_11, %c0_12], %17 {strides = array<i32>} : memref<64x16xbf16, #tpu.memory_space<vmem>>, vector<64x16xbf16>,
    return
  }
  func.func @transform_0(%arg0: i32) -> (i32, i32) {
    %c0_i32 = arith.constant 0 : i32
    %c0_i32_0 = arith.constant 0 : i32
    return %arg0, %c0_i32 : i32, i32
  }
  func.func @transform_1(%arg0: i32) -> (i32, i32) {
    %c0_i32 = arith.constant 0 : i32
    %c0_i32_0 = arith.constant 0 : i32
    %c0_i32_1 = arith.constant 0 : i32
    return %c0_i32, %c0_i32_0 : i32, i32
  }
  func.func @transform_2(%arg0: i32) -> (i32, i32) {
    %c0_i32 = arith.constant 0 : i32
    %c0_i32_0 = arith.constant 0 : i32
    %c0_i32_1 = arith.constant 0 : i32
    return %c0_i32, %c0_i32_0 : i32, i32
  }
  func.func @transform_3(%arg0: i32) -> (i32, i32) {
    %c0_i32 = arith.constant 0 : i32
    %c0_i32_0 = arith.constant 0 : i32
    %c0_i32_1 = arith.constant 0 : i32
    return %c0_i32, %c0_i32_0 : i32, i32
  }
  func.func @transform_4(%arg0: i32) -> (i32, i32) {
    %c0_i32 = arith.constant 0 : i32
    %c0_i32_0 = arith.constant 0 : i32
    return %arg0, %c0_i32 : i32, i32
  }
}

module attributes {stable_mosaic.version = 11 : i64} {
  func.func @conv_act_kernel(%arg0: i32, %arg1: memref<128x144xbf16, #tpu.memory_space<vmem>>, %arg2: memref<144x16xbf16, #tpu.memory_space<vmem>>, %arg3: memref<1x16xf32, #tpu.memory_space<vmem>>, %arg4: memref<128x16xbf16, #tpu.memory_space<vmem>>) attributes {dimension_semantics = [#tpu.dimension_semantics<parallel>], iteration_bounds = array<i64: 1>, scalar_prefetch = 0 : i64, scratch_operands = 0 : i64, tpu.core_type = #tpu.core_type<tc>, window_params = [{transform_indices = @transform_0, window_bounds = array<i64: 128, 144>}, {pipeline_mode = #tpu.pipeline_mode<synchronous>, transform_indices = @transform_1, window_bounds = array<i64: 144, 16>}, {pipeline_mode = #tpu.pipeline_mode<synchronous>, transform_indices = @transform_2, window_bounds = array<i64: 1, 16>}, {transform_indices = @transform_3, window_bounds = array<i64: 128, 16>}]} {
    %c0 = arith.constant 0 : index
    %c0_0 = arith.constant 0 : index
    %0 = vector.load %arg1[%c0, %c0_0] : memref<128x144xbf16, #tpu.memory_space<vmem>>, vector<128x144xbf16>
    %c0_1 = arith.constant 0 : index
    %c0_2 = arith.constant 0 : index
    %1 = vector.load %arg2[%c0_1, %c0_2] : memref<144x16xbf16, #tpu.memory_space<vmem>>, vector<144x16xbf16>
    %cst = arith.constant dense<0.000000e+00> : vector<128x16xf32>
    %2 = tpu.matmul %0, %1, %cst {dimension_numbers = #tpu.dot_dimension_numbers<[1], [0], [0], [1], [0, 0, 1, 1], [], []>} : vector<128x144xbf16>, vector<144x16xbf16>, vector<128x16xf32> -> vector<128x16xf32>
    %c0_3 = arith.constant 0 : index
    %c0_4 = arith.constant 0 : index
    %3 = vector.load %arg3[%c0_3, %c0_4] : memref<1x16xf32, #tpu.memory_space<vmem>>, vector<1x16xf32>
    %4 = vector.broadcast %3 : vector<1x16xf32> to vector<128x16xf32>
    %5 = arith.addf %2, %4 : vector<128x16xf32>
    %cst_5 = arith.constant 0.000000e+00 : f32
    %6 = vector.broadcast %cst_5 : f32 to vector<128x16xf32>
    %7 = arith.cmpf ogt, %5, %6 : vector<128x16xf32>
    %cst_6 = arith.constant 0.000000e+00 : f32
    %8 = vector.broadcast %cst_6 : f32 to vector<128x16xf32>
    %9 = arith.minimumf %5, %8 : vector<128x16xf32>
    %10 = math.exp %9 : vector<128x16xf32>
    %cst_7 = arith.constant 1.000000e+00 : f32
    %11 = vector.broadcast %cst_7 : f32 to vector<128x16xf32>
    %12 = arith.subf %10, %11 : vector<128x16xf32>
    %13 = arith.select %7, %5, %12 : vector<128x16xi1>, vector<128x16xf32>
    %14 = arith.truncf %13 : vector<128x16xf32> to vector<128x16xbf16>
    %c0_8 = arith.constant 0 : index
    %c0_9 = arith.constant 0 : index
    %15 = vector.load %arg4[%c0_8, %c0_9] : memref<128x16xbf16, #tpu.memory_space<vmem>>, vector<128x16xbf16>
    tpu.vector_store %arg4[%c0_8, %c0_9], %14 {strides = array<i32>} : memref<128x16xbf16, #tpu.memory_space<vmem>>, vector<128x16xbf16>,
    return
  }
  func.func @transform_0(%arg0: i32) -> (i32, i32) {
    %c0_i32 = arith.constant 0 : i32
    %c0_i32_0 = arith.constant 0 : i32
    return %arg0, %c0_i32 : i32, i32
  }
  func.func @transform_1(%arg0: i32) -> (i32, i32) {
    %c0_i32 = arith.constant 0 : i32
    %c0_i32_0 = arith.constant 0 : i32
    %c0_i32_1 = arith.constant 0 : i32
    return %c0_i32, %c0_i32_0 : i32, i32
  }
  func.func @transform_2(%arg0: i32) -> (i32, i32) {
    %c0_i32 = arith.constant 0 : i32
    %c0_i32_0 = arith.constant 0 : i32
    %c0_i32_1 = arith.constant 0 : i32
    return %c0_i32, %c0_i32_0 : i32, i32
  }
  func.func @transform_3(%arg0: i32) -> (i32, i32) {
    %c0_i32 = arith.constant 0 : i32
    %c0_i32_0 = arith.constant 0 : i32
    return %arg0, %c0_i32 : i32, i32
  }
}

module attributes {stable_mosaic.version = 11 : i64} {
  func.func @conv_elu_pool_kernel(%arg0: i32, %arg1: memref<64x144xbf16, #tpu.memory_space<vmem>>, %arg2: memref<144x24xbf16, #tpu.memory_space<vmem>>, %arg3: memref<1x24xf32, #tpu.memory_space<vmem>>, %arg4: memref<16x64xbf16, #tpu.memory_space<vmem>>, %arg5: memref<16x24xbf16, #tpu.memory_space<vmem>>) attributes {dimension_semantics = [#tpu.dimension_semantics<parallel>], iteration_bounds = array<i64: 2>, scalar_prefetch = 0 : i64, scratch_operands = 0 : i64, tpu.core_type = #tpu.core_type<tc>, window_params = [{transform_indices = @transform_0, window_bounds = array<i64: 64, 144>}, {pipeline_mode = #tpu.pipeline_mode<synchronous>, transform_indices = @transform_1, window_bounds = array<i64: 144, 24>}, {pipeline_mode = #tpu.pipeline_mode<synchronous>, transform_indices = @transform_2, window_bounds = array<i64: 1, 24>}, {pipeline_mode = #tpu.pipeline_mode<synchronous>, transform_indices = @transform_3, window_bounds = array<i64: 16, 64>}, {transform_indices = @transform_4, window_bounds = array<i64: 16, 24>}]} {
    %c0 = arith.constant 0 : index
    %c0_0 = arith.constant 0 : index
    %0 = vector.load %arg1[%c0, %c0_0] : memref<64x144xbf16, #tpu.memory_space<vmem>>, vector<64x144xbf16>
    %c0_1 = arith.constant 0 : index
    %c0_2 = arith.constant 0 : index
    %1 = vector.load %arg2[%c0_1, %c0_2] : memref<144x24xbf16, #tpu.memory_space<vmem>>, vector<144x24xbf16>
    %cst = arith.constant dense<0.000000e+00> : vector<64x24xf32>
    %2 = tpu.matmul %0, %1, %cst {dimension_numbers = #tpu.dot_dimension_numbers<[1], [0], [0], [1], [0, 0, 1, 1], [], []>} : vector<64x144xbf16>, vector<144x24xbf16>, vector<64x24xf32> -> vector<64x24xf32>
    %c0_3 = arith.constant 0 : index
    %c0_4 = arith.constant 0 : index
    %3 = vector.load %arg3[%c0_3, %c0_4] : memref<1x24xf32, #tpu.memory_space<vmem>>, vector<1x24xf32>
    %4 = vector.broadcast %3 : vector<1x24xf32> to vector<64x24xf32>
    %5 = arith.addf %2, %4 : vector<64x24xf32>
    %cst_5 = arith.constant 0.000000e+00 : f32
    %6 = vector.broadcast %cst_5 : f32 to vector<64x24xf32>
    %7 = arith.cmpf ogt, %5, %6 : vector<64x24xf32>
    %cst_6 = arith.constant 0.000000e+00 : f32
    %8 = vector.broadcast %cst_6 : f32 to vector<64x24xf32>
    %9 = arith.minimumf %5, %8 : vector<64x24xf32>
    %10 = math.exp %9 : vector<64x24xf32>
    %cst_7 = arith.constant 1.000000e+00 : f32
    %11 = vector.broadcast %cst_7 : f32 to vector<64x24xf32>
    %12 = arith.subf %10, %11 : vector<64x24xf32>
    %13 = arith.select %7, %5, %12 : vector<64x24xi1>, vector<64x24xf32>
    %c0_8 = arith.constant 0 : index
    %c0_9 = arith.constant 0 : index
    %14 = vector.load %arg4[%c0_8, %c0_9] : memref<16x64xbf16, #tpu.memory_space<vmem>>, vector<16x64xbf16>
    %15 = arith.truncf %13 : vector<64x24xf32> to vector<64x24xbf16>
    %cst_10 = arith.constant dense<0.000000e+00> : vector<16x24xf32>
    %16 = tpu.matmul %14, %15, %cst_10 {dimension_numbers = #tpu.dot_dimension_numbers<[1], [0], [0], [1], [0, 0, 1, 1], [], []>} : vector<16x64xbf16>, vector<64x24xbf16>, vector<16x24xf32> -> vector<16x24xf32>
    %17 = arith.truncf %16 : vector<16x24xf32> to vector<16x24xbf16>
    %c0_11 = arith.constant 0 : index
    %c0_12 = arith.constant 0 : index
    %18 = vector.load %arg5[%c0_11, %c0_12] : memref<16x24xbf16, #tpu.memory_space<vmem>>, vector<16x24xbf16>
    tpu.vector_store %arg5[%c0_11, %c0_12], %17 {strides = array<i32>} : memref<16x24xbf16, #tpu.memory_space<vmem>>, vector<16x24xbf16>,
    return
  }
  func.func @transform_0(%arg0: i32) -> (i32, i32) {
    %c0_i32 = arith.constant 0 : i32
    %c0_i32_0 = arith.constant 0 : i32
    return %arg0, %c0_i32 : i32, i32
  }
  func.func @transform_1(%arg0: i32) -> (i32, i32) {
    %c0_i32 = arith.constant 0 : i32
    %c0_i32_0 = arith.constant 0 : i32
    %c0_i32_1 = arith.constant 0 : i32
    return %c0_i32, %c0_i32_0 : i32, i32
  }
  func.func @transform_2(%arg0: i32) -> (i32, i32) {
    %c0_i32 = arith.constant 0 : i32
    %c0_i32_0 = arith.constant 0 : i32
    %c0_i32_1 = arith.constant 0 : i32
    return %c0_i32, %c0_i32_0 : i32, i32
  }
  func.func @transform_3(%arg0: i32) -> (i32, i32) {
    %c0_i32 = arith.constant 0 : i32
    %c0_i32_0 = arith.constant 0 : i32
    %c0_i32_1 = arith.constant 0 : i32
    return %c0_i32, %c0_i32_0 : i32, i32
  }
  func.func @transform_4(%arg0: i32) -> (i32, i32) {
    %c0_i32 = arith.constant 0 : i32
    %c0_i32_0 = arith.constant 0 : i32
    return %arg0, %c0_i32 : i32, i32
  }
}

module attributes {stable_mosaic.version = 11 : i64} {
  func.func @conv_act_kernel(%arg0: i32, %arg1: memref<32x216xbf16, #tpu.memory_space<vmem>>, %arg2: memref<216x24xbf16, #tpu.memory_space<vmem>>, %arg3: memref<1x24xf32, #tpu.memory_space<vmem>>, %arg4: memref<32x24xbf16, #tpu.memory_space<vmem>>) attributes {dimension_semantics = [#tpu.dimension_semantics<parallel>], iteration_bounds = array<i64: 1>, scalar_prefetch = 0 : i64, scratch_operands = 0 : i64, tpu.core_type = #tpu.core_type<tc>, window_params = [{transform_indices = @transform_0, window_bounds = array<i64: 32, 216>}, {pipeline_mode = #tpu.pipeline_mode<synchronous>, transform_indices = @transform_1, window_bounds = array<i64: 216, 24>}, {pipeline_mode = #tpu.pipeline_mode<synchronous>, transform_indices = @transform_2, window_bounds = array<i64: 1, 24>}, {transform_indices = @transform_3, window_bounds = array<i64: 32, 24>}]} {
    %c0 = arith.constant 0 : index
    %c0_0 = arith.constant 0 : index
    %0 = vector.load %arg1[%c0, %c0_0] : memref<32x216xbf16, #tpu.memory_space<vmem>>, vector<32x216xbf16>
    %c0_1 = arith.constant 0 : index
    %c0_2 = arith.constant 0 : index
    %1 = vector.load %arg2[%c0_1, %c0_2] : memref<216x24xbf16, #tpu.memory_space<vmem>>, vector<216x24xbf16>
    %cst = arith.constant dense<0.000000e+00> : vector<32x24xf32>
    %2 = tpu.matmul %0, %1, %cst {dimension_numbers = #tpu.dot_dimension_numbers<[1], [0], [0], [1], [0, 0, 1, 1], [], []>} : vector<32x216xbf16>, vector<216x24xbf16>, vector<32x24xf32> -> vector<32x24xf32>
    %c0_3 = arith.constant 0 : index
    %c0_4 = arith.constant 0 : index
    %3 = vector.load %arg3[%c0_3, %c0_4] : memref<1x24xf32, #tpu.memory_space<vmem>>, vector<1x24xf32>
    %4 = vector.broadcast %3 : vector<1x24xf32> to vector<32x24xf32>
    %5 = arith.addf %2, %4 : vector<32x24xf32>
    %cst_5 = arith.constant 0.000000e+00 : f32
    %6 = vector.broadcast %cst_5 : f32 to vector<32x24xf32>
    %7 = arith.cmpf ogt, %5, %6 : vector<32x24xf32>
    %cst_6 = arith.constant 0.000000e+00 : f32
    %8 = vector.broadcast %cst_6 : f32 to vector<32x24xf32>
    %9 = arith.minimumf %5, %8 : vector<32x24xf32>
    %10 = math.exp %9 : vector<32x24xf32>
    %cst_7 = arith.constant 1.000000e+00 : f32
    %11 = vector.broadcast %cst_7 : f32 to vector<32x24xf32>
    %12 = arith.subf %10, %11 : vector<32x24xf32>
    %13 = arith.select %7, %5, %12 : vector<32x24xi1>, vector<32x24xf32>
    %14 = arith.truncf %13 : vector<32x24xf32> to vector<32x24xbf16>
    %c0_8 = arith.constant 0 : index
    %c0_9 = arith.constant 0 : index
    %15 = vector.load %arg4[%c0_8, %c0_9] : memref<32x24xbf16, #tpu.memory_space<vmem>>, vector<32x24xbf16>
    tpu.vector_store %arg4[%c0_8, %c0_9], %14 {strides = array<i32>} : memref<32x24xbf16, #tpu.memory_space<vmem>>, vector<32x24xbf16>,
    return
  }
  func.func @transform_0(%arg0: i32) -> (i32, i32) {
    %c0_i32 = arith.constant 0 : i32
    %c0_i32_0 = arith.constant 0 : i32
    return %arg0, %c0_i32 : i32, i32
  }
  func.func @transform_1(%arg0: i32) -> (i32, i32) {
    %c0_i32 = arith.constant 0 : i32
    %c0_i32_0 = arith.constant 0 : i32
    %c0_i32_1 = arith.constant 0 : i32
    return %c0_i32, %c0_i32_0 : i32, i32
  }
  func.func @transform_2(%arg0: i32) -> (i32, i32) {
    %c0_i32 = arith.constant 0 : i32
    %c0_i32_0 = arith.constant 0 : i32
    %c0_i32_1 = arith.constant 0 : i32
    return %c0_i32, %c0_i32_0 : i32, i32
  }
  func.func @transform_3(%arg0: i32) -> (i32, i32) {
    %c0_i32 = arith.constant 0 : i32
    %c0_i32_0 = arith.constant 0 : i32
    return %arg0, %c0_i32 : i32, i32
  }
}

module attributes {stable_mosaic.version = 11 : i64} {
  func.func @fc_kernel(%arg0: i32, %arg1: memref<2x16xbf16, #tpu.memory_space<vmem>>, %arg2: memref<16x128xbf16, #tpu.memory_space<vmem>>, %arg3: memref<1x128xf32, #tpu.memory_space<vmem>>, %arg4: memref<2x128xbf16, #tpu.memory_space<vmem>>) attributes {dimension_semantics = [#tpu.dimension_semantics<arbitrary>], iteration_bounds = array<i64: 1>, scalar_prefetch = 0 : i64, scratch_operands = 0 : i64, tpu.core_type = #tpu.core_type<tc>, window_params = [{pipeline_mode = #tpu.pipeline_mode<synchronous>, transform_indices = @transform_0, window_bounds = array<i64: 2, 16>}, {pipeline_mode = #tpu.pipeline_mode<synchronous>, transform_indices = @transform_1, window_bounds = array<i64: 16, 128>}, {pipeline_mode = #tpu.pipeline_mode<synchronous>, transform_indices = @transform_2, window_bounds = array<i64: 1, 128>}, {pipeline_mode = #tpu.pipeline_mode<synchronous>, transform_indices = @transform_3, window_bounds = array<i64: 2, 128>}]} {
    %c0 = arith.constant 0 : index
    %c0_0 = arith.constant 0 : index
    %0 = vector.load %arg1[%c0, %c0_0] : memref<2x16xbf16, #tpu.memory_space<vmem>>, vector<2x16xbf16>
    %c0_1 = arith.constant 0 : index
    %c0_2 = arith.constant 0 : index
    %1 = vector.load %arg2[%c0_1, %c0_2] : memref<16x128xbf16, #tpu.memory_space<vmem>>, vector<16x128xbf16>
    %cst = arith.constant dense<0.000000e+00> : vector<2x128xf32>
    %2 = tpu.matmul %0, %1, %cst {dimension_numbers = #tpu.dot_dimension_numbers<[1], [0], [0], [1], [0, 0, 1, 1], [], []>} : vector<2x16xbf16>, vector<16x128xbf16>, vector<2x128xf32> -> vector<2x128xf32>
    %c0_3 = arith.constant 0 : index
    %c0_4 = arith.constant 0 : index
    %3 = vector.load %arg3[%c0_3, %c0_4] : memref<1x128xf32, #tpu.memory_space<vmem>>, vector<1x128xf32>
    %4 = vector.broadcast %3 : vector<1x128xf32> to vector<2x128xf32>
    %5 = arith.addf %2, %4 : vector<2x128xf32>
    %6 = arith.truncf %5 : vector<2x128xf32> to vector<2x128xbf16>
    %c0_5 = arith.constant 0 : index
    %c0_6 = arith.constant 0 : index
    %7 = vector.load %arg4[%c0_5, %c0_6] : memref<2x128xbf16, #tpu.memory_space<vmem>>, vector<2x128xbf16>
    tpu.vector_store %arg4[%c0_5, %c0_6], %6 {strides = array<i32>} : memref<2x128xbf16, #tpu.memory_space<vmem>>, vector<2x128xbf16>,
    return
  }
  func.func @transform_0(%arg0: i32) -> (i32, i32) {
    %c0_i32 = arith.constant 0 : i32
    %c0_i32_0 = arith.constant 0 : i32
    %c0_i32_1 = arith.constant 0 : i32
    return %c0_i32, %c0_i32_0 : i32, i32
  }
  func.func @transform_1(%arg0: i32) -> (i32, i32) {
    %c0_i32 = arith.constant 0 : i32
    %c0_i32_0 = arith.constant 0 : i32
    %c0_i32_1 = arith.constant 0 : i32
    return %c0_i32, %c0_i32_0 : i32, i32
  }
  func.func @transform_2(%arg0: i32) -> (i32, i32) {
    %c0_i32 = arith.constant 0 : i32
    %c0_i32_0 = arith.constant 0 : i32
    %c0_i32_1 = arith.constant 0 : i32
    return %c0_i32, %c0_i32_0 : i32, i32
  }
  func.func @transform_3(%arg0: i32) -> (i32, i32) {
    %c0_i32 = arith.constant 0 : i32
    %c0_i32_0 = arith.constant 0 : i32
    %c0_i32_1 = arith.constant 0 : i32
    return %c0_i32, %c0_i32_0 : i32, i32
  }
}

module attributes {stable_mosaic.version = 11 : i64} {
  func.func @fc_kernel(%arg0: i32, %arg1: memref<2x384xbf16, #tpu.memory_space<vmem>>, %arg2: memref<384x16xbf16, #tpu.memory_space<vmem>>, %arg3: memref<1x16xf32, #tpu.memory_space<vmem>>, %arg4: memref<2x16xbf16, #tpu.memory_space<vmem>>) attributes {dimension_semantics = [#tpu.dimension_semantics<arbitrary>], iteration_bounds = array<i64: 1>, scalar_prefetch = 0 : i64, scratch_operands = 0 : i64, tpu.core_type = #tpu.core_type<tc>, window_params = [{pipeline_mode = #tpu.pipeline_mode<synchronous>, transform_indices = @transform_0, window_bounds = array<i64: 2, 384>}, {pipeline_mode = #tpu.pipeline_mode<synchronous>, transform_indices = @transform_1, window_bounds = array<i64: 384, 16>}, {pipeline_mode = #tpu.pipeline_mode<synchronous>, transform_indices = @transform_2, window_bounds = array<i64: 1, 16>}, {pipeline_mode = #tpu.pipeline_mode<synchronous>, transform_indices = @transform_3, window_bounds = array<i64: 2, 16>}]} {
    %c0 = arith.constant 0 : index
    %c0_0 = arith.constant 0 : index
    %0 = vector.load %arg1[%c0, %c0_0] : memref<2x384xbf16, #tpu.memory_space<vmem>>, vector<2x384xbf16>
    %c0_1 = arith.constant 0 : index
    %c0_2 = arith.constant 0 : index
    %1 = vector.load %arg2[%c0_1, %c0_2] : memref<384x16xbf16, #tpu.memory_space<vmem>>, vector<384x16xbf16>
    %cst = arith.constant dense<0.000000e+00> : vector<2x16xf32>
    %2 = tpu.matmul %0, %1, %cst {dimension_numbers = #tpu.dot_dimension_numbers<[1], [0], [0], [1], [0, 0, 1, 1], [], []>} : vector<2x384xbf16>, vector<384x16xbf16>, vector<2x16xf32> -> vector<2x16xf32>
    %c0_3 = arith.constant 0 : index
    %c0_4 = arith.constant 0 : index
    %3 = vector.load %arg3[%c0_3, %c0_4] : memref<1x16xf32, #tpu.memory_space<vmem>>, vector<1x16xf32>
    %4 = vector.broadcast %3 : vector<1x16xf32> to vector<2x16xf32>
    %5 = arith.addf %2, %4 : vector<2x16xf32>
    %6 = arith.truncf %5 : vector<2x16xf32> to vector<2x16xbf16>
    %c0_5 = arith.constant 0 : index
    %c0_6 = arith.constant 0 : index
    %7 = vector.load %arg4[%c0_5, %c0_6] : memref<2x16xbf16, #tpu.memory_space<vmem>>, vector<2x16xbf16>
    tpu.vector_store %arg4[%c0_5, %c0_6], %6 {strides = array<i32>} : memref<2x16xbf16, #tpu.memory_space<vmem>>, vector<2x16xbf16>,
    return
  }
  func.func @transform_0(%arg0: i32) -> (i32, i32) {
    %c0_i32 = arith.constant 0 : i32
    %c0_i32_0 = arith.constant 0 : i32
    %c0_i32_1 = arith.constant 0 : i32
    return %c0_i32, %c0_i32_0 : i32, i32
  }
  func.func @transform_1(%arg0: i32) -> (i32, i32) {
    %c0_i32 = arith.constant 0 : i32
    %c0_i32_0 = arith.constant 0 : i32
    %c0_i32_1 = arith.constant 0 : i32
    return %c0_i32, %c0_i32_0 : i32, i32
  }
  func.func @transform_2(%arg0: i32) -> (i32, i32) {
    %c0_i32 = arith.constant 0 : i32
    %c0_i32_0 = arith.constant 0 : i32
    %c0_i32_1 = arith.constant 0 : i32
    return %c0_i32, %c0_i32_0 : i32, i32
  }
  func.func @transform_3(%arg0: i32) -> (i32, i32) {
    %c0_i32 = arith.constant 0 : i32
    %c0_i32_0 = arith.constant 0 : i32
    %c0_i32_1 = arith.constant 0 : i32
    return %c0_i32, %c0_i32_0 : i32, i32
  }
}

module attributes {stable_mosaic.version = 11 : i64} {
  func.func @conv_act_kernel(%arg0: i32, %arg1: memref<32x72xbf16, #tpu.memory_space<vmem>>, %arg2: memref<72x8xbf16, #tpu.memory_space<vmem>>, %arg3: memref<1x8xf32, #tpu.memory_space<vmem>>, %arg4: memref<32x8xbf16, #tpu.memory_space<vmem>>) attributes {dimension_semantics = [#tpu.dimension_semantics<parallel>], iteration_bounds = array<i64: 1>, scalar_prefetch = 0 : i64, scratch_operands = 0 : i64, tpu.core_type = #tpu.core_type<tc>, window_params = [{transform_indices = @transform_0, window_bounds = array<i64: 32, 72>}, {pipeline_mode = #tpu.pipeline_mode<synchronous>, transform_indices = @transform_1, window_bounds = array<i64: 72, 8>}, {pipeline_mode = #tpu.pipeline_mode<synchronous>, transform_indices = @transform_2, window_bounds = array<i64: 1, 8>}, {transform_indices = @transform_3, window_bounds = array<i64: 32, 8>}]} {
    %c0 = arith.constant 0 : index
    %c0_0 = arith.constant 0 : index
    %0 = vector.load %arg1[%c0, %c0_0] : memref<32x72xbf16, #tpu.memory_space<vmem>>, vector<32x72xbf16>
    %c0_1 = arith.constant 0 : index
    %c0_2 = arith.constant 0 : index
    %1 = vector.load %arg2[%c0_1, %c0_2] : memref<72x8xbf16, #tpu.memory_space<vmem>>, vector<72x8xbf16>
    %cst = arith.constant dense<0.000000e+00> : vector<32x8xf32>
    %2 = tpu.matmul %0, %1, %cst {dimension_numbers = #tpu.dot_dimension_numbers<[1], [0], [0], [1], [0, 0, 1, 1], [], []>} : vector<32x72xbf16>, vector<72x8xbf16>, vector<32x8xf32> -> vector<32x8xf32>
    %c0_3 = arith.constant 0 : index
    %c0_4 = arith.constant 0 : index
    %3 = vector.load %arg3[%c0_3, %c0_4] : memref<1x8xf32, #tpu.memory_space<vmem>>, vector<1x8xf32>
    %4 = vector.broadcast %3 : vector<1x8xf32> to vector<32x8xf32>
    %5 = arith.addf %2, %4 : vector<32x8xf32>
    %cst_5 = arith.constant 0.000000e+00 : f32
    %6 = vector.broadcast %cst_5 : f32 to vector<32x8xf32>
    %7 = arith.cmpf ogt, %5, %6 : vector<32x8xf32>
    %cst_6 = arith.constant 0.000000e+00 : f32
    %8 = vector.broadcast %cst_6 : f32 to vector<32x8xf32>
    %9 = arith.minimumf %5, %8 : vector<32x8xf32>
    %10 = math.exp %9 : vector<32x8xf32>
    %cst_7 = arith.constant 1.000000e+00 : f32
    %11 = vector.broadcast %cst_7 : f32 to vector<32x8xf32>
    %12 = arith.subf %10, %11 : vector<32x8xf32>
    %13 = arith.select %7, %5, %12 : vector<32x8xi1>, vector<32x8xf32>
    %14 = arith.truncf %13 : vector<32x8xf32> to vector<32x8xbf16>
    %c0_8 = arith.constant 0 : index
    %c0_9 = arith.constant 0 : index
    %15 = vector.load %arg4[%c0_8, %c0_9] : memref<32x8xbf16, #tpu.memory_space<vmem>>, vector<32x8xbf16>
    tpu.vector_store %arg4[%c0_8, %c0_9], %14 {strides = array<i32>} : memref<32x8xbf16, #tpu.memory_space<vmem>>, vector<32x8xbf16>,
    return
  }
  func.func @transform_0(%arg0: i32) -> (i32, i32) {
    %c0_i32 = arith.constant 0 : i32
    %c0_i32_0 = arith.constant 0 : i32
    return %arg0, %c0_i32 : i32, i32
  }
  func.func @transform_1(%arg0: i32) -> (i32, i32) {
    %c0_i32 = arith.constant 0 : i32
    %c0_i32_0 = arith.constant 0 : i32
    %c0_i32_1 = arith.constant 0 : i32
    return %c0_i32, %c0_i32_0 : i32, i32
  }
  func.func @transform_2(%arg0: i32) -> (i32, i32) {
    %c0_i32 = arith.constant 0 : i32
    %c0_i32_0 = arith.constant 0 : i32
    %c0_i32_1 = arith.constant 0 : i32
    return %c0_i32, %c0_i32_0 : i32, i32
  }
  func.func @transform_3(%arg0: i32) -> (i32, i32) {
    %c0_i32 = arith.constant 0 : i32
    %c0_i32_0 = arith.constant 0 : i32
    return %arg0, %c0_i32 : i32, i32
  }
}

module attributes {stable_mosaic.version = 11 : i64} {
  func.func @conv_act_kernel(%arg0: i32, %arg1: memref<128x72xbf16, #tpu.memory_space<vmem>>, %arg2: memref<72x8xbf16, #tpu.memory_space<vmem>>, %arg3: memref<1x8xf32, #tpu.memory_space<vmem>>, %arg4: memref<128x8xbf16, #tpu.memory_space<vmem>>) attributes {dimension_semantics = [#tpu.dimension_semantics<parallel>], iteration_bounds = array<i64: 1>, scalar_prefetch = 0 : i64, scratch_operands = 0 : i64, tpu.core_type = #tpu.core_type<tc>, window_params = [{transform_indices = @transform_0, window_bounds = array<i64: 128, 72>}, {pipeline_mode = #tpu.pipeline_mode<synchronous>, transform_indices = @transform_1, window_bounds = array<i64: 72, 8>}, {pipeline_mode = #tpu.pipeline_mode<synchronous>, transform_indices = @transform_2, window_bounds = array<i64: 1, 8>}, {transform_indices = @transform_3, window_bounds = array<i64: 128, 8>}]} {
    %c0 = arith.constant 0 : index
    %c0_0 = arith.constant 0 : index
    %0 = vector.load %arg1[%c0, %c0_0] : memref<128x72xbf16, #tpu.memory_space<vmem>>, vector<128x72xbf16>
    %c0_1 = arith.constant 0 : index
    %c0_2 = arith.constant 0 : index
    %1 = vector.load %arg2[%c0_1, %c0_2] : memref<72x8xbf16, #tpu.memory_space<vmem>>, vector<72x8xbf16>
    %cst = arith.constant dense<0.000000e+00> : vector<128x8xf32>
    %2 = tpu.matmul %0, %1, %cst {dimension_numbers = #tpu.dot_dimension_numbers<[1], [0], [0], [1], [0, 0, 1, 1], [], []>} : vector<128x72xbf16>, vector<72x8xbf16>, vector<128x8xf32> -> vector<128x8xf32>
    %c0_3 = arith.constant 0 : index
    %c0_4 = arith.constant 0 : index
    %3 = vector.load %arg3[%c0_3, %c0_4] : memref<1x8xf32, #tpu.memory_space<vmem>>, vector<1x8xf32>
    %4 = vector.broadcast %3 : vector<1x8xf32> to vector<128x8xf32>
    %5 = arith.addf %2, %4 : vector<128x8xf32>
    %cst_5 = arith.constant 0.000000e+00 : f32
    %6 = vector.broadcast %cst_5 : f32 to vector<128x8xf32>
    %7 = arith.cmpf ogt, %5, %6 : vector<128x8xf32>
    %cst_6 = arith.constant 0.000000e+00 : f32
    %8 = vector.broadcast %cst_6 : f32 to vector<128x8xf32>
    %9 = arith.minimumf %5, %8 : vector<128x8xf32>
    %10 = math.exp %9 : vector<128x8xf32>
    %cst_7 = arith.constant 1.000000e+00 : f32
    %11 = vector.broadcast %cst_7 : f32 to vector<128x8xf32>
    %12 = arith.subf %10, %11 : vector<128x8xf32>
    %13 = arith.select %7, %5, %12 : vector<128x8xi1>, vector<128x8xf32>
    %14 = arith.truncf %13 : vector<128x8xf32> to vector<128x8xbf16>
    %c0_8 = arith.constant 0 : index
    %c0_9 = arith.constant 0 : index
    %15 = vector.load %arg4[%c0_8, %c0_9] : memref<128x8xbf16, #tpu.memory_space<vmem>>, vector<128x8xbf16>
    tpu.vector_store %arg4[%c0_8, %c0_9], %14 {strides = array<i32>} : memref<128x8xbf16, #tpu.memory_space<vmem>>, vector<128x8xbf16>,
    return
  }
  func.func @transform_0(%arg0: i32) -> (i32, i32) {
    %c0_i32 = arith.constant 0 : i32
    %c0_i32_0 = arith.constant 0 : i32
    return %arg0, %c0_i32 : i32, i32
  }
  func.func @transform_1(%arg0: i32) -> (i32, i32) {
    %c0_i32 = arith.constant 0 : i32
    %c0_i32_0 = arith.constant 0 : i32
    %c0_i32_1 = arith.constant 0 : i32
    return %c0_i32, %c0_i32_0 : i32, i32
  }
  func.func @transform_2(%arg0: i32) -> (i32, i32) {
    %c0_i32 = arith.constant 0 : i32
    %c0_i32_0 = arith.constant 0 : i32
    %c0_i32_1 = arith.constant 0 : i32
    return %c0_i32, %c0_i32_0 : i32, i32
  }
  func.func @transform_3(%arg0: i32) -> (i32, i32) {
    %c0_i32 = arith.constant 0 : i32
    %c0_i32_0 = arith.constant 0 : i32
    return %arg0, %c0_i32 : i32, i32
  }
}

module attributes {stable_mosaic.version = 11 : i64} {
  func.func @conv_act_kernel(%arg0: i32, %arg1: memref<256x72xbf16, #tpu.memory_space<vmem>>, %arg2: memref<72x4xbf16, #tpu.memory_space<vmem>>, %arg3: memref<1x4xf32, #tpu.memory_space<vmem>>, %arg4: memref<256x4xf32, #tpu.memory_space<vmem>>) attributes {dimension_semantics = [#tpu.dimension_semantics<parallel>], iteration_bounds = array<i64: 2>, scalar_prefetch = 0 : i64, scratch_operands = 0 : i64, tpu.core_type = #tpu.core_type<tc>, window_params = [{transform_indices = @transform_0, window_bounds = array<i64: 256, 72>}, {pipeline_mode = #tpu.pipeline_mode<synchronous>, transform_indices = @transform_1, window_bounds = array<i64: 72, 4>}, {pipeline_mode = #tpu.pipeline_mode<synchronous>, transform_indices = @transform_2, window_bounds = array<i64: 1, 4>}, {transform_indices = @transform_3, window_bounds = array<i64: 256, 4>}]} {
    %c0 = arith.constant 0 : index
    %c0_0 = arith.constant 0 : index
    %0 = vector.load %arg1[%c0, %c0_0] : memref<256x72xbf16, #tpu.memory_space<vmem>>, vector<256x72xbf16>
    %c0_1 = arith.constant 0 : index
    %c0_2 = arith.constant 0 : index
    %1 = vector.load %arg2[%c0_1, %c0_2] : memref<72x4xbf16, #tpu.memory_space<vmem>>, vector<72x4xbf16>
    %cst = arith.constant dense<0.000000e+00> : vector<256x4xf32>
    %2 = tpu.matmul %0, %1, %cst {dimension_numbers = #tpu.dot_dimension_numbers<[1], [0], [0], [1], [0, 0, 1, 1], [], []>} : vector<256x72xbf16>, vector<72x4xbf16>, vector<256x4xf32> -> vector<256x4xf32>
    %c0_3 = arith.constant 0 : index
    %c0_4 = arith.constant 0 : index
    %3 = vector.load %arg3[%c0_3, %c0_4] : memref<1x4xf32, #tpu.memory_space<vmem>>, vector<1x4xf32>
    %4 = vector.broadcast %3 : vector<1x4xf32> to vector<256x4xf32>
    %5 = arith.addf %2, %4 : vector<256x4xf32>
    %6 = math.tanh %5 : vector<256x4xf32>
    %c0_5 = arith.constant 0 : index
    %c0_6 = arith.constant 0 : index
    %7 = vector.load %arg4[%c0_5, %c0_6] : memref<256x4xf32, #tpu.memory_space<vmem>>, vector<256x4xf32>
    tpu.vector_store %arg4[%c0_5, %c0_6], %6 {strides = array<i32>} : memref<256x4xf32, #tpu.memory_space<vmem>>, vector<256x4xf32>,
    return
  }
  func.func @transform_0(%arg0: i32) -> (i32, i32) {
    %c0_i32 = arith.constant 0 : i32
    %c0_i32_0 = arith.constant 0 : i32
    return %arg0, %c0_i32 : i32, i32
  }
  func.func @transform_1(%arg0: i32) -> (i32, i32) {
    %c0_i32 = arith.constant 0 : i32
    %c0_i32_0 = arith.constant 0 : i32
    %c0_i32_1 = arith.constant 0 : i32
    return %c0_i32, %c0_i32_0 : i32, i32
  }
  func.func @transform_2(%arg0: i32) -> (i32, i32) {
    %c0_i32 = arith.constant 0 : i32
    %c0_i32_0 = arith.constant 0 : i32
    %c0_i32_1 = arith.constant 0 : i32
    return %c0_i32, %c0_i32_0 : i32, i32
  }
  func.func @transform_3(%arg0: i32) -> (i32, i32) {
    %c0_i32 = arith.constant 0 : i32
    %c0_i32_0 = arith.constant 0 : i32
    return %arg0, %c0_i32 : i32, i32
  }
}

</mosaic_0001>

<bundles_post_ra>
// kernel: discriminator_forward.16
= control target key start
LH: loop header
LB: loop body
LE: loop exit
PB: predicated region body
PF: predicated region fallthrough
CT: control target
= control target key end

     0   :  { %s1264_s12 = smov 0   ;;  %s1682_s0 = inlined_call_operand.vmem [shape: bf16[512,36], index: 0, kind: input, shape index: {}]   ;;  %s1683_s1 = inlined_call_operand.vmem [shape: bf16[36,8], index: 1, kind: input, shape index: {}]   ;;  %s1684_s2 = inlined_call_operand.vmem [shape: f32[1,8], index: 2, kind: input, shape index: {}]   ;;  %s1685_s3 = inlined_call_operand.vmem [shape: bf16[512,8], index: 3, kind: output, shape index: {}]  }
   0x1 LB: > { %s937_s13 = sadd.s32 4294967295, %s1242_s12   ;;  %p941_p0 = scmp.ge.s32.totalorder %s1242_s12, 1  ;;  %s1242_s12 = sphi %s1264_s12, %s13_s12  }
   0x2   : > { %p138_p1 = scmp.lt.s32.totalorder %s1242_s12, 3 }
   0x4   : > { %p139_p2 = pnand %p941_p0, %p138_p1 }
   0x5   : > { %v1153_v0 = vld [vmem:[%s1683_s1] sm:$0xff] (!%p139_p2)   ;;  %v1154_v1 = vld [vmem:[%s1683_s1 + $0x8] sm:$0xff] (!%p139_p2)   ;;  %s942_s18 = sshll.u32 (!%p139_p2), %s937_s13, 5  ;;  %v1155_v2 = vld [vmem:[%s1683_s1 + $0x10] ss:$0 sps:$4 sm:$0x33] (!%p139_p2)  }
   0x6   : > { %142 = sbr.rel (%p139_p2) target bundleno = 306 (0x132), region = 32  ;;  %1099 = vmatprep.subr.bf16.mxu0 (!%p139_p2), %v1153_v0  ;;  %1137 = vmatprep.subr.bf16.mxu1 (!%p139_p2), %v1153_v0  ;;  %p163_p3 = scmp.lt.s32.totalorder (!%p139_p2), %s942_s18, 63  ;;  %vm363_vm0 = vcmask (!%p139_p2), 1041408   ;;  %vm314_vm1 = vcmask (!%p139_p2), 293888   ;;  %v1326_v20 = vld [vmem:[%s1684_s2] ss:$0 sm:$0xff] (!%p139_p2) }
   0x7   : > { %1100 = vmatpush3.bf16.msra.mxu0 (!%p139_p2), %v1153_v0  ;;  %1140 = vmatpush3.bf16.msra.mxu1 (!%p139_p2), %v1153_v0  ;;  %v365_v3 = vsel (!%p139_p2), %vm363_vm0, %v1155_v2, 0  ;;  %vm848_vm3 = vcmask (!%p139_p2), 60416  }
   0x8   : > { %1101 = vmatprep.subr.bf16.mxu0 (!%p139_p2), %v1154_v1  ;;  %1138 = vmatprep.subr.bf16.mxu1 (!%p139_p2), %v1154_v1 }
   0xb   : > { %1102 = vmatpush3.bf16.msra.mxu0 (!%p139_p2), %v1154_v1  ;;  %1141 = vmatpush3.bf16.msra.mxu1 (!%p139_p2), %v1154_v1 }
   0xc   : > { %1143 = vmatprep.subr.msk.bf16.mxu0 (!%p139_p2), %vm363_vm0, %v1155_v2  ;;  %1144 = vmatprep.subr.msk.bf16.mxu1 (!%p139_p2), %vm363_vm0, %v1155_v2 }
   0xd   : > { %s1687_s18 = smov (!%p163_p3, %s942_s18), 63 }
   0xe   : > { %s943_s21 = sshll.u32 %s1687_s18, 2 }
   0xf   : > { %s1289_s24 = scalar_lea.vmem %s1682_s0, %s943_s21  ;;  %1104 = vmatpush3.bf16.msra.mxu0 %v365_v3  ;;  %1142 = vmatpush3.bf16.msra.mxu1 %v365_v3  ;;  %s1419_s29 = scalar_lea.vmem %s1685_s3, %s943_s21 }
  0x10   : > { %v1156_v4 = vld [vmem:[%s1289_s24] sm:$0xff]   ;;  %v1158_v6 = vld [vmem:[%s1289_s24 + $0x8] sm:$0xff]   ;;  %v1160_v8 = vld [vmem:[%s1289_s24 + $0x10] sm:$0xff]  }
  0x11   : > { %v1157_v5 = vld [vmem:[%s1289_s24 + $0x40] sm:$0xff]   ;;  %1105 = vmatprep.mubr.msk.bf16.mxu0 %vm314_vm1, %v1156_v4  ;;  %v1159_v7 = vld [vmem:[%s1289_s24 + $0x48] sm:$0xff]   ;;  %v1161_v9 = vld [vmem:[%s1289_s24 + $0x50] sm:$0xff]  }
  0x12   : > { %1121 = vmatprep.mubr.msk.bf16.mxu1 %vm314_vm1, %v1157_v5  ;;  %1106 = vmatmul.mubr.msk.bf16.vlgmr.msra.gmra.mrb[0].mxu0 %vm314_vm1, %v1158_v6  ;;  %v1162_v10 = vld [vmem:[%s1289_s24 + $0x18] sm:$0xff]   ;;  %v1164_v12 = vld [vmem:[%s1289_s24 + $0x20] sm:$0xff]   ;;  %v1166_v14 = vld [vmem:[%s1289_s24 + $0x28] sm:$0xff]  }
  0x13   : > { %1122 = vmatmul.mubr.msk.bf16.vlgmr.msra.gmra.mrb[0].mxu1 %vm314_vm1, %v1159_v7  ;;  %1109 = vmatprep.mubr.msk.bf16.mxu0 %vm314_vm1, %v1160_v8  ;;  %v1163_v11 = vld [vmem:[%s1289_s24 + $0x58] sm:$0xff]   ;;  %v1165_v13 = vld [vmem:[%s1289_s24 + $0x60] sm:$0xff]   ;;  %v1167_v15 = vld [vmem:[%s1289_s24 + $0x68] sm:$0xff]  }
  0x14   : > { %1125 = vmatprep.mubr.msk.bf16.mxu1 %vm314_vm1, %v1161_v9  ;;  %v1168_v16 = vld [vmem:[%s1289_s24 + $0x30] sm:$0xff]   ;;  %v1170_v18 = vld [vmem:[%s1289_s24 + $0x38] sm:$0xff]  }
  0x15   : > { %v1169_v17 = vld [vmem:[%s1289_s24 + $0x70] sm:$0xff]   ;;  %v1171_v19 = vld [vmem:[%s1289_s24 + $0x78] sm:$0xff]  }
  0x1a   : > { %1110 = vmatmul.mubr.msk.bf16.gmra.mrb[4].mxu0 %vm314_vm1, %v1162_v10 }
  0x1b   : > { %1126 = vmatmul.mubr.msk.bf16.gmra.mrb[4].mxu1 %vm314_vm1, %v1163_v11  ;;  %1113 = vmatprep.mubr.msk.bf16.mxu0 %vm314_vm1, %v1164_v12 }
  0x1c   : > { %1129 = vmatprep.mubr.msk.bf16.mxu1 %vm314_vm1, %v1165_v13 }
  0x22   : > { %1114 = vmatmul.mubr.msk.bf16.gmra.mrb[8].mxu0 %vm314_vm1, %v1166_v14 }
  0x23   : > { %1130 = vmatmul.mubr.msk.bf16.gmra.mrb[8].mxu1 %vm314_vm1, %v1167_v15  ;;  %1117 = vmatprep.mubr.msk.bf16.mxu0 %vm314_vm1, %v1168_v16 }
  0x24   : > { %1133 = vmatprep.mubr.msk.bf16.mxu1 %vm314_vm1, %v1169_v17 }
  0x2a   : > { %1118 = vmatmul.mubr.msk.bf16.gmra.mrb[12].mxu0 %vm314_vm1, %v1170_v18 }
  0x2b   : > { %1134 = vmatmul.mubr.msk.bf16.gmra.mrb[12].mxu1 %vm314_vm1, %v1171_v19 }
  0xe5   : > { %v1107_v21 = vpop.f32.mrb[0].mxu0 }
  0xe6   : > { %v1123_v22 = vpop.f32.mrb[0].mxu1  ;;  %v1329_v23 = vadd.f32 %v1107_v21, %v1326_v20  ;;  %v401_v25 = vpop.f32.mrb[1].mxu0 }
  0xe7   : > { %v1332_v24 = vadd.f32 %v1123_v22, %v1326_v20  ;;  %v465_v26 = vpop.f32.mrb[1].mxu1  ;;  %v1335_v27 = vadd.f32 %v1326_v20, %v401_v25  ;;  %v1108_v29 = vpop.f32.mrb[2].mxu0 }
  0xe8   : > { %v1338_v28 = vadd.f32 %v1326_v20, %v465_v26  ;;  %v1124_v30 = vpop.f32.mrb[2].mxu1  ;;  %v562_v31 = vmin.f32 %v1329_v23, 0.0  ;;  %v404_v33 = vpop.f32.mrb[3].mxu0  ;;  %v1345_v39 = vadd.f32 %v1108_v29, %v1326_v20  ;;  %vm530_vm2 = vcmp.gt.f32.partialorder %v1329_v23, 0.0 }
  0xe9   : > { %v578_v32 = vmin.f32 %v1332_v24, 0.0  ;;  %v468_v34 = vpop.f32.mrb[3].mxu1  ;;  %v560_v35 = vmin.f32 %v1335_v27, 0.0  ;;  %v1348_v40 = vadd.f32 %v1124_v30, %v1326_v20  ;;  %v1351_v43 = vadd.f32 %v1326_v20, %v404_v33 }
  0xea   : > { %v576_v36 = vmin.f32 %v1338_v28, 0.0  ;;  %v596_v37 = vmul.f32 1.442695, %v562_v31  ;;  %v1354_v44 = vadd.f32 %v1326_v20, %v468_v34  ;;  %v563_v45 = vmin.f32 %v1345_v39, 0.0 }
  0xeb   : > { %v628_v38 = vmul.f32 1.442695, %v578_v32  ;;  %v592_v41 = vmul.f32 1.442695, %v560_v35  ;;  %v579_v46 = vmin.f32 %v1348_v40, 0.0  ;;  %v561_v47 = vmin.f32 %v1351_v43, 0.0 }
  0xec   : > { %v624_v42 = vmul.f32 1.442695, %v576_v36  ;;  %1172 = vpow2.f32 %v596_v37  ;;  %v598_v50 = vmul.f32 1.442695, %v563_v45  ;;  %v577_v51 = vmin.f32 %v1354_v44, 0.0 }
  0xed   : > { %1174 = vpow2.f32 %v628_v38  ;;  %v1111_v48 = vpop.f32.mrb[4].mxu0  ;;  %v630_v54 = vmul.f32 1.442695, %v579_v46  ;;  %v594_v55 = vmul.f32 1.442695, %v561_v47  ;;  %vm546_vm4 = vcmp.gt.f32.partialorder %v1332_v24, 0.0 }
  0xee   : > { %v1127_v49 = vpop.f32.mrb[4].mxu1  ;;  %1176 = vpow2.f32 %v592_v41  ;;  %v417_v52 = vpop.f32.mrb[5].mxu0  ;;  %v1361_v56 = vadd.f32 %v1111_v48, %v1326_v20  ;;  %v626_v59 = vmul.f32 1.442695, %v577_v51  ;;  %vm528_vm5 = vcmp.gt.f32.partialorder %v1335_v27, 0.0 }
  0xef   : > { %v481_v53 = vpop.f32.mrb[5].mxu1  ;;  %1178 = vpow2.f32 %v624_v42  ;;  %v1112_v57 = vpop.f32.mrb[6].mxu0  ;;  %v1364_v60 = vadd.f32 %v1127_v49, %v1326_v20  ;;  %v1367_v61 = vadd.f32 %v1326_v20, %v417_v52  ;;  %vm544_vm6 = vcmp.gt.f32.partialorder %v1338_v28, 0.0 }
  0xf0   : > { %v1128_v58 = vpop.f32.mrb[6].mxu1  ;;  %1180 = vpow2.f32 %v598_v50  ;;  %v420_v62 = vpop.f32.mrb[7].mxu0  ;;  %v566_v0 = vmin.f32 %v1361_v56, 0.0  ;;  %v1372_v1 = vadd.f32 %v1326_v20, %v481_v53  ;;  %vm531_vm7 = vcmp.gt.f32.partialorder %v1345_v39, 0.0 }
  0xf1   : > { %v484_v63 = vpop.f32.mrb[7].mxu1  ;;  %1182 = vpow2.f32 %v630_v54  ;;  %v582_v2 = vmin.f32 %v1364_v60, 0.0  ;;  %v564_v4 = vmin.f32 %v1367_v61, 0.0  ;;  %v1382_v7 = vadd.f32 %v1112_v57, %v1326_v20 }
  0xf2   : > { %1184 = vpow2.f32 %v594_v55  ;;  %v604_v3 = vmul.f32 1.442695, %v566_v0  ;;  %v580_v6 = vmin.f32 %v1372_v1, 0.0  ;;  %v1385_v8 = vadd.f32 %v1128_v58, %v1326_v20 }
  0xf3   : > { %1186 = vpow2.f32 %v626_v59  ;;  %v636_v5 = vmul.f32 1.442695, %v582_v2  ;;  %vm547_vm8 = vcmp.gt.f32.partialorder %v1348_v40, 0.0  ;;  %v600_v9 = vmul.f32 1.442695, %v564_v4 }
  0xf4   : > { %1188 = vpow2.f32 %v604_v3  ;;  %v1389_v10 = vadd.f32 %v1326_v20, %v420_v62  ;;  %vm529_vm9 = vcmp.gt.f32.partialorder %v1351_v43, 0.0  ;;  %v632_v14 = vmul.f32 1.442695, %v580_v6 }
  0xf5   : > { %v1391_v11 = vpop.f32.mrb[8].mxu0  ;;  %1190 = vpow2.f32 %v636_v5  ;;  %v567_v15 = vmin.f32 %v1382_v7, 0.0  ;;  %vm545_vm10 = vcmp.gt.f32.partialorder %v1354_v44, 0.0  ;;  %v583_v21 = vmin.f32 %v1385_v8, 0.0 }
  0xf6   : > { %v1393_v12 = vpop.f32.mrb[8].mxu1  ;;  %v1173_v13 = vpop.eup %1172  ;;  %1192 = vpow2.f32 %v600_v9  ;;  %v1408_v31 = vadd.f32 %v1326_v20, %v484_v63  ;;  %vm534_vm11 = vcmp.gt.f32.partialorder %v1361_v56, 0.0  ;;  %v565_v38 = vmin.f32 %v1389_v10, 0.0 }
  0xf7   : > { %v1397_v16 = vpop.f32.mrb[9].mxu0  ;;  %v1399_v17 = vpop.f32.mrb[9].mxu1  ;;  %v984_v19 = vadd.f32 -1.0, %v1173_v13  ;;  %1194 = vpow2.f32 %v632_v14  ;;  %v606_v30 = vmul.f32 1.442695, %v567_v15  ;;  %vm550_vm12 = vcmp.gt.f32.partialorder %v1364_v60, 0.0 }
  0xf8   : > { %v1175_v18 = vpop.eup %1174  ;;  %v1403_v22 = vpop.f32.mrb[10].mxu0  ;;  %v638_v37 = vmul.f32 1.442695, %v583_v21  ;;  %v602_v53 = vmul.f32 1.442695, %v565_v38  ;;  %vm532_vm13 = vcmp.gt.f32.partialorder %v1367_v61, 0.0 }
  0xf9   : > { %v1405_v25 = vpop.f32.mrb[10].mxu1  ;;  %v1177_v26 = vpop.eup %1176  ;;  %v1000_v29 = vadd.f32 -1.0, %v1175_v18  ;;  %v690_v35 = vsel %vm530_vm2, %v1329_v23, %v984_v19  ;;  %1196 = vpow2.f32 %v606_v30  ;;  %v581_v5 = vmin.f32 %v1408_v31, 0.0 }
  0xfa   : > { %v1410_v32 = vpop.f32.mrb[11].mxu0  ;;  %v1412_v33 = vpop.f32.mrb[11].mxu1  ;;  %v982_v36 = vadd.f32 -1.0, %v1177_v26  ;;  %v1050_v42 = vpack.c.bf16 %v690_v35, %v690_v35  ;;  %1198 = vpow2.f32 %v638_v37  ;;  %v1478_v18 = vadd.f32 %v1393_v12, %v1326_v20 }
  0xfb   : > { %v1179_v34 = vpop.eup %1178  ;;  %v706_v45 = vsel %vm546_vm4, %v1332_v24, %v1000_v29  ;;  %1200 = vpow2.f32 %v602_v53  ;;  %vm548_vm14 = vcmp.gt.f32.partialorder %v1372_v1, 0.0  ;;  %v634_v30 = vmul.f32 1.442695, %v581_v5 }
  0xfc   : > { %v1181_v41 = vpop.eup %1180  ;;  %v998_v46 = vadd.f32 -1.0, %v1179_v34  ;;  %v1066_v23 = vpack.c.bf16 %v706_v45, %v706_v45  ;;  %v688_v48 = vsel %vm528_vm5, %v1335_v27, %v982_v36  ;;  %851 = vst.msk [vmem:[%s1419_s29 + $0x8] sm:$0xf] %vm848_vm3, %v1050_v42  ;;  %vm535_vm15 = vcmp.gt.f32.partialorder %v1382_v7, 0.0 }
  0xfd   : > { %v1183_v47 = vpop.eup %1182  ;;  %v985_v49 = vadd.f32 -1.0, %v1181_v41  ;;  %v1048_v51 = vpack.c.bf16 %v688_v48, %v688_v48  ;;  %v1444_v58 = vpop.f32.mrb[12].mxu0  ;;  %1202 = vpow2.f32 %v634_v30  ;;  %vm551_vm0 = vcmp.gt.f32.partialorder %v1385_v8, 0.0 }
  0xfe   : > { %v1185_v50 = vpop.eup %1184  ;;  %v704_v24 = vsel %vm544_vm6, %v1338_v28, %v998_v46  ;;  %v1001_v52 = vadd.f32 -1.0, %v1183_v47  ;;  %867 = vst.msk [vmem:[%s1419_s29 + $0x48] sm:$0xf] %vm848_vm3, %v1066_v23  ;;  %v1446_v59 = vpop.f32.mrb[12].mxu1  ;;  %v586_v46 = vmin.f32 %v1478_v18, 0.0  ;;  %vm533_vm1 = vcmp.gt.f32.partialorder %v1389_v10, 0.0 }
  0xff   : > { %v1187_v54 = vpop.eup %1186  ;;  %v1064_v55 = vpack.c.bf16 %v704_v24, %v704_v24  ;;  %v691_v27 = vsel %vm531_vm7, %v1345_v39, %v985_v49  ;;  %v983_v57 = vadd.f32 -1.0, %v1185_v50  ;;  %849 = vst.msk [vmem:[%s1419_s29] sm:$0xf] %vm848_vm3, %v1048_v51  ;;  %v1453_v0 = vpop.f32.mrb[13].mxu0  ;;  %v1510_v49 = vadd.f32 %v1326_v20, %v1397_v16 }
 0x100   : > { %v1051_v28 = vpack.c.bf16 %v691_v27, %v691_v27  ;;  %v707_v62 = vsel %vm547_vm8, %v1348_v40, %v1001_v52  ;;  %v999_v63 = vadd.f32 -1.0, %v1187_v54  ;;  %v1455_v39 = vpop.f32.mrb[13].mxu1  ;;  %v1189_v2 = vpop.eup %1188  ;;  %v1465_v40 = vadd.f32 %v1391_v11, %v1326_v20 }
 0x101   : > { %865 = vst.msk [vmem:[%s1419_s29 + $0x40] sm:$0xf] %vm848_vm3, %v1064_v55  ;;  %v1067_v3 = vpack.c.bf16 %v707_v62, %v707_v62  ;;  %v689_v4 = vsel %vm529_vm9, %v1351_v43, %v983_v57  ;;  %v1467_v6 = vpop.f32.mrb[14].mxu0  ;;  %v1469_v9 = vpop.f32.mrb[14].mxu1  ;;  %v988_v43 = vadd.f32 -1.0, %v1189_v2  ;;  %v1523_v16 = vadd.f32 %v1326_v20, %v1399_v17 }
 0x102   : > { %v1191_v13 = vpop.eup %1190  ;;  %852 = vst.msk [vmem:[%s1419_s29 + $0xc] sm:$0xf] %vm848_vm3, %v1051_v28  ;;  %v1049_v14 = vpack.c.bf16 %v689_v4, %v689_v4  ;;  %v705_v15 = vsel %vm545_vm10, %v1354_v44, %v999_v63  ;;  %v1480_v11 = vpop.f32.mrb[15].mxu0  ;;  %v570_v35 = vmin.f32 %v1465_v40, 0.0  ;;  %v644_v51 = vmul.f32 1.442695, %v586_v46 }
 0x103   : > { %v1482_v19 = vpop.f32.mrb[15].mxu1  ;;  %v1193_v21 = vpop.eup %1192  ;;  %868 = vst.msk [vmem:[%s1419_s29 + $0x4c] sm:$0xf] %vm848_vm3, %v1067_v3  ;;  %v1065_v26 = vpack.c.bf16 %v705_v15, %v705_v15  ;;  %v1004_v29 = vadd.f32 -1.0, %v1191_v13  ;;  %v694_v44 = vsel %vm534_vm11, %v1361_v56, %v988_v43  ;;  %v1530_v55 = vadd.f32 %v1403_v22, %v1326_v20 }
 0x104   : > { %v1195_v34 = vpop.eup %1194  ;;  %850 = vst.msk [vmem:[%s1419_s29 + $0x4] sm:$0xf] %vm848_vm3, %v1049_v14  ;;  %v986_v12 = vadd.f32 -1.0, %v1193_v21  ;;  %v1054_v36 = vpack.c.bf16 %v694_v44, %v694_v44  ;;  %v612_v45 = vmul.f32 1.442695, %v570_v35  ;;  %v584_v17 = vmin.f32 %v1523_v16, 0.0 }
 0x105   : > { %866 = vst.msk [vmem:[%s1419_s29 + $0x44] sm:$0xf] %vm848_vm3, %v1065_v26  ;;  %v710_v37 = vsel %vm550_vm12, %v1364_v60, %v1004_v29  ;;  %v1002_v38 = vadd.f32 -1.0, %v1195_v34  ;;  %v1197_v41 = vpop.eup %1196  ;;  %v571_v28 = vmin.f32 %v1530_v55, 0.0  ;;  %v1546_v62 = vadd.f32 %v1326_v20, %v1410_v32 }
 0x106   : > { %v1070_v42 = vpack.c.bf16 %v710_v37, %v710_v37  ;;  %v692_v56 = vsel %vm532_vm13, %v1367_v61, %v986_v12  ;;  %v1199_v47 = vpop.eup %1198  ;;  %855 = vst.msk [vmem:[%s1419_s29 + $0x18] sm:$0xf] %vm848_vm3, %v1054_v36  ;;  %v989_v48 = vadd.f32 -1.0, %v1197_v41  ;;  %1204 = vpow2.f32 %v612_v45 }
 0x107   : > { %v1052_v23 = vpack.c.bf16 %v692_v56, %v692_v56  ;;  %v708_v60 = vsel %vm548_vm14, %v1372_v1, %v1002_v38  ;;  %v1005_v50 = vadd.f32 -1.0, %v1199_v47  ;;  %v568_v1 = vmin.f32 %v1510_v49, 0.0  ;;  %v1201_v52 = vpop.eup %1200 }
 0x108   : > { %871 = vst.msk [vmem:[%s1419_s29 + $0x58] sm:$0xf] %vm848_vm3, %v1070_v42  ;;  %v1068_v61 = vpack.c.bf16 %v708_v60, %v708_v60  ;;  %v695_v24 = vsel %vm535_vm15, %v1382_v7, %v989_v48  ;;  %1206 = vpow2.f32 %v644_v51  ;;  %v987_v27 = vadd.f32 -1.0, %v1201_v52  ;;  %v1203_v5 = vpop.eup %1202 }
 0x109   : > { %853 = vst.msk [vmem:[%s1419_s29 + $0x10] sm:$0xf] %vm848_vm3, %v1052_v23  ;;  %v1055_v53 = vpack.c.bf16 %v695_v24, %v695_v24  ;;  %v711_v54 = vsel %vm551_vm0, %v1385_v8, %v1005_v50  ;;  %v608_v57 = vmul.f32 1.442695, %v568_v1  ;;  %v1539_v8 = vadd.f32 %v1405_v25, %v1326_v20 }
 0x10a   : > { %869 = vst.msk [vmem:[%s1419_s29 + $0x50] sm:$0xf] %vm848_vm3, %v1068_v61  ;;  %v1071_v7 = vpack.c.bf16 %v711_v54, %v711_v54  ;;  %v693_v22 = vsel %vm533_vm1, %v1389_v10, %v987_v27  ;;  %v1550_v63 = vadd.f32 %v1326_v20, %v1412_v33  ;;  %v640_v3 = vmul.f32 1.442695, %v584_v17 }
 0x10b   : > { %856 = vst.msk [vmem:[%s1419_s29 + $0x1c] sm:$0xf] %vm848_vm3, %v1055_v53  ;;  %1208 = vpow2.f32 %v608_v57  ;;  %v1053_v2 = vpack.c.bf16 %v693_v22, %v693_v22  ;;  %v614_v4 = vmul.f32 1.442695, %v571_v28  ;;  %vm549_vm2 = vcmp.gt.f32.partialorder %v1408_v31, 0.0 }
 0x10c   : > { %872 = vst.msk [vmem:[%s1419_s29 + $0x5c] sm:$0xf] %vm848_vm3, %v1071_v7  ;;  %v587_v25 = vmin.f32 %v1539_v8, 0.0  ;;  %v569_v13 = vmin.f32 %v1546_v62, 0.0  ;;  %v1003_v10 = vadd.f32 -1.0, %v1203_v5  ;;  %1210 = vpow2.f32 %v640_v3 }
 0x10d   : > { %854 = vst.msk [vmem:[%s1419_s29 + $0x14] sm:$0xf] %vm848_vm3, %v1053_v2  ;;  %v585_v32 = vmin.f32 %v1550_v63, 0.0  ;;  %v1560_v33 = vadd.f32 %v1444_v58, %v1326_v20  ;;  %1212 = vpow2.f32 %v614_v4  ;;  %v1564_v43 = vadd.f32 %v1446_v59, %v1326_v20 }
 0x10e   : > { %v646_v14 = vmul.f32 1.442695, %v587_v25  ;;  %v610_v15 = vmul.f32 1.442695, %v569_v13  ;;  %v709_v26 = vsel %vm549_vm2, %v1408_v31, %v1003_v10  ;;  %vm538_vm4 = vcmp.gt.f32.partialorder %v1465_v40, 0.0 }
 0x10f   : > { %v642_v29 = vmul.f32 1.442695, %v585_v32  ;;  %v574_v30 = vmin.f32 %v1560_v33, 0.0  ;;  %v1069_v34 = vpack.c.bf16 %v709_v26, %v709_v26  ;;  %vm554_vm5 = vcmp.gt.f32.partialorder %v1478_v18, 0.0 }
 0x110   : > { %v1205_v21 = vpop.eup %1204  ;;  %1214 = vpow2.f32 %v646_v14  ;;  %v590_v35 = vmin.f32 %v1564_v43, 0.0  ;;  %v1573_v59 = vadd.f32 %v1326_v20, %v1453_v0  ;;  %v1580_v37 = vadd.f32 %v1326_v20, %v1455_v39 }
 0x111   : > { %v992_v44 = vadd.f32 -1.0, %v1205_v21  ;;  %1216 = vpow2.f32 %v610_v15  ;;  %v620_v12 = vmul.f32 1.442695, %v574_v30  ;;  %870 = vst.msk [vmem:[%s1419_s29 + $0x54] sm:$0xf] %vm848_vm3, %v1069_v34  ;;  %vm536_vm6 = vcmp.gt.f32.partialorder %v1510_v49, 0.0 }
 0x112   : > { %v1207_v58 = vpop.eup %1206  ;;  %1218 = vpow2.f32 %v642_v29  ;;  %v652_v41 = vmul.f32 1.442695, %v590_v35  ;;  %vm552_vm7 = vcmp.gt.f32.partialorder %v1523_v16, 0.0  ;;  %v588_v56 = vmin.f32 %v1580_v37, 0.0 }
 0x113   : > { %v698_v31 = vsel %vm538_vm4, %v1465_v40, %v992_v44  ;;  %v1008_v36 = vadd.f32 -1.0, %v1207_v58  ;;  %1220 = vpow2.f32 %v620_v12  ;;  %v572_v40 = vmin.f32 %v1573_v59, 0.0 }
 0x114   : > { %v1058_v38 = vpack.c.bf16 %v698_v31, %v698_v31  ;;  %1222 = vpow2.f32 %v652_v41  ;;  %v1593_v46 = vadd.f32 %v1467_v6, %v1326_v20  ;;  %v648_v23 = vmul.f32 1.442695, %v588_v56 }
 0x115   : > { %v1209_v42 = vpop.eup %1208  ;;  %v714_v0 = vsel %vm554_vm5, %v1478_v18, %v1008_v36  ;;  %v616_v47 = vmul.f32 1.442695, %v572_v40  ;;  %v1597_v18 = vadd.f32 %v1469_v9, %v1326_v20  ;;  %v1601_v60 = vadd.f32 %v1326_v20, %v1480_v11 }
 0x116   : > { %859 = vst.msk [vmem:[%s1419_s29 + $0x28] sm:$0xf] %vm848_vm3, %v1058_v38  ;;  %v1074_v39 = vpack.c.bf16 %v714_v0, %v714_v0  ;;  %v990_v45 = vadd.f32 -1.0, %v1209_v42  ;;  %v1211_v48 = vpop.eup %1210  ;;  %vm539_vm8 = vcmp.gt.f32.partialorder %v1530_v55, 0.0  ;;  %vm555_vm9 = vcmp.gt.f32.partialorder %v1539_v8, 0.0 }
 0x117   : > { %v575_v6 = vmin.f32 %v1593_v46, 0.0  ;;  %v1213_v9 = vpop.eup %1212  ;;  %v1006_v51 = vadd.f32 -1.0, %v1211_v48  ;;  %1224 = vpow2.f32 %v616_v47  ;;  %v1613_v11 = vadd.f32 %v1326_v20, %v1482_v19 }
 0x118   : > { %875 = vst.msk [vmem:[%s1419_s29 + $0x68] sm:$0xf] %vm848_vm3, %v1074_v39  ;;  %v696_v61 = vsel %vm536_vm6, %v1510_v49, %v990_v45  ;;  %v993_v24 = vadd.f32 -1.0, %v1213_v9  ;;  %1226 = vpow2.f32 %v648_v23  ;;  %v591_v52 = vmin.f32 %v1597_v18, 0.0 }
 0x119   : > { %v1056_v50 = vpack.c.bf16 %v696_v61, %v696_v61  ;;  %v622_v1 = vmul.f32 1.442695, %v575_v6  ;;  %v712_v53 = vsel %vm552_vm7, %v1523_v16, %v1006_v51  ;;  %vm537_vm10 = vcmp.gt.f32.partialorder %v1546_v62, 0.0 }
 0x11a   : > { %v1215_v49 = vpop.eup %1214  ;;  %vm553_vm11 = vcmp.gt.f32.partialorder %v1550_v63, 0.0  ;;  %v573_v20 = vmin.f32 %v1601_v60, 0.0  ;;  %v1072_v54 = vpack.c.bf16 %v712_v53, %v712_v53  ;;  %v699_v7 = vsel %vm539_vm8, %v1530_v55, %v993_v24 }
 0x11b   : > { %857 = vst.msk [vmem:[%s1419_s29 + $0x20] sm:$0xf] %vm848_vm3, %v1056_v50  ;;  %v1217_v19 = vpop.eup %1216  ;;  %v1009_v27 = vadd.f32 -1.0, %v1215_v49  ;;  %1228 = vpow2.f32 %v622_v1  ;;  %v1059_v17 = vpack.c.bf16 %v699_v7, %v699_v7  ;;  %v654_v22 = vmul.f32 1.442695, %v591_v52 }
 0x11c   : > { %v1219_v57 = vpop.eup %1218  ;;  %v991_v28 = vadd.f32 -1.0, %v1217_v19  ;;  %v618_v16 = vmul.f32 1.442695, %v573_v20  ;;  %873 = vst.msk [vmem:[%s1419_s29 + $0x60] sm:$0xf] %vm848_vm3, %v1072_v54  ;;  %vm542_vm12 = vcmp.gt.f32.partialorder %v1560_v33, 0.0 }
 0x11d   : > { %v1221_v2 = vpop.eup %1220  ;;  %v715_v3 = vsel %vm555_vm9, %v1539_v8, %v1009_v27  ;;  %v1007_v4 = vadd.f32 -1.0, %v1219_v57  ;;  %v589_v55 = vmin.f32 %v1613_v11, 0.0  ;;  %860 = vst.msk [vmem:[%s1419_s29 + $0x2c] sm:$0xf] %vm848_vm3, %v1059_v17  ;;  %1230 = vpow2.f32 %v654_v22 }
 0x11e   : > { %v1075_v5 = vpack.c.bf16 %v715_v3, %v715_v3  ;;  %v697_v25 = vsel %vm537_vm10, %v1546_v62, %v991_v28  ;;  %v996_v13 = vadd.f32 -1.0, %v1221_v2  ;;  %v1223_v10 = vpop.eup %1222  ;;  %1232 = vpow2.f32 %v618_v16 }
 0x11f   : > { %v1057_v32 = vpack.c.bf16 %v697_v25, %v697_v25  ;;  %v713_v8 = vsel %vm553_vm11, %v1550_v63, %v1007_v4  ;;  %v650_v14 = vmul.f32 1.442695, %v589_v55  ;;  %v1012_v26 = vadd.f32 -1.0, %v1223_v10 }
 0x120   : > { %876 = vst.msk [vmem:[%s1419_s29 + $0x6c] sm:$0xf] %vm848_vm3, %v1075_v5  ;;  %v1073_v15 = vpack.c.bf16 %v713_v8, %v713_v8  ;;  %v702_v21 = vsel %vm542_vm12, %v1560_v33, %v996_v13  ;;  %vm558_vm13 = vcmp.gt.f32.partialorder %v1564_v43, 0.0  ;;  %vm540_vm14 = vcmp.gt.f32.partialorder %v1573_v59, 0.0 }
 0x121   : > { %858 = vst.msk [vmem:[%s1419_s29 + $0x24] sm:$0xf] %vm848_vm3, %v1057_v32  ;;  %v1062_v62 = vpack.c.bf16 %v702_v21, %v702_v21  ;;  %1234 = vpow2.f32 %v650_v14  ;;  %v1225_v29 = vpop.eup %1224  ;;  %v718_v63 = vsel %vm558_vm13, %v1564_v43, %v1012_v26  ;;  %vm556_vm15 = vcmp.gt.f32.partialorder %v1580_v37, 0.0 }
 0x122   : > { %874 = vst.msk [vmem:[%s1419_s29 + $0x64] sm:$0xf] %vm848_vm3, %v1073_v15  ;;  %v1227_v30 = vpop.eup %1226  ;;  %v1078_v34 = vpack.c.bf16 %v718_v63, %v718_v63  ;;  %v994_v44 = vadd.f32 -1.0, %v1225_v29  ;;  %vm543_vm0 = vcmp.gt.f32.partialorder %v1593_v46, 0.0  ;;  %vm559_vm1 = vcmp.gt.f32.partialorder %v1597_v18, 0.0 }
 0x123   : > { %863 = vst.msk [vmem:[%s1419_s29 + $0x38] sm:$0xf] %vm848_vm3, %v1062_v62  ;;  %v1010_v33 = vadd.f32 -1.0, %v1227_v30  ;;  %vm541_vm2 = vcmp.gt.f32.partialorder %v1601_v60, 0.0  ;;  %vm557_vm4 = vcmp.gt.f32.partialorder %v1613_v11, 0.0 }
 0x124   : > { %879 = vst.msk [vmem:[%s1419_s29 + $0x78] sm:$0xf] %vm848_vm3, %v1078_v34  ;;  %v700_v12 = vsel %vm540_vm14, %v1573_v59, %v994_v44 }
 0x125   : > { %v1229_v58 = vpop.eup %1228  ;;  %v1060_v35 = vpack.c.bf16 %v700_v12, %v700_v12  ;;  %v716_v43 = vsel %vm556_vm15, %v1580_v37, %v1010_v33 }
 0x126   : > { %v997_v31 = vadd.f32 -1.0, %v1229_v58  ;;  %v1076_v36 = vpack.c.bf16 %v716_v43, %v716_v43 }
 0x127   : > { %v1231_v38 = vpop.eup %1230  ;;  %861 = vst.msk [vmem:[%s1419_s29 + $0x30] sm:$0xf] %vm848_vm3, %v1060_v35 }
 0x128   : > { %v703_v41 = vsel %vm543_vm0, %v1593_v46, %v997_v31  ;;  %v1233_v42 = vpop.eup %1232  ;;  %877 = vst.msk [vmem:[%s1419_s29 + $0x70] sm:$0xf] %vm848_vm3, %v1076_v36  ;;  %v1013_v0 = vadd.f32 -1.0, %v1231_v38 }
 0x129   : > { %v1063_v59 = vpack.c.bf16 %v703_v41, %v703_v41  ;;  %v995_v37 = vadd.f32 -1.0, %v1233_v42 }
 0x12a   : > { %v719_v56 = vsel %vm559_vm1, %v1597_v18, %v1013_v0 }
 0x12b   : > { %v1235_v40 = vpop.eup %1234  ;;  %864 = vst.msk [vmem:[%s1419_s29 + $0x3c] sm:$0xf] %vm848_vm3, %v1063_v59  ;;  %v1079_v39 = vpack.c.bf16 %v719_v56, %v719_v56  ;;  %v701_v45 = vsel %vm541_vm2, %v1601_v60, %v995_v37 }
 0x12c   : > { %v1011_v46 = vadd.f32 -1.0, %v1235_v40  ;;  %v1061_v47 = vpack.c.bf16 %v701_v45, %v701_v45 }
 0x12d   : > { %880 = vst.msk [vmem:[%s1419_s29 + $0x7c] sm:$0xf] %vm848_vm3, %v1079_v39 }
 0x12e   : > { %v717_v23 = vsel %vm557_vm4, %v1613_v11, %v1011_v46  ;;  %862 = vst.msk [vmem:[%s1419_s29 + $0x34] sm:$0xf] %vm848_vm3, %v1061_v47 }
 0x12f   : > { %v1077_v48 = vpack.c.bf16 %v717_v23, %v717_v23 }
 0x131   : > { %878 = vst.msk [vmem:[%s1419_s29 + $0x74] sm:$0xf] %vm848_vm3, %v1077_v48 }
 0x132 PF: > { %s13_s12 = sadd.s32 1, %s1242_s12  }
 0x133   : > { %p10_p4 = scmp.ge.s32.totalorder %s13_s12, 4  }
 0x135   :  { %12 = sbr.rel (!%p10_p4) target bundleno = 1 (0x1), region = 62 }

// kernel: discriminator_forward.17
= control target key start
LH: loop header
LB: loop body
LE: loop exit
PB: predicated region body
PF: predicated region fallthrough
CT: control target
= control target key end

     0   :  { %s1294_s12 = smov 0   ;;  %s1718_s0 = inlined_call_operand.vmem [shape: bf16[512,72], index: 0, kind: input, shape index: {}]   ;;  %s1719_s1 = inlined_call_operand.vmem [shape: bf16[72,8], index: 1, kind: input, shape index: {}]   ;;  %s1720_s2 = inlined_call_operand.vmem [shape: f32[1,8], index: 2, kind: input, shape index: {}]   ;;  %s1721_s3 = inlined_call_operand.vmem [shape: bf16[512,8], index: 3, kind: output, shape index: {}]  }
   0x1 LB: > { %s953_s13 = sadd.s32 4294967295, %s1272_s12   ;;  %p957_p0 = scmp.ge.s32.totalorder %s1272_s12, 1  ;;  %s1272_s12 = sphi %s1294_s12, %s13_s12  }
   0x2   : > { %p138_p1 = scmp.lt.s32.totalorder %s1272_s12, 3 }
   0x4   : > { %p139_p2 = pnand %p957_p0, %p138_p1 }
   0x5   : > { %v1181_v0 = vld [vmem:[%s1719_s1] sm:$0xff] (!%p139_p2)   ;;  %v1182_v1 = vld [vmem:[%s1719_s1 + $0x8] sm:$0xff] (!%p139_p2)   ;;  %s958_s18 = sshll.u32 (!%p139_p2), %s953_s13, 5  ;;  %v1183_v2 = vld [vmem:[%s1719_s1 + $0x10] sm:$0xff] (!%p139_p2)   ;;  %vm330_vm0 = vcmask (!%p139_p2), 588800   ;;  %vm379_vm1 = vcmask (!%p139_p2), 1043456  }
   0x6   : > { %142 = sbr.rel (%p139_p2) target bundleno = 314 (0x13a), region = 32  ;;  %1119 = vmatprep.subr.bf16.mxu0 (!%p139_p2), %v1181_v0  ;;  %1161 = vmatprep.subr.bf16.mxu1 (!%p139_p2), %v1181_v0  ;;  %p163_p3 = scmp.lt.s32.totalorder (!%p139_p2), %s958_s18, 63  ;;  %v1184_v3 = vld [vmem:[%s1719_s1 + $0x18] sm:$0xff] (!%p139_p2)   ;;  %v1185_v6 = vld [vmem:[%s1719_s1 + $0x20] ss:$0 sps:$4 sm:$0xff] (!%p139_p2)   ;;  %vm864_vm3 = vcmask (!%p139_p2), 60416  }
   0x7   : > { %1120 = vmatpush3.bf16.msra.mxu0 (!%p139_p2), %v1181_v0  ;;  %1166 = vmatpush3.bf16.msra.mxu1 (!%p139_p2), %v1181_v0  ;;  %v381_v7 = vsel (!%p139_p2), %vm379_vm1, %v1185_v6, 0  ;;  %v1362_v22 = vld [vmem:[%s1720_s2] ss:$0 sm:$0xff] (!%p139_p2) }
   0x8   : > { %1121 = vmatprep.subr.bf16.mxu0 (!%p139_p2), %v1182_v1  ;;  %1162 = vmatprep.subr.bf16.mxu1 (!%p139_p2), %v1182_v1 }
   0xb   : > { %1122 = vmatpush3.bf16.msra.mxu0 (!%p139_p2), %v1182_v1  ;;  %1167 = vmatpush3.bf16.msra.mxu1 (!%p139_p2), %v1182_v1 }
   0xc   : > { %1123 = vmatprep.subr.bf16.mxu0 (!%p139_p2), %v1183_v2  ;;  %1163 = vmatprep.subr.bf16.mxu1 (!%p139_p2), %v1183_v2 }
   0xd   : > { %s1723_s18 = smov (!%p163_p3, %s958_s18), 63 }
   0xe   : > { %s959_s21 = sshll.u32 %s1723_s18, 2 }
   0xf   : > { %s1322_s26 = scalar_lea.vmem %s1718_s0, %s959_s21  ;;  %1124 = vmatpush3.bf16.msra.mxu0 %v1183_v2  ;;  %1168 = vmatpush3.bf16.msra.mxu1 %v1183_v2  ;;  %s1455_s6 = scalar_lea.vmem %s1721_s3, %s959_s21 }
  0x10   : > { %v1186_v4 = vld [vmem:[%s1322_s26] sm:$0xff]   ;;  %1125 = vmatprep.subr.bf16.mxu0 %v1184_v3  ;;  %1164 = vmatprep.subr.bf16.mxu1 %v1184_v3  ;;  %v1188_v8 = vld [vmem:[%s1322_s26 + $0x8] sm:$0xff]   ;;  %v1190_v10 = vld [vmem:[%s1322_s26 + $0x10] sm:$0xff]  }
  0x11   : > { %v1187_v5 = vld [vmem:[%s1322_s26 + $0x40] sm:$0xff]   ;;  %1129 = vmatprep.mubr.msk.bf16.mxu0 %vm330_vm0, %v1186_v4  ;;  %v1189_v9 = vld [vmem:[%s1322_s26 + $0x48] sm:$0xff]   ;;  %v1191_v11 = vld [vmem:[%s1322_s26 + $0x50] sm:$0xff]  }
  0x12   : > { %1145 = vmatprep.mubr.msk.bf16.mxu1 %vm330_vm0, %v1187_v5  ;;  %v1192_v12 = vld [vmem:[%s1322_s26 + $0x18] sm:$0xff]   ;;  %v1194_v14 = vld [vmem:[%s1322_s26 + $0x20] sm:$0xff]   ;;  %v1196_v16 = vld [vmem:[%s1322_s26 + $0x28] sm:$0xff]  }
  0x13   : > { %1126 = vmatpush3.bf16.msra.mxu0 %v1184_v3  ;;  %1169 = vmatpush3.bf16.msra.mxu1 %v1184_v3  ;;  %v1193_v13 = vld [vmem:[%s1322_s26 + $0x58] sm:$0xff]   ;;  %v1195_v15 = vld [vmem:[%s1322_s26 + $0x60] sm:$0xff]   ;;  %v1197_v17 = vld [vmem:[%s1322_s26 + $0x68] sm:$0xff]  }
  0x14   : > { %1171 = vmatprep.subr.msk.bf16.mxu0 %vm379_vm1, %v1185_v6  ;;  %1172 = vmatprep.subr.msk.bf16.mxu1 %vm379_vm1, %v1185_v6  ;;  %v1198_v18 = vld [vmem:[%s1322_s26 + $0x30] sm:$0xff]   ;;  %v1200_v20 = vld [vmem:[%s1322_s26 + $0x38] sm:$0xff]  }
  0x15   : > { %v1199_v19 = vld [vmem:[%s1322_s26 + $0x70] sm:$0xff]   ;;  %v1201_v21 = vld [vmem:[%s1322_s26 + $0x78] sm:$0xff]  }
  0x17   : > { %1128 = vmatpush3.bf16.msra.mxu0 %v381_v7  ;;  %1170 = vmatpush3.bf16.msra.mxu1 %v381_v7 }
  0x1a   : > { %1130 = vmatmul.mubr.msk.bf16.vlgmr.msra.gmra.mrb[0].mxu0 %vm330_vm0, %v1188_v8  ;;  %1146 = vmatmul.mubr.msk.bf16.vlgmr.msra.gmra.mrb[0].mxu1 %vm330_vm0, %v1189_v9 }
  0x1b   : > { %1133 = vmatprep.mubr.msk.bf16.mxu0 %vm330_vm0, %v1190_v10  ;;  %1149 = vmatprep.mubr.msk.bf16.mxu1 %vm330_vm0, %v1191_v11 }
  0x22   : > { %1134 = vmatmul.mubr.msk.bf16.gmra.mrb[4].mxu0 %vm330_vm0, %v1192_v12  ;;  %1150 = vmatmul.mubr.msk.bf16.gmra.mrb[4].mxu1 %vm330_vm0, %v1193_v13 }
  0x23   : > { %1137 = vmatprep.mubr.msk.bf16.mxu0 %vm330_vm0, %v1194_v14  ;;  %1153 = vmatprep.mubr.msk.bf16.mxu1 %vm330_vm0, %v1195_v15 }
  0x2a   : > { %1138 = vmatmul.mubr.msk.bf16.gmra.mrb[8].mxu0 %vm330_vm0, %v1196_v16  ;;  %1154 = vmatmul.mubr.msk.bf16.gmra.mrb[8].mxu1 %vm330_vm0, %v1197_v17 }
  0x2b   : > { %1141 = vmatprep.mubr.msk.bf16.mxu0 %vm330_vm0, %v1198_v18  ;;  %1157 = vmatprep.mubr.msk.bf16.mxu1 %vm330_vm0, %v1199_v19 }
  0x32   : > { %1142 = vmatmul.mubr.msk.bf16.gmra.mrb[12].mxu0 %vm330_vm0, %v1200_v20  ;;  %1158 = vmatmul.mubr.msk.bf16.gmra.mrb[12].mxu1 %vm330_vm0, %v1201_v21 }
  0xed   : > { %v1131_v23 = vpop.f32.mrb[0].mxu0  ;;  %v1147_v24 = vpop.f32.mrb[0].mxu1 }
  0xee   : > { %v1365_v25 = vadd.f32 %v1131_v23, %v1362_v22  ;;  %v1368_v26 = vadd.f32 %v1147_v24, %v1362_v22  ;;  %v417_v27 = vpop.f32.mrb[1].mxu0  ;;  %v481_v28 = vpop.f32.mrb[1].mxu1 }
  0xef   : > { %v1371_v29 = vadd.f32 %v1362_v22, %v417_v27  ;;  %v1374_v30 = vadd.f32 %v1362_v22, %v481_v28  ;;  %v1132_v31 = vpop.f32.mrb[2].mxu0  ;;  %v1148_v32 = vpop.f32.mrb[2].mxu1 }
  0xf0   : > { %v578_v33 = vmin.f32 %v1365_v25, 0.0  ;;  %v594_v34 = vmin.f32 %v1368_v26, 0.0  ;;  %v420_v35 = vpop.f32.mrb[3].mxu0  ;;  %v484_v36 = vpop.f32.mrb[3].mxu1  ;;  %v1381_v41 = vadd.f32 %v1132_v31, %v1362_v22  ;;  %v1384_v42 = vadd.f32 %v1148_v32, %v1362_v22 }
  0xf1   : > { %v576_v37 = vmin.f32 %v1371_v29, 0.0  ;;  %v592_v38 = vmin.f32 %v1374_v30, 0.0  ;;  %v1387_v45 = vadd.f32 %v1362_v22, %v420_v35  ;;  %v1390_v46 = vadd.f32 %v1362_v22, %v484_v36 }
  0xf2   : > { %v612_v39 = vmul.f32 1.442695, %v578_v33  ;;  %v644_v40 = vmul.f32 1.442695, %v594_v34  ;;  %v579_v47 = vmin.f32 %v1381_v41, 0.0  ;;  %v595_v48 = vmin.f32 %v1384_v42, 0.0 }
  0xf3   : > { %v608_v43 = vmul.f32 1.442695, %v576_v37  ;;  %v640_v44 = vmul.f32 1.442695, %v592_v38  ;;  %v577_v49 = vmin.f32 %v1387_v45, 0.0  ;;  %v593_v53 = vmin.f32 %v1390_v46, 0.0 }
  0xf4   : > { %1202 = vpow2.f32 %v612_v39  ;;  %v614_v52 = vmul.f32 1.442695, %v579_v47  ;;  %v646_v56 = vmul.f32 1.442695, %v595_v48  ;;  %vm546_vm2 = vcmp.gt.f32.partialorder %v1365_v25, 0.0 }
  0xf5   : > { %1204 = vpow2.f32 %v644_v40  ;;  %v1135_v50 = vpop.f32.mrb[4].mxu0  ;;  %v1151_v51 = vpop.f32.mrb[4].mxu1  ;;  %v610_v57 = vmul.f32 1.442695, %v577_v49  ;;  %v642_v61 = vmul.f32 1.442695, %v593_v53 }
  0xf6   : > { %1206 = vpow2.f32 %v608_v43  ;;  %v433_v54 = vpop.f32.mrb[5].mxu0  ;;  %v497_v55 = vpop.f32.mrb[5].mxu1  ;;  %v1397_v58 = vadd.f32 %v1135_v50, %v1362_v22  ;;  %v1400_v62 = vadd.f32 %v1151_v51, %v1362_v22  ;;  %vm562_vm4 = vcmp.gt.f32.partialorder %v1368_v26, 0.0 }
  0xf7   : > { %1208 = vpow2.f32 %v640_v44  ;;  %v1136_v59 = vpop.f32.mrb[6].mxu0  ;;  %v1152_v60 = vpop.f32.mrb[6].mxu1  ;;  %v1403_v63 = vadd.f32 %v1362_v22, %v433_v54  ;;  %v1408_v3 = vadd.f32 %v1362_v22, %v497_v55  ;;  %vm544_vm5 = vcmp.gt.f32.partialorder %v1371_v29, 0.0 }
  0xf8   : > { %1210 = vpow2.f32 %v614_v52  ;;  %v436_v0 = vpop.f32.mrb[7].mxu0  ;;  %v500_v1 = vpop.f32.mrb[7].mxu1  ;;  %v582_v2 = vmin.f32 %v1397_v58, 0.0  ;;  %v598_v4 = vmin.f32 %v1400_v62, 0.0  ;;  %vm560_vm6 = vcmp.gt.f32.partialorder %v1374_v30, 0.0 }
  0xf9   : > { %1212 = vpow2.f32 %v646_v56  ;;  %v580_v6 = vmin.f32 %v1403_v63, 0.0  ;;  %vm547_vm7 = vcmp.gt.f32.partialorder %v1381_v41, 0.0  ;;  %v596_v8 = vmin.f32 %v1408_v3, 0.0 }
  0xfa   : > { %1214 = vpow2.f32 %v610_v57  ;;  %v620_v5 = vmul.f32 1.442695, %v582_v2  ;;  %v652_v7 = vmul.f32 1.442695, %v598_v4  ;;  %v1418_v9 = vadd.f32 %v1136_v59, %v1362_v22 }
  0xfb   : > { %1216 = vpow2.f32 %v642_v61  ;;  %v1421_v10 = vadd.f32 %v1152_v60, %v1362_v22  ;;  %vm563_vm8 = vcmp.gt.f32.partialorder %v1384_v42, 0.0  ;;  %v616_v11 = vmul.f32 1.442695, %v580_v6 }
  0xfc   : > { %1218 = vpow2.f32 %v620_v5  ;;  %v1425_v12 = vadd.f32 %v1362_v22, %v436_v0  ;;  %vm545_vm9 = vcmp.gt.f32.partialorder %v1387_v45, 0.0  ;;  %v648_v16 = vmul.f32 1.442695, %v596_v8 }
  0xfd   : > { %v1427_v13 = vpop.f32.mrb[8].mxu0  ;;  %v1429_v14 = vpop.f32.mrb[8].mxu1  ;;  %1220 = vpow2.f32 %v652_v7  ;;  %v583_v17 = vmin.f32 %v1418_v9, 0.0  ;;  %vm561_vm10 = vcmp.gt.f32.partialorder %v1390_v46, 0.0  ;;  %v599_v23 = vmin.f32 %v1421_v10, 0.0 }
  0xfe   : > { %v1203_v15 = vpop.eup %1202  ;;  %v1433_v18 = vpop.f32.mrb[9].mxu0  ;;  %1222 = vpow2.f32 %v616_v11  ;;  %v1444_v33 = vadd.f32 %v1362_v22, %v500_v1  ;;  %vm550_vm11 = vcmp.gt.f32.partialorder %v1397_v58, 0.0  ;;  %v581_v40 = vmin.f32 %v1425_v12, 0.0 }
  0xff   : > { %v1435_v19 = vpop.f32.mrb[9].mxu1  ;;  %v1205_v20 = vpop.eup %1204  ;;  %v1002_v21 = vadd.f32 -1.0, %v1203_v15  ;;  %1224 = vpow2.f32 %v648_v16  ;;  %v622_v32 = vmul.f32 1.442695, %v583_v17  ;;  %v654_v39 = vmul.f32 1.442695, %v599_v23 }
 0x100   : > { %v1439_v24 = vpop.f32.mrb[10].mxu0  ;;  %v1441_v27 = vpop.f32.mrb[10].mxu1  ;;  %v1018_v31 = vadd.f32 -1.0, %v1205_v20  ;;  %vm566_vm12 = vcmp.gt.f32.partialorder %v1400_v62, 0.0  ;;  %v618_v55 = vmul.f32 1.442695, %v581_v40  ;;  %v1514_v20 = vadd.f32 %v1429_v14, %v1362_v22 }
 0x101   : > { %v1207_v28 = vpop.eup %1206  ;;  %v1446_v34 = vpop.f32.mrb[11].mxu0  ;;  %v706_v37 = vsel %vm546_vm2, %v1365_v25, %v1002_v21  ;;  %1226 = vpow2.f32 %v622_v32  ;;  %vm548_vm13 = vcmp.gt.f32.partialorder %v1403_v63, 0.0  ;;  %v597_v7 = vmin.f32 %v1444_v33, 0.0 }
 0x102   : > { %v1448_v35 = vpop.f32.mrb[11].mxu1  ;;  %v1209_v36 = vpop.eup %1208  ;;  %v1000_v38 = vadd.f32 -1.0, %v1207_v28  ;;  %v1068_v44 = vpack.c.bf16 %v706_v37, %v706_v37  ;;  %v722_v47 = vsel %vm562_vm4, %v1368_v26, %v1018_v31  ;;  %1228 = vpow2.f32 %v654_v39 }
 0x103   : > { %v1211_v43 = vpop.eup %1210  ;;  %v1016_v48 = vadd.f32 -1.0, %v1209_v36  ;;  %v1084_v25 = vpack.c.bf16 %v722_v47, %v722_v47  ;;  %1230 = vpow2.f32 %v618_v55  ;;  %vm564_vm14 = vcmp.gt.f32.partialorder %v1408_v3, 0.0 }
 0x104   : > { %v1213_v49 = vpop.eup %1212  ;;  %v704_v50 = vsel %vm544_vm5, %v1371_v29, %v1000_v38  ;;  %v1003_v51 = vadd.f32 -1.0, %v1211_v43  ;;  %867 = vst.msk [vmem:[%s1455_s6 + $0x8] sm:$0xf] %vm864_vm3, %v1068_v44  ;;  %v650_v32 = vmul.f32 1.442695, %v597_v7  ;;  %vm551_vm15 = vcmp.gt.f32.partialorder %v1418_v9, 0.0 }
 0x105   : > { %v1215_v52 = vpop.eup %1214  ;;  %v1066_v53 = vpack.c.bf16 %v704_v50, %v704_v50  ;;  %v720_v26 = vsel %vm560_vm6, %v1374_v30, %v1016_v48  ;;  %v1019_v54 = vadd.f32 -1.0, %v1213_v49  ;;  %883 = vst.msk [vmem:[%s1455_s6 + $0x48] sm:$0xf] %vm864_vm3, %v1084_v25  ;;  %v1480_v60 = vpop.f32.mrb[12].mxu0  ;;  %v602_v48 = vmin.f32 %v1514_v20, 0.0 }
 0x106   : > { %v1217_v56 = vpop.eup %1216  ;;  %v1082_v57 = vpack.c.bf16 %v720_v26, %v720_v26  ;;  %v707_v29 = vsel %vm547_vm7, %v1381_v41, %v1003_v51  ;;  %v1001_v59 = vadd.f32 -1.0, %v1215_v52  ;;  %v1482_v61 = vpop.f32.mrb[12].mxu1  ;;  %1232 = vpow2.f32 %v650_v32 }
 0x107   : > { %865 = vst.msk [vmem:[%s1455_s6] sm:$0xf] %vm864_vm3, %v1066_v53  ;;  %v1069_v30 = vpack.c.bf16 %v707_v29, %v707_v29  ;;  %v723_v0 = vsel %vm563_vm8, %v1384_v42, %v1019_v54  ;;  %v1017_v1 = vadd.f32 -1.0, %v1217_v56  ;;  %v1489_v2 = vpop.f32.mrb[13].mxu0  ;;  %v1491_v41 = vpop.f32.mrb[13].mxu1  ;;  %v1501_v42 = vadd.f32 %v1427_v13, %v1362_v22 }
 0x108   : > { %v1219_v4 = vpop.eup %1218  ;;  %881 = vst.msk [vmem:[%s1455_s6 + $0x40] sm:$0xf] %vm864_vm3, %v1082_v57  ;;  %v1085_v5 = vpack.c.bf16 %v723_v0, %v723_v0  ;;  %v705_v6 = vsel %vm545_vm9, %v1387_v45, %v1001_v59  ;;  %v1503_v8 = vpop.f32.mrb[14].mxu0  ;;  %v1546_v51 = vadd.f32 %v1362_v22, %v1433_v18  ;;  %v660_v53 = vmul.f32 1.442695, %v602_v48 }
 0x109   : > { %v1505_v11 = vpop.f32.mrb[14].mxu1  ;;  %v1221_v15 = vpop.eup %1220  ;;  %868 = vst.msk [vmem:[%s1455_s6 + $0xc] sm:$0xf] %vm864_vm3, %v1069_v30  ;;  %v1067_v16 = vpack.c.bf16 %v705_v6, %v705_v6  ;;  %v721_v17 = vsel %vm561_vm10, %v1390_v46, %v1017_v1  ;;  %v1006_v45 = vadd.f32 -1.0, %v1219_v4  ;;  %v586_v37 = vmin.f32 %v1501_v42, 0.0 }
 0x10a   : > { %v1516_v13 = vpop.f32.mrb[15].mxu0  ;;  %v1518_v21 = vpop.f32.mrb[15].mxu1  ;;  %884 = vst.msk [vmem:[%s1455_s6 + $0x4c] sm:$0xf] %vm864_vm3, %v1085_v5  ;;  %v1083_v28 = vpack.c.bf16 %v721_v17, %v721_v17  ;;  %v1022_v31 = vadd.f32 -1.0, %v1221_v15  ;;  %vm567_vm0 = vcmp.gt.f32.partialorder %v1421_v10, 0.0  ;;  %v1559_v18 = vadd.f32 %v1362_v22, %v1435_v19 }
 0x10b   : > { %v1223_v23 = vpop.eup %1222  ;;  %866 = vst.msk [vmem:[%s1455_s6 + $0x4] sm:$0xf] %vm864_vm3, %v1067_v16  ;;  %v710_v46 = vsel %vm550_vm11, %v1397_v58, %v1006_v45  ;;  %v628_v47 = vmul.f32 1.442695, %v586_v37  ;;  %v1566_v57 = vadd.f32 %v1439_v24, %v1362_v22  ;;  %vm549_vm1 = vcmp.gt.f32.partialorder %v1425_v12, 0.0 }
 0x10c   : > { %v1225_v36 = vpop.eup %1224  ;;  %v1004_v14 = vadd.f32 -1.0, %v1223_v23  ;;  %882 = vst.msk [vmem:[%s1455_s6 + $0x44] sm:$0xf] %vm864_vm3, %v1083_v28  ;;  %v1072_v38 = vpack.c.bf16 %v710_v46, %v710_v46  ;;  %v726_v39 = vsel %vm566_vm12, %v1400_v62, %v1022_v31  ;;  %v600_v19 = vmin.f32 %v1559_v18, 0.0 }
 0x10d   : > { %v1020_v40 = vadd.f32 -1.0, %v1225_v36  ;;  %v1227_v43 = vpop.eup %1226  ;;  %v1088_v44 = vpack.c.bf16 %v726_v39, %v726_v39  ;;  %1234 = vpow2.f32 %v628_v47  ;;  %v587_v30 = vmin.f32 %v1566_v57, 0.0 }
 0x10e   : > { %v708_v58 = vsel %vm548_vm13, %v1403_v63, %v1004_v14  ;;  %v1229_v49 = vpop.eup %1228  ;;  %871 = vst.msk [vmem:[%s1455_s6 + $0x18] sm:$0xf] %vm864_vm3, %v1072_v38  ;;  %v1007_v50 = vadd.f32 -1.0, %v1227_v43  ;;  %1236 = vpow2.f32 %v660_v53  ;;  %v1582_v0 = vadd.f32 %v1362_v22, %v1446_v34 }
 0x10f   : > { %v1070_v25 = vpack.c.bf16 %v708_v58, %v708_v58  ;;  %v724_v62 = vsel %vm564_vm14, %v1408_v3, %v1020_v40  ;;  %887 = vst.msk [vmem:[%s1455_s6 + $0x58] sm:$0xf] %vm864_vm3, %v1088_v44  ;;  %v1023_v52 = vadd.f32 -1.0, %v1229_v49  ;;  %v584_v3 = vmin.f32 %v1546_v51, 0.0  ;;  %v1231_v54 = vpop.eup %1230 }
 0x110   : > { %v1086_v63 = vpack.c.bf16 %v724_v62, %v724_v62  ;;  %v711_v26 = vsel %vm551_vm15, %v1418_v9, %v1007_v50  ;;  %v1005_v29 = vadd.f32 -1.0, %v1231_v54  ;;  %v1586_v1 = vadd.f32 %v1362_v22, %v1448_v35  ;;  %v1233_v7 = vpop.eup %1232 }
 0x111   : > { %869 = vst.msk [vmem:[%s1455_s6 + $0x10] sm:$0xf] %vm864_vm3, %v1070_v25  ;;  %v1073_v55 = vpack.c.bf16 %v711_v26, %v711_v26  ;;  %v727_v56 = vsel %vm567_vm0, %v1421_v10, %v1023_v52  ;;  %v624_v59 = vmul.f32 1.442695, %v584_v3  ;;  %v1575_v10 = vadd.f32 %v1441_v27, %v1362_v22 }
 0x112   : > { %885 = vst.msk [vmem:[%s1455_s6 + $0x50] sm:$0xf] %vm864_vm3, %v1086_v63  ;;  %v1089_v9 = vpack.c.bf16 %v727_v56, %v727_v56  ;;  %v709_v24 = vsel %vm549_vm1, %v1425_v12, %v1005_v29  ;;  %v656_v5 = vmul.f32 1.442695, %v600_v19  ;;  %v630_v6 = vmul.f32 1.442695, %v587_v30 }
 0x113   : > { %872 = vst.msk [vmem:[%s1455_s6 + $0x1c] sm:$0xf] %vm864_vm3, %v1073_v55  ;;  %1238 = vpow2.f32 %v624_v59  ;;  %v1071_v4 = vpack.c.bf16 %v709_v24, %v709_v24  ;;  %vm565_vm2 = vcmp.gt.f32.partialorder %v1444_v33, 0.0  ;;  %v603_v27 = vmin.f32 %v1575_v10, 0.0 }
 0x114   : > { %888 = vst.msk [vmem:[%s1455_s6 + $0x5c] sm:$0xf] %vm864_vm3, %v1089_v9  ;;  %v585_v15 = vmin.f32 %v1582_v0, 0.0  ;;  %v1021_v12 = vadd.f32 -1.0, %v1233_v7  ;;  %1240 = vpow2.f32 %v656_v5  ;;  %v601_v34 = vmin.f32 %v1586_v1, 0.0 }
 0x115   : > { %870 = vst.msk [vmem:[%s1455_s6 + $0x14] sm:$0xf] %vm864_vm3, %v1071_v4  ;;  %v1596_v35 = vadd.f32 %v1480_v60, %v1362_v22  ;;  %1242 = vpow2.f32 %v630_v6  ;;  %v662_v16 = vmul.f32 1.442695, %v603_v27  ;;  %v1600_v45 = vadd.f32 %v1482_v61, %v1362_v22 }
 0x116   : > { %v626_v17 = vmul.f32 1.442695, %v585_v15  ;;  %v725_v28 = vsel %vm565_vm2, %v1444_v33, %v1021_v12  ;;  %vm554_vm4 = vcmp.gt.f32.partialorder %v1501_v42, 0.0  ;;  %v658_v31 = vmul.f32 1.442695, %v601_v34 }
 0x117   : > { %v1235_v23 = vpop.eup %1234  ;;  %v590_v32 = vmin.f32 %v1596_v35, 0.0  ;;  %v1087_v36 = vpack.c.bf16 %v725_v28, %v725_v28  ;;  %vm570_vm5 = vcmp.gt.f32.partialorder %v1514_v20, 0.0  ;;  %1244 = vpow2.f32 %v662_v16 }
 0x118   : > { %v1010_v46 = vadd.f32 -1.0, %v1235_v23  ;;  %v1237_v60 = vpop.eup %1236  ;;  %1246 = vpow2.f32 %v626_v17  ;;  %v606_v37 = vmin.f32 %v1600_v45, 0.0  ;;  %v1609_v61 = vadd.f32 %v1362_v22, %v1489_v2 }
 0x119   : > { %v636_v14 = vmul.f32 1.442695, %v590_v32  ;;  %886 = vst.msk [vmem:[%s1455_s6 + $0x54] sm:$0xf] %vm864_vm3, %v1087_v36  ;;  %v1026_v38 = vadd.f32 -1.0, %v1237_v60  ;;  %1248 = vpow2.f32 %v658_v31  ;;  %v1616_v39 = vadd.f32 %v1362_v22, %v1491_v41 }
 0x11a   : > { %v714_v33 = vsel %vm554_vm4, %v1501_v42, %v1010_v46  ;;  %vm552_vm6 = vcmp.gt.f32.partialorder %v1546_v51, 0.0  ;;  %v668_v43 = vmul.f32 1.442695, %v606_v37  ;;  %vm568_vm7 = vcmp.gt.f32.partialorder %v1559_v18, 0.0 }
 0x11b   : > { %v1076_v40 = vpack.c.bf16 %v714_v33, %v714_v33  ;;  %1250 = vpow2.f32 %v636_v14  ;;  %v730_v2 = vsel %vm570_vm5, %v1514_v20, %v1026_v38  ;;  %v588_v42 = vmin.f32 %v1609_v61, 0.0 }
 0x11c   : > { %v604_v58 = vmin.f32 %v1616_v39, 0.0  ;;  %v1092_v41 = vpack.c.bf16 %v730_v2, %v730_v2  ;;  %1252 = vpow2.f32 %v668_v43  ;;  %v1629_v48 = vadd.f32 %v1503_v8, %v1362_v22 }
 0x11d   : > { %v1239_v44 = vpop.eup %1238  ;;  %875 = vst.msk [vmem:[%s1455_s6 + $0x28] sm:$0xf] %vm864_vm3, %v1076_v40  ;;  %v632_v49 = vmul.f32 1.442695, %v588_v42  ;;  %v1633_v20 = vadd.f32 %v1505_v11, %v1362_v22  ;;  %v1637_v62 = vadd.f32 %v1362_v22, %v1516_v13  ;;  %vm555_vm8 = vcmp.gt.f32.partialorder %v1566_v57, 0.0 }
 0x11e   : > { %v1008_v47 = vadd.f32 -1.0, %v1239_v44  ;;  %v664_v25 = vmul.f32 1.442695, %v604_v58  ;;  %v1241_v50 = vpop.eup %1240  ;;  %891 = vst.msk [vmem:[%s1455_s6 + $0x68] sm:$0xf] %vm864_vm3, %v1092_v41  ;;  %vm571_vm9 = vcmp.gt.f32.partialorder %v1575_v10, 0.0  ;;  %v1649_v13 = vadd.f32 %v1362_v22, %v1518_v21 }
 0x11f   : > { %v591_v8 = vmin.f32 %v1629_v48, 0.0  ;;  %v1243_v11 = vpop.eup %1242  ;;  %v1024_v53 = vadd.f32 -1.0, %v1241_v50  ;;  %1254 = vpow2.f32 %v632_v49  ;;  %v607_v54 = vmin.f32 %v1633_v20, 0.0 }
 0x120   : > { %v712_v63 = vsel %vm552_vm6, %v1546_v51, %v1008_v47  ;;  %v1011_v26 = vadd.f32 -1.0, %v1243_v11  ;;  %1256 = vpow2.f32 %v664_v25  ;;  %vm553_vm10 = vcmp.gt.f32.partialorder %v1582_v0, 0.0 }
 0x121   : > { %v1074_v52 = vpack.c.bf16 %v712_v63, %v712_v63  ;;  %v638_v3 = vmul.f32 1.442695, %v591_v8  ;;  %v1245_v51 = vpop.eup %1244  ;;  %v728_v55 = vsel %vm568_vm7, %v1559_v18, %v1024_v53  ;;  %vm569_vm11 = vcmp.gt.f32.partialorder %v1586_v1, 0.0 }
 0x122   : > { %v589_v22 = vmin.f32 %v1637_v62, 0.0  ;;  %v1247_v21 = vpop.eup %1246  ;;  %v1090_v56 = vpack.c.bf16 %v728_v55, %v728_v55  ;;  %v715_v9 = vsel %vm555_vm8, %v1566_v57, %v1011_v26  ;;  %v1027_v29 = vadd.f32 -1.0, %v1245_v51 }
 0x123   : > { %873 = vst.msk [vmem:[%s1455_s6 + $0x20] sm:$0xf] %vm864_vm3, %v1074_v52  ;;  %1258 = vpow2.f32 %v638_v3  ;;  %v1249_v59 = vpop.eup %1248  ;;  %v1077_v19 = vpack.c.bf16 %v715_v9, %v715_v9  ;;  %v1009_v30 = vadd.f32 -1.0, %v1247_v21  ;;  %v670_v24 = vmul.f32 1.442695, %v607_v54 }
 0x124   : > { %v634_v18 = vmul.f32 1.442695, %v589_v22  ;;  %889 = vst.msk [vmem:[%s1455_s6 + $0x60] sm:$0xf] %vm864_vm3, %v1090_v56  ;;  %v731_v5 = vsel %vm571_vm9, %v1575_v10, %v1027_v29  ;;  %v1025_v6 = vadd.f32 -1.0, %v1249_v59  ;;  %vm558_vm12 = vcmp.gt.f32.partialorder %v1596_v35, 0.0 }
 0x125   : > { %v1251_v4 = vpop.eup %1250  ;;  %v605_v57 = vmin.f32 %v1649_v13, 0.0  ;;  %876 = vst.msk [vmem:[%s1455_s6 + $0x2c] sm:$0xf] %vm864_vm3, %v1077_v19  ;;  %v1093_v7 = vpack.c.bf16 %v731_v5, %v731_v5  ;;  %v713_v27 = vsel %vm553_vm10, %v1582_v0, %v1009_v30  ;;  %1260 = vpow2.f32 %v670_v24 }
 0x126   : > { %v1014_v15 = vadd.f32 -1.0, %v1251_v4  ;;  %v1253_v12 = vpop.eup %1252  ;;  %v1075_v34 = vpack.c.bf16 %v713_v27, %v713_v27  ;;  %v729_v10 = vsel %vm569_vm11, %v1586_v1, %v1025_v6  ;;  %1262 = vpow2.f32 %v634_v18 }
 0x127   : > { %v666_v16 = vmul.f32 1.442695, %v605_v57  ;;  %892 = vst.msk [vmem:[%s1455_s6 + $0x6c] sm:$0xf] %vm864_vm3, %v1093_v7  ;;  %v1091_v17 = vpack.c.bf16 %v729_v10, %v729_v10  ;;  %v1030_v28 = vadd.f32 -1.0, %v1253_v12  ;;  %vm574_vm13 = vcmp.gt.f32.partialorder %v1600_v45, 0.0 }
 0x128   : > { %v718_v23 = vsel %vm558_vm12, %v1596_v35, %v1014_v15  ;;  %874 = vst.msk [vmem:[%s1455_s6 + $0x24] sm:$0xf] %vm864_vm3, %v1075_v34  ;;  %vm556_vm14 = vcmp.gt.f32.partialorder %v1609_v61, 0.0  ;;  %vm572_vm15 = vcmp.gt.f32.partialorder %v1616_v39, 0.0  ;;  %vm559_vm0 = vcmp.gt.f32.partialorder %v1629_v48, 0.0 }
 0x129   : > { %v1080_v0 = vpack.c.bf16 %v718_v23, %v718_v23  ;;  %1264 = vpow2.f32 %v666_v16  ;;  %v1255_v31 = vpop.eup %1254  ;;  %890 = vst.msk [vmem:[%s1455_s6 + $0x64] sm:$0xf] %vm864_vm3, %v1091_v17  ;;  %v734_v1 = vsel %vm574_vm13, %v1600_v45, %v1030_v28  ;;  %vm575_vm1 = vcmp.gt.f32.partialorder %v1633_v20, 0.0 }
 0x12a   : > { %v1257_v32 = vpop.eup %1256  ;;  %v1096_v36 = vpack.c.bf16 %v734_v1, %v734_v1  ;;  %v1012_v46 = vadd.f32 -1.0, %v1255_v31  ;;  %vm557_vm2 = vcmp.gt.f32.partialorder %v1637_v62, 0.0  ;;  %vm573_vm4 = vcmp.gt.f32.partialorder %v1649_v13, 0.0 }
 0x12b   : > { %879 = vst.msk [vmem:[%s1455_s6 + $0x38] sm:$0xf] %vm864_vm3, %v1080_v0  ;;  %v1028_v35 = vadd.f32 -1.0, %v1257_v32 }
 0x12c   : > { %895 = vst.msk [vmem:[%s1455_s6 + $0x78] sm:$0xf] %vm864_vm3, %v1096_v36  ;;  %v716_v14 = vsel %vm556_vm14, %v1609_v61, %v1012_v46 }
 0x12d   : > { %v1259_v60 = vpop.eup %1258  ;;  %v1078_v37 = vpack.c.bf16 %v716_v14, %v716_v14  ;;  %v732_v45 = vsel %vm572_vm15, %v1616_v39, %v1028_v35 }
 0x12e   : > { %v1015_v33 = vadd.f32 -1.0, %v1259_v60  ;;  %v1094_v38 = vpack.c.bf16 %v732_v45, %v732_v45 }
 0x12f   : > { %v1261_v40 = vpop.eup %1260  ;;  %877 = vst.msk [vmem:[%s1455_s6 + $0x30] sm:$0xf] %vm864_vm3, %v1078_v37 }
 0x130   : > { %v719_v43 = vsel %vm559_vm0, %v1629_v48, %v1015_v33  ;;  %v1263_v44 = vpop.eup %1262  ;;  %893 = vst.msk [vmem:[%s1455_s6 + $0x70] sm:$0xf] %vm864_vm3, %v1094_v38  ;;  %v1031_v2 = vadd.f32 -1.0, %v1261_v40 }
 0x131   : > { %v1081_v61 = vpack.c.bf16 %v719_v43, %v719_v43  ;;  %v1013_v39 = vadd.f32 -1.0, %v1263_v44 }
 0x132   : > { %v735_v58 = vsel %vm575_vm1, %v1633_v20, %v1031_v2 }
 0x133   : > { %v1265_v42 = vpop.eup %1264  ;;  %880 = vst.msk [vmem:[%s1455_s6 + $0x3c] sm:$0xf] %vm864_vm3, %v1081_v61  ;;  %v1097_v41 = vpack.c.bf16 %v735_v58, %v735_v58  ;;  %v717_v47 = vsel %vm557_vm2, %v1637_v62, %v1013_v39 }
 0x134   : > { %v1029_v48 = vadd.f32 -1.0, %v1265_v42  ;;  %v1079_v49 = vpack.c.bf16 %v717_v47, %v717_v47 }
 0x135   : > { %896 = vst.msk [vmem:[%s1455_s6 + $0x7c] sm:$0xf] %vm864_vm3, %v1097_v41 }
 0x136   : > { %v733_v25 = vsel %vm573_vm4, %v1649_v13, %v1029_v48  ;;  %878 = vst.msk [vmem:[%s1455_s6 + $0x34] sm:$0xf] %vm864_vm3, %v1079_v49 }
 0x137   : > { %v1095_v50 = vpack.c.bf16 %v733_v25, %v733_v25 }
 0x139   : > { %894 = vst.msk [vmem:[%s1455_s6 + $0x74] sm:$0xf] %vm864_vm3, %v1095_v50 }
 0x13a PF: > { %s13_s12 = sadd.s32 1, %s1272_s12  }
 0x13b   : > { %p10_p4 = scmp.ge.s32.totalorder %s13_s12, 4  }
 0x13d   :  { %12 = sbr.rel (!%p10_p4) target bundleno = 1 (0x1), region = 62 }

// kernel: discriminator_forward.18
= control target key start
LH: loop header
LB: loop body
LE: loop exit
PB: predicated region body
PF: predicated region fallthrough
CT: control target
= control target key end

     0   :  { %s1336_s15 = smov 0   ;;  %s1736_s0 = inlined_call_operand.vmem [shape: bf16[512,72], index: 0, kind: input, shape index: {}]   ;;  %s1737_s1 = inlined_call_operand.vmem [shape: bf16[72,16], index: 1, kind: input, shape index: {}]   ;;  %s1738_s2 = inlined_call_operand.vmem [shape: f32[1,16], index: 2, kind: input, shape index: {}]   ;;  %s1739_s3 = inlined_call_operand.vmem [shape: bf16[64,256], index: 3, kind: input, shape index: {}]   ;;  %s1740_s4 = inlined_call_operand.vmem [shape: bf16[128,16], index: 4, kind: output, shape index: {}]  }
   0x1 LB: > { %s989_s16 = sadd.s32 4294967295, %s1309_s15   ;;  %p993_p0 = scmp.ge.s32.totalorder %s1309_s15, 1  ;;  %s1309_s15 = sphi %s1336_s15, %s14_s15  }
   0x2   : > { %p163_p1 = scmp.lt.s32.totalorder %s1309_s15, 3 }
   0x4   : > { %p164_p2 = pnand %p993_p0, %p163_p1 }
   0x5   : > { %v1206_v0 = vld [vmem:[%s1737_s1] sm:$0xff] (!%p164_p2)   ;;  %v1207_v1 = vld [vmem:[%s1737_s1 + $0x8] sm:$0xff] (!%p164_p2)   ;;  %s994_s21 = sshll.u32 (!%p164_p2), %s989_s16, 5  ;;  %v1208_v2 = vld [vmem:[%s1737_s1 + $0x10] sm:$0xff] (!%p164_p2)   ;;  %vm357_vm0 = vcmask (!%p164_p2), 588800   ;;  %vm406_vm1 = vcmask (!%p164_p2), 1043456  }
   0x6   : > { %167 = sbr.rel (%p164_p2) target bundleno = 571 (0x23b), region = 36  ;;  %1155 = vmatprep.subr.bf16.mxu0 (!%p164_p2), %v1206_v0  ;;  %p190_p3 = scmp.lt.s32.totalorder (!%p164_p2), %s994_s21, 63  ;;  %v1209_v3 = vld [vmem:[%s1737_s1 + $0x18] sm:$0xff] (!%p164_p2)   ;;  %v1210_v5 = vld [vmem:[%s1737_s1 + $0x20] ss:$0 sps:$4 sm:$0xff] (!%p164_p2)  }
   0x7   : > { %1156 = vmatpush3.bf16.msra.mxu0 (!%p164_p2), %v1206_v0  ;;  %v408_v6 = vsel (!%p164_p2), %vm406_vm1, %v1210_v5, 0  ;;  %v1229_v22 = vld [vmem:[%s1739_s3 + $0x4] ss:$8 sps:$4 sm:$0xff] (!%p164_p2)   ;;  %v1404_v23 = vld [vmem:[%s1738_s2] ss:$0 sm:$0xff] (!%p164_p2)  ;;  %s996_s26 = sshll.u32 (!%p164_p2), %s989_s16, 3 }
   0x8   : > { %1157 = vmatprep.subr.bf16.mxu0 (!%p164_p2), %v1207_v1  ;;  %859 = vmatprep.mubr.bf16.mxu1 (!%p164_p2), %v1229_v22  ;;  %p196_p4 = scmp.lt.s32.totalorder (!%p164_p2), %s996_s26, 15 }
   0xb   : > { %1158 = vmatpush3.bf16.msra.mxu0 (!%p164_p2), %v1207_v1 }
   0xc   : > { %1159 = vmatprep.subr.bf16.mxu0 (!%p164_p2), %v1208_v2 }
   0xd   : > { %s1742_s21 = smov (!%p190_p3, %s994_s21), 63  ;;  %s1744_s26 = smov (!%p196_p4, %s996_s26), 15 }
   0xe   : > { %s995_s24 = sshll.u32 %s1742_s21, 2  ;;  %s997_s27 = sshll.u32 %s1744_s26, 2 }
   0xf   : > { %s1361_s29 = scalar_lea.vmem %s1736_s0, %s995_s24  ;;  %1160 = vmatpush3.bf16.msra.mxu0 %v1208_v2  ;;  %s1715_s30 = scalar_lea.vmem %s1740_s4, %s997_s27 }
  0x10   : > { %v1211_v4 = vld [vmem:[%s1361_s29] sm:$0xff]   ;;  %1161 = vmatprep.subr.bf16.mxu0 %v1209_v3  ;;  %v1212_v7 = vld [vmem:[%s1361_s29 + $0x8] sm:$0xff]   ;;  %v1213_v8 = vld [vmem:[%s1361_s29 + $0x10] sm:$0xff]  }
  0x11   : > { %1165 = vmatprep.mubr.msk.bf16.mxu0 %vm357_vm0, %v1211_v4  ;;  %v1214_v9 = vld [vmem:[%s1361_s29 + $0x18] sm:$0xff]   ;;  %v1215_v10 = vld [vmem:[%s1361_s29 + $0x20] sm:$0xff]   ;;  %v1216_v11 = vld [vmem:[%s1361_s29 + $0x28] sm:$0xff]  }
  0x12   : > { %v1217_v12 = vld [vmem:[%s1361_s29 + $0x30] sm:$0xff]   ;;  %v1218_v13 = vld [vmem:[%s1361_s29 + $0x38] sm:$0xff]   ;;  %v1219_v14 = vld [vmem:[%s1361_s29 + $0x40] sm:$0xff]  }
  0x13   : > { %1162 = vmatpush3.bf16.msra.mxu0 %v1209_v3  ;;  %v1220_v15 = vld [vmem:[%s1361_s29 + $0x48] sm:$0xff]   ;;  %v1221_v16 = vld [vmem:[%s1361_s29 + $0x50] sm:$0xff]   ;;  %v1222_v17 = vld [vmem:[%s1361_s29 + $0x58] sm:$0xff]  }
  0x14   : > { %1197 = vmatprep.subr.msk.bf16.mxu0 %vm406_vm1, %v1210_v5  ;;  %v1223_v18 = vld [vmem:[%s1361_s29 + $0x60] sm:$0xff]   ;;  %v1224_v19 = vld [vmem:[%s1361_s29 + $0x68] sm:$0xff]   ;;  %v1225_v20 = vld [vmem:[%s1361_s29 + $0x70] sm:$0xff]  }
  0x15   : > { %v1226_v21 = vld [vmem:[%s1361_s29 + $0x78] sm:$0xff]  }
  0x17   : > { %1164 = vmatpush3.bf16.msra.mxu0 %v408_v6 }
  0x1a   : > { %1166 = vmatmul.mubr.msk.bf16.vlgmr.msra.gmra.mrb[0].mxu0 %vm357_vm0, %v1212_v7 }
  0x1b   : > { %1169 = vmatprep.mubr.msk.bf16.mxu0 %vm357_vm0, %v1213_v8 }
  0x22   : > { %1170 = vmatmul.mubr.msk.bf16.gmra.mrb[4].mxu0 %vm357_vm0, %v1214_v9 }
  0x23   : > { %1173 = vmatprep.mubr.msk.bf16.mxu0 %vm357_vm0, %v1215_v10 }
  0x2a   : > { %1174 = vmatmul.mubr.msk.bf16.gmra.mrb[8].mxu0 %vm357_vm0, %v1216_v11 }
  0x2b   : > { %1177 = vmatprep.mubr.msk.bf16.mxu0 %vm357_vm0, %v1217_v12 }
  0x32   : > { %1178 = vmatmul.mubr.msk.bf16.gmra.mrb[12].mxu0 %vm357_vm0, %v1218_v13 }
  0x33   : > { %1181 = vmatprep.mubr.msk.bf16.mxu0 %vm357_vm0, %v1219_v14 }
  0x3a   : > { %1182 = vmatmul.mubr.msk.bf16.gmra.mrb[16].mxu0 %vm357_vm0, %v1220_v15 }
  0x3b   : > { %1185 = vmatprep.mubr.msk.bf16.mxu0 %vm357_vm0, %v1221_v16 }
  0x42   : > { %1186 = vmatmul.mubr.msk.bf16.gmra.mrb[20].mxu0 %vm357_vm0, %v1222_v17 }
  0x43   : > { %1189 = vmatprep.mubr.msk.bf16.mxu0 %vm357_vm0, %v1223_v18 }
  0x4a   : > { %1190 = vmatmul.mubr.msk.bf16.gmra.mrb[24].mxu0 %vm357_vm0, %v1224_v19 }
  0x4b   : > { %1193 = vmatprep.mubr.msk.bf16.mxu0 %vm357_vm0, %v1225_v20 }
  0x52   : > { %1194 = vmatmul.mubr.msk.bf16.gmra.mrb[28].mxu0 %vm357_vm0, %v1226_v21 }
  0xed   : > { %v1167_v24 = vpop.f32.mrb[0].mxu0 }
  0xee   : > { %v1407_v25 = vadd.f32 %v1167_v24, %v1404_v23  ;;  %v444_v26 = vpop.f32.mrb[1].mxu0 }
  0xef   : > { %v1410_v27 = vadd.f32 %v1404_v23, %v444_v26  ;;  %v1168_v28 = vpop.f32.mrb[2].mxu0 }
  0xf0   : > { %v605_v29 = vmin.f32 %v1407_v25, 0.0  ;;  %v1414_v30 = vadd.f32 %v1168_v28, %v1404_v23  ;;  %v447_v31 = vpop.f32.mrb[3].mxu0  ;;  %vm573_vm2 = vcmp.gt.f32.partialorder %v1407_v25, 0.0 }
  0xf1   : > { %v603_v32 = vmin.f32 %v1410_v27, 0.0  ;;  %v448_v33 = vadd.f32 %v1404_v23, %v447_v31  ;;  %vm571_vm3 = vcmp.gt.f32.partialorder %v1410_v27, 0.0 }
  0xf2   : > { %v639_v34 = vmul.f32 1.442695, %v605_v29  ;;  %v606_v35 = vmin.f32 %v1414_v30, 0.0  ;;  %vm574_vm4 = vcmp.gt.f32.partialorder %v1414_v30, 0.0 }
  0xf3   : > { %v635_v36 = vmul.f32 1.442695, %v603_v32  ;;  %v604_v37 = vmin.f32 %v448_v33, 0.0  ;;  %vm572_vm5 = vcmp.gt.f32.partialorder %v448_v33, 0.0 }
  0xf4   : > { %1239 = vpow2.f32 %v639_v34  ;;  %v641_v38 = vmul.f32 1.442695, %v606_v35 }
  0xf5   : > { %1241 = vpow2.f32 %v635_v36  ;;  %v637_v39 = vmul.f32 1.442695, %v604_v37  ;;  %v1171_v40 = vpop.f32.mrb[4].mxu0 }
  0xf6   : > { %1243 = vpow2.f32 %v641_v38  ;;  %v1420_v41 = vadd.f32 %v1171_v40, %v1404_v23  ;;  %v460_v42 = vpop.f32.mrb[5].mxu0 }
  0xf7   : > { %1245 = vpow2.f32 %v637_v39  ;;  %v1423_v43 = vadd.f32 %v1404_v23, %v460_v42  ;;  %v1172_v44 = vpop.f32.mrb[6].mxu0 }
  0xf8   : > { %v609_v45 = vmin.f32 %v1420_v41, 0.0  ;;  %v1427_v46 = vadd.f32 %v1172_v44, %v1404_v23  ;;  %v463_v47 = vpop.f32.mrb[7].mxu0  ;;  %vm577_vm6 = vcmp.gt.f32.partialorder %v1420_v41, 0.0 }
  0xf9   : > { %v607_v48 = vmin.f32 %v1423_v43, 0.0  ;;  %v1431_v49 = vadd.f32 %v1404_v23, %v463_v47  ;;  %vm575_vm7 = vcmp.gt.f32.partialorder %v1423_v43, 0.0 }
  0xfa   : > { %v647_v50 = vmul.f32 1.442695, %v609_v45  ;;  %v610_v51 = vmin.f32 %v1427_v46, 0.0  ;;  %vm578_vm8 = vcmp.gt.f32.partialorder %v1427_v46, 0.0 }
  0xfb   : > { %v643_v52 = vmul.f32 1.442695, %v607_v48  ;;  %v608_v53 = vmin.f32 %v1431_v49, 0.0  ;;  %vm576_vm9 = vcmp.gt.f32.partialorder %v1431_v49, 0.0 }
  0xfc   : > { %1247 = vpow2.f32 %v647_v50  ;;  %v649_v54 = vmul.f32 1.442695, %v610_v51 }
  0xfd   : > { %1249 = vpow2.f32 %v643_v52  ;;  %v645_v55 = vmul.f32 1.442695, %v608_v53  ;;  %v1175_v56 = vpop.f32.mrb[8].mxu0 }
  0xfe   : > { %v1240_v57 = vpop.eup %1239  ;;  %1251 = vpow2.f32 %v649_v54  ;;  %v1436_v58 = vadd.f32 %v1175_v56, %v1404_v23  ;;  %v476_v59 = vpop.f32.mrb[9].mxu0 }
  0xff   : > { %v1242_v60 = vpop.eup %1241  ;;  %1253 = vpow2.f32 %v645_v55  ;;  %v1440_v61 = vadd.f32 %v1404_v23, %v476_v59  ;;  %v1176_v62 = vpop.f32.mrb[10].mxu0  ;;  %v1038_v0 = vadd.f32 -1.0, %v1240_v57 }
 0x100   : > { %v1244_v63 = vpop.eup %1243  ;;  %v613_v1 = vmin.f32 %v1436_v58, 0.0  ;;  %v1444_v2 = vadd.f32 %v1176_v62, %v1404_v23  ;;  %v479_v3 = vpop.f32.mrb[11].mxu0  ;;  %v1036_v4 = vadd.f32 -1.0, %v1242_v60  ;;  %vm581_vm10 = vcmp.gt.f32.partialorder %v1436_v58, 0.0 }
 0x101   : > { %v1246_v5 = vpop.eup %1245  ;;  %v1039_v6 = vadd.f32 -1.0, %v1244_v63  ;;  %v611_v7 = vmin.f32 %v1440_v61, 0.0  ;;  %v1448_v8 = vadd.f32 %v1404_v23, %v479_v3  ;;  %v1462_v17 = vsel %vm573_vm2, %v1407_v25, %v1038_v0 }
 0x102   : > { %v655_v9 = vmul.f32 1.442695, %v613_v1  ;;  %v614_v10 = vmin.f32 %v1444_v2, 0.0  ;;  %v1037_v11 = vadd.f32 -1.0, %v1246_v5  ;;  %v1455_v14 = vsel %vm571_vm3, %v1410_v27, %v1036_v4 }
 0x103   : > { %v651_v12 = vmul.f32 1.442695, %v611_v7  ;;  %v612_v13 = vmin.f32 %v1448_v8, 0.0  ;;  %v1469_v21 = vsel %vm574_vm4, %v1414_v30, %v1039_v6  ;;  %vm579_vm11 = vcmp.gt.f32.partialorder %v1440_v61, 0.0 }
 0x104   : > { %1255 = vpow2.f32 %v655_v9  ;;  %v657_v15 = vmul.f32 1.442695, %v614_v10  ;;  %v1457_v16 = vsel %vm572_vm5, %v448_v33, %v1037_v11  ;;  %v772_v25 = vpack.c.bf16 %v1469_v21, %v1462_v17 }
 0x105   : > { %1257 = vpow2.f32 %v651_v12  ;;  %v653_v18 = vmul.f32 1.442695, %v612_v13  ;;  %v1179_v19 = vpop.f32.mrb[12].mxu0  ;;  %v771_v20 = vpack.c.bf16 %v1457_v16, %v1455_v14  ;;  %vm582_vm12 = vcmp.gt.f32.partialorder %v1444_v2, 0.0 }
 0x106   : > { %v1248_v22 = vpop.eup %1247  ;;  %1259 = vpow2.f32 %v657_v15  ;;  %v1472_v24 = vadd.f32 %v1179_v19, %v1404_v23  ;;  %v492_v26 = vpop.f32.mrb[13].mxu0  ;;  %vm580_vm13 = vcmp.gt.f32.partialorder %v1448_v8, 0.0 }
 0x107   : > { %v1250_v27 = vpop.eup %1249  ;;  %1261 = vpow2.f32 %v653_v18  ;;  %v1478_v28 = vadd.f32 %v1404_v23, %v492_v26  ;;  %v1180_v29 = vpop.f32.mrb[14].mxu0  ;;  %v1042_v30 = vadd.f32 -1.0, %v1248_v22 }
 0x108   : > { %v1252_v31 = vpop.eup %1251  ;;  %v1040_v32 = vadd.f32 -1.0, %v1250_v27  ;;  %v617_v33 = vmin.f32 %v1472_v24, 0.0  ;;  %v1482_v34 = vadd.f32 %v1180_v29, %v1404_v23  ;;  %v495_v35 = vpop.f32.mrb[15].mxu0  ;;  %vm585_vm14 = vcmp.gt.f32.partialorder %v1472_v24, 0.0 }
 0x109   : > { %v1254_v36 = vpop.eup %1253  ;;  %v1043_v37 = vadd.f32 -1.0, %v1252_v31  ;;  %v615_v38 = vmin.f32 %v1478_v28, 0.0  ;;  %v1487_v39 = vadd.f32 %v1404_v23, %v495_v35  ;;  %v1502_v52 = vsel %vm577_vm6, %v1420_v41, %v1042_v30 }
 0x10a   : > { %v1041_v40 = vadd.f32 -1.0, %v1254_v36  ;;  %v663_v42 = vmul.f32 1.442695, %v617_v33  ;;  %v618_v44 = vmin.f32 %v1482_v34, 0.0  ;;  %v1494_v48 = vsel %vm575_vm7, %v1423_v43, %v1040_v32 }
 0x10b   : > { %v659_v45 = vmul.f32 1.442695, %v615_v38  ;;  %v616_v47 = vmin.f32 %v1487_v39, 0.0  ;;  %v1509_v43 = vsel %vm578_vm8, %v1427_v46, %v1043_v37  ;;  %vm583_vm15 = vcmp.gt.f32.partialorder %v1478_v28, 0.0 }
 0x10c   : > { %1263 = vpow2.f32 %v663_v42  ;;  %v665_v50 = vmul.f32 1.442695, %v618_v44  ;;  %v1497_v51 = vsel %vm576_vm9, %v1431_v49, %v1041_v40  ;;  %v774_v41 = vpack.c.bf16 %v1509_v43, %v1502_v52 }
 0x10d   : > { %1265 = vpow2.f32 %v659_v45  ;;  %v661_v53 = vmul.f32 1.442695, %v616_v47  ;;  %v1183_v54 = vpop.f32.mrb[16].mxu0  ;;  %v773_v55 = vpack.c.bf16 %v1497_v51, %v1494_v48  ;;  %vm586_vm0 = vcmp.gt.f32.partialorder %v1482_v34, 0.0 }
 0x10e   : > { %v1256_v56 = vpop.eup %1255  ;;  %1267 = vpow2.f32 %v665_v50  ;;  %v1512_v49 = vadd.f32 %v1183_v54, %v1404_v23  ;;  %v508_v57 = vpop.f32.mrb[17].mxu0  ;;  %vm584_vm1 = vcmp.gt.f32.partialorder %v1487_v39, 0.0 }
 0x10f   : > { %v1258_v59 = vpop.eup %1257  ;;  %1269 = vpow2.f32 %v661_v53  ;;  %v1518_v60 = vadd.f32 %v1404_v23, %v508_v57  ;;  %v1184_v62 = vpop.f32.mrb[18].mxu0  ;;  %v1046_v46 = vadd.f32 -1.0, %v1256_v56 }
 0x110   : > { %v1260_v63 = vpop.eup %1259  ;;  %v1044_v0 = vadd.f32 -1.0, %v1258_v59  ;;  %v621_v1 = vmin.f32 %v1512_v49, 0.0  ;;  %v1522_v3 = vadd.f32 %v1184_v62, %v1404_v23  ;;  %v511_v4 = vpop.f32.mrb[19].mxu0  ;;  %vm589_vm2 = vcmp.gt.f32.partialorder %v1512_v49, 0.0 }
 0x111   : > { %v1262_v5 = vpop.eup %1261  ;;  %v1047_v6 = vadd.f32 -1.0, %v1260_v63  ;;  %v619_v7 = vmin.f32 %v1518_v60, 0.0  ;;  %v1527_v9 = vadd.f32 %v1404_v23, %v511_v4  ;;  %v1542_v26 = vsel %vm581_vm10, %v1436_v58, %v1046_v46 }
 0x112   : > { %v1045_v10 = vadd.f32 -1.0, %v1262_v5  ;;  %v671_v11 = vmul.f32 1.442695, %v621_v1  ;;  %v622_v12 = vmin.f32 %v1522_v3, 0.0  ;;  %v1534_v18 = vsel %vm579_vm11, %v1440_v61, %v1044_v0 }
 0x113   : > { %v667_v13 = vmul.f32 1.442695, %v619_v7  ;;  %v620_v15 = vmin.f32 %v1527_v9, 0.0  ;;  %v1549_v61 = vsel %vm582_vm12, %v1444_v2, %v1047_v6  ;;  %vm587_vm3 = vcmp.gt.f32.partialorder %v1518_v60, 0.0 }
 0x114   : > { %1271 = vpow2.f32 %v671_v11  ;;  %v673_v19 = vmul.f32 1.442695, %v622_v12  ;;  %v1537_v22 = vsel %vm580_vm13, %v1448_v8, %v1045_v10  ;;  %v776_v58 = vpack.c.bf16 %v1549_v61, %v1542_v26  ;;  %v1230_v26 = vld [vmem:[%s1739_s3 + $0x14] ss:$8 sps:$4 sm:$0xff]   ;;  %v1232_v61 = vld [vmem:[%s1739_s3 + $0x10] ss:$8 sps:$4 sm:$0xff]  }
 0x115   : > { %1273 = vpow2.f32 %v667_v13  ;;  %v669_v27 = vmul.f32 1.442695, %v620_v15  ;;  %v1187_v29 = vpop.f32.mrb[20].mxu0  ;;  %v775_v31 = vpack.c.bf16 %v1537_v22, %v1534_v18  ;;  %vm590_vm4 = vcmp.gt.f32.partialorder %v1522_v3, 0.0 }
 0x116   : > { %v1264_v30 = vpop.eup %1263  ;;  %1275 = vpow2.f32 %v673_v19  ;;  %v1552_v8 = vadd.f32 %v1187_v29, %v1404_v23  ;;  %v524_v32 = vpop.f32.mrb[21].mxu0  ;;  %vm588_vm5 = vcmp.gt.f32.partialorder %v1527_v9, 0.0 }
 0x117   : > { %v1266_v33 = vpop.eup %1265  ;;  %1277 = vpow2.f32 %v669_v27  ;;  %v1558_v35 = vadd.f32 %v1404_v23, %v524_v32  ;;  %v1188_v36 = vpop.f32.mrb[22].mxu0  ;;  %v1050_v2 = vadd.f32 -1.0, %v1264_v30 }
 0x118   : > { %v1268_v37 = vpop.eup %1267  ;;  %v1048_v38 = vadd.f32 -1.0, %v1266_v33  ;;  %v625_v40 = vmin.f32 %v1552_v8, 0.0  ;;  %v1562_v42 = vadd.f32 %v1188_v36, %v1404_v23  ;;  %v527_v44 = vpop.f32.mrb[23].mxu0  ;;  %vm593_vm6 = vcmp.gt.f32.partialorder %v1552_v8, 0.0 }
 0x119   : > { %v1270_v45 = vpop.eup %1269  ;;  %v1051_v47 = vadd.f32 -1.0, %v1268_v37  ;;  %v623_v50 = vmin.f32 %v1558_v35, 0.0  ;;  %v1567_v53 = vadd.f32 %v1404_v23, %v527_v44  ;;  %v1582_v1 = vsel %vm585_vm14, %v1472_v24, %v1050_v2 }
 0x11a   : > { %v1049_v54 = vadd.f32 -1.0, %v1270_v45  ;;  %v679_v56 = vmul.f32 1.442695, %v625_v40  ;;  %v626_v57 = vmin.f32 %v1562_v42, 0.0  ;;  %v1574_v63 = vsel %vm583_vm15, %v1478_v28, %v1048_v38 }
 0x11b   : > { %v675_v59 = vmul.f32 1.442695, %v623_v50  ;;  %v624_v62 = vmin.f32 %v1567_v53, 0.0  ;;  %v1589_v28 = vsel %vm586_vm0, %v1482_v34, %v1051_v47  ;;  %vm591_vm7 = vcmp.gt.f32.partialorder %v1558_v35, 0.0 }
 0x11c   : > { %1279 = vpow2.f32 %v679_v56  ;;  %v681_v46 = vmul.f32 1.442695, %v626_v57  ;;  %v1577_v0 = vsel %vm584_vm1, %v1487_v39, %v1049_v54  ;;  %v778_v24 = vpack.c.bf16 %v1589_v28, %v1582_v1  ;;  %v1238_v1 = vld [vmem:[%s1739_s3 + $0x30] ss:$8 sps:$4 sm:$0xff]  }
 0x11d   : > { %1281 = vpow2.f32 %v675_v59  ;;  %v677_v4 = vmul.f32 1.442695, %v624_v62  ;;  %v1191_v5 = vpop.f32.mrb[24].mxu0  ;;  %v777_v6 = vpack.c.bf16 %v1577_v0, %v1574_v63  ;;  %vm594_vm8 = vcmp.gt.f32.partialorder %v1562_v42, 0.0  ;;  %v1235_v63 = vld [vmem:[%s1739_s3 + $0x20] ss:$8 sps:$4 sm:$0xff]  }
 0x11e   : > { %v1272_v7 = vpop.eup %1271  ;;  %1283 = vpow2.f32 %v681_v46  ;;  %v1592_v39 = vadd.f32 %v1191_v5, %v1404_v23  ;;  %v540_v10 = vpop.f32.mrb[25].mxu0  ;;  %vm592_vm9 = vcmp.gt.f32.partialorder %v1567_v53, 0.0  ;;  %v1236_v0 = vld [vmem:[%s1739_s3 + $0x34] ss:$8 sps:$4 sm:$0xff]  }
 0x11f   : > { %v1274_v11 = vpop.eup %1273  ;;  %1285 = vpow2.f32 %v677_v4  ;;  %v1598_v12 = vadd.f32 %v1404_v23, %v540_v10  ;;  %v1192_v13 = vpop.f32.mrb[26].mxu0  ;;  %v1054_v34 = vadd.f32 -1.0, %v1272_v7 }
 0x120   : > { %v1276_v15 = vpop.eup %1275  ;;  %v629_v19 = vmin.f32 %v1592_v39, 0.0  ;;  %v1602_v27 = vadd.f32 %v1192_v13, %v1404_v23  ;;  %v543_v29 = vpop.f32.mrb[27].mxu0  ;;  %v1052_v30 = vadd.f32 -1.0, %v1274_v11  ;;  %vm597_vm10 = vcmp.gt.f32.partialorder %v1592_v39, 0.0 }
 0x121   : > { %v1278_v32 = vpop.eup %1277  ;;  %v1055_v33 = vadd.f32 -1.0, %v1276_v15  ;;  %v627_v36 = vmin.f32 %v1598_v12, 0.0  ;;  %v1606_v37 = vadd.f32 %v1404_v23, %v543_v29  ;;  %v749_v56 = vsel %vm589_vm2, %v1512_v49, %v1054_v34 }
 0x122   : > { %v687_v2 = vmul.f32 1.442695, %v629_v19  ;;  %v630_v38 = vmin.f32 %v1602_v27, 0.0  ;;  %v1053_v40 = vadd.f32 -1.0, %v1278_v32  ;;  %v747_v47 = vsel %vm587_vm3, %v1518_v60, %v1052_v30 }
 0x123   : > { %v683_v44 = vmul.f32 1.442695, %v627_v36  ;;  %v628_v45 = vmin.f32 %v1606_v37, 0.0  ;;  %v750_v46 = vsel %vm590_vm4, %v1522_v3, %v1055_v33  ;;  %vm598_vm11 = vcmp.gt.f32.partialorder %v1602_v27, 0.0 }
 0x124   : > { %1287 = vpow2.f32 %v687_v2  ;;  %v689_v50 = vmul.f32 1.442695, %v630_v38  ;;  %v748_v54 = vsel %vm588_vm5, %v1527_v9, %v1053_v40  ;;  %v780_v7 = vpack.c.bf16 %v750_v46, %v749_v56 }
 0x125   : > { %1289 = vpow2.f32 %v683_v44  ;;  %v685_v57 = vmul.f32 1.442695, %v628_v45  ;;  %v1195_v59 = vpop.f32.mrb[28].mxu0  ;;  %v779_v62 = vpack.c.bf16 %v748_v54, %v747_v47  ;;  %vm595_vm12 = vcmp.gt.f32.partialorder %v1598_v12, 0.0 }
 0x126   : > { %v1280_v4 = vpop.eup %1279  ;;  %1291 = vpow2.f32 %v689_v50  ;;  %v1622_v60 = vadd.f32 %v1195_v59, %v1404_v23  ;;  %v556_v5 = vpop.f32.mrb[29].mxu0  ;;  %vm596_vm13 = vcmp.gt.f32.partialorder %v1606_v37, 0.0  ;;  %vm924_vm2 = vcmask 125952  }
 0x127   : > { %v1282_v9 = vpop.eup %1281  ;;  %1293 = vpow2.f32 %v685_v57  ;;  %v1626_v49 = vadd.f32 %v1404_v23, %v556_v5  ;;  %v1196_v10 = vpop.f32.mrb[30].mxu0  ;;  %1115 = vmatprep.subr.bf16.mxu1 %v779_v62  ;;  %v1058_v13 = vadd.f32 -1.0, %v1280_v4 }
 0x128   : > { %v1284_v11 = vpop.eup %1283  ;;  %v1056_v15 = vadd.f32 -1.0, %v1282_v9  ;;  %v633_v3 = vmin.f32 %v1622_v60, 0.0  ;;  %v1630_v34 = vadd.f32 %v1196_v10, %v1404_v23  ;;  %v559_v19 = vpop.f32.mrb[31].mxu0  ;;  %1116 = vmatpush3.bf16.msra.mxu1 %v771_v20  ;;  %vm601_vm14 = vcmp.gt.f32.partialorder %v1622_v60, 0.0 }
 0x129   : > { %v1286_v29 = vpop.eup %1285  ;;  %v1059_v30 = vadd.f32 -1.0, %v1284_v11  ;;  %v631_v32 = vmin.f32 %v1626_v49, 0.0  ;;  %v1638_v33 = vadd.f32 %v1404_v23, %v559_v19  ;;  %1117 = vmatprep.subr.bf16.mxu1 %v780_v7  ;;  %v753_v44 = vsel %vm593_vm6, %v1552_v8, %v1058_v13 }
 0x12a   : > { %v1057_v36 = vadd.f32 -1.0, %v1286_v29  ;;  %v695_v2 = vmul.f32 1.442695, %v633_v3  ;;  %v634_v38 = vmin.f32 %v1630_v34, 0.0  ;;  %v751_v20 = vsel %vm591_vm7, %v1558_v35, %v1056_v15 }
 0x12b   : > { %v691_v14 = vmul.f32 1.442695, %v631_v32  ;;  %v632_v16 = vmin.f32 %v1638_v33, 0.0  ;;  %v754_v50 = vsel %vm594_vm8, %v1562_v42, %v1059_v30  ;;  %vm602_vm15 = vcmp.gt.f32.partialorder %v1630_v34, 0.0 }
 0x12c   : > { %1295 = vpow2.f32 %v695_v2  ;;  %v697_v40 = vmul.f32 1.442695, %v634_v38  ;;  %1118 = vmatpush3.bf16.msra.mxu1 %v772_v25  ;;  %v752_v23 = vsel %vm592_vm9, %v1567_v53, %v1057_v36  ;;  %v782_v54 = vpack.c.bf16 %v754_v50, %v753_v44 }
 0x12d   : > { %1297 = vpow2.f32 %v691_v14  ;;  %v693_v45 = vmul.f32 1.442695, %v632_v16  ;;  %v781_v47 = vpack.c.bf16 %v752_v23, %v751_v20  ;;  %vm599_vm0 = vcmp.gt.f32.partialorder %v1626_v49, 0.0 }
 0x12e   : > { %v1288_v35 = vpop.eup %1287  ;;  %1299 = vpow2.f32 %v697_v40  ;;  %vm600_vm1 = vcmp.gt.f32.partialorder %v1638_v33, 0.0 }
 0x12f   : > { %v1290_v56 = vpop.eup %1289  ;;  %v1062_v57 = vadd.f32 -1.0, %v1288_v35  ;;  %1301 = vpow2.f32 %v693_v45  ;;  %1119 = vmatprep.subr.bf16.mxu1 %v781_v47 }
 0x130   : > { %v1292_v17 = vpop.eup %1291  ;;  %v1060_v21 = vadd.f32 -1.0, %v1290_v56  ;;  %1120 = vmatpush3.bf16.msra.mxu1 %v773_v55 }
 0x131   : > { %v1294_v25 = vpop.eup %1293  ;;  %v1063_v8 = vadd.f32 -1.0, %v1292_v17  ;;  %1121 = vmatprep.subr.bf16.mxu1 %v782_v54  ;;  %v757_v53 = vsel %vm597_vm10, %v1592_v39, %v1062_v57 }
 0x132   : > { %v1061_v42 = vadd.f32 -1.0, %v1294_v25  ;;  %v755_v48 = vsel %vm595_vm12, %v1598_v12, %v1060_v21 }
 0x133   : > { %v758_v59 = vsel %vm598_vm11, %v1602_v27, %v1063_v8 }
 0x134   : > { %1122 = vmatpush3.bf16.msra.mxu1 %v774_v41  ;;  %v756_v51 = vsel %vm596_vm13, %v1606_v37, %v1061_v42  ;;  %v784_v55 = vpack.c.bf16 %v758_v59, %v757_v53  ;;  %v1227_v37 = vld [vmem:[%s1739_s3] ss:$8 sps:$4 sm:$0xff]  }
 0x135   : > { %v783_v62 = vpack.c.bf16 %v756_v51, %v755_v48 }
 0x136   : > { %v1296_v46 = vpop.eup %1295 }
 0x137   : > { %v1298_v4 = vpop.eup %1297  ;;  %v1066_v5 = vadd.f32 -1.0, %v1296_v46  ;;  %1123 = vmatprep.subr.bf16.mxu1 %v783_v62 }
 0x138   : > { %v1300_v7 = vpop.eup %1299  ;;  %v1064_v9 = vadd.f32 -1.0, %v1298_v4  ;;  %1124 = vmatpush3.bf16.msra.mxu1 %v775_v31 }
 0x139   : > { %v1302_v39 = vpop.eup %1301  ;;  %v1067_v27 = vadd.f32 -1.0, %v1300_v7  ;;  %1125 = vmatprep.subr.bf16.mxu1 %v784_v55  ;;  %v761_v43 = vsel %vm601_vm14, %v1622_v60, %v1066_v5 }
 0x13a   : > { %v1065_v52 = vadd.f32 -1.0, %v1302_v39  ;;  %v759_v18 = vsel %vm599_vm0, %v1626_v49, %v1064_v9 }
 0x13b   : > { %v762_v41 = vsel %vm602_vm15, %v1630_v34, %v1067_v27 }
 0x13c   : > { %1126 = vmatpush3.bf16.msra.mxu1 %v776_v58  ;;  %v760_v22 = vsel %vm600_vm1, %v1638_v33, %v1065_v52  ;;  %v786_v31 = vpack.c.bf16 %v762_v41, %v761_v43  ;;  %v1233_v58 = vld [vmem:[%s1739_s3 + $0x24] ss:$8 sps:$4 sm:$0xff]  }
 0x13d   : > { %v785_v12 = vpack.c.bf16 %v760_v22, %v759_v18 }
 0x13f   : > { %1127 = vmatprep.subr.bf16.mxu1 %v785_v12 }
 0x140   : > { %1128 = vmatpush3.bf16.msra.mxu1 %v777_v6 }
 0x141   : > { %1129 = vmatprep.subr.bf16.mxu1 %v786_v31 }
 0x144   : > { %1130 = vmatpush3.bf16.msra.mxu1 %v778_v24 }
 0x147   : > { %860 = vmatmul.mubr.bf16.vlgmr.msra.gmra.mrb[0].mxu1 %v1227_v37 }
 0x148   : > { %867 = vmatprep.mubr.bf16.mxu1 %v1230_v26 }
 0x14f   : > { %868 = vmatmul.mubr.bf16.gmra.mrb[4].mxu1 %v1232_v61 }
 0x150   : > { %875 = vmatprep.mubr.bf16.mxu1 %v1233_v58 }
 0x157   : > { %876 = vmatmul.mubr.bf16.gmra.mrb[8].mxu1 %v1235_v63 }
 0x158   : > { %883 = vmatprep.mubr.bf16.mxu1 %v1236_v0 }
 0x15f   : > { %884 = vmatmul.mubr.bf16.gmra.mrb[12].mxu1 %v1238_v1 }
 0x21a   : > { %v1131_v6 = vpop.f32.mrb[0].mxu1 }
 0x21b   : > { %v1132_v28 = vpop.f32.mrb[1].mxu1 }
 0x21c   : > { %v1133_v24 = vadd.f32 %v1132_v28, %v1131_v6  ;;  %v1134_v60 = vpop.f32.mrb[2].mxu1 }
 0x21d   : > { %v1135_v49 = vpop.f32.mrb[3].mxu1 }
 0x21e   : > { %v1086_v10 = vpack.c.bf16 %v1133_v24, %v1133_v24  ;;  %v1136_v11 = vadd.f32 %v1135_v49, %v1134_v60 }
 0x220   : > { %925 = vst.msk [vmem:[%s1715_s30] sm:$0xf] %vm924_vm2, %v1086_v10  ;;  %v1087_v13 = vpack.c.bf16 %v1136_v11, %v1136_v11 }
 0x222   : > { %926 = vst.msk [vmem:[%s1715_s30 + $0x4] sm:$0xf] %vm924_vm2, %v1087_v13  ;;  %v1137_v15 = vpop.f32.mrb[4].mxu1 }
 0x223   : > { %v1138_v3 = vpop.f32.mrb[5].mxu1 }
 0x224   : > { %v1139_v34 = vadd.f32 %v1138_v3, %v1137_v15  ;;  %v1140_v19 = vpop.f32.mrb[6].mxu1 }
 0x225   : > { %v1141_v29 = vpop.f32.mrb[7].mxu1 }
 0x226   : > { %v1088_v30 = vpack.c.bf16 %v1139_v34, %v1139_v34  ;;  %v1142_v32 = vadd.f32 %v1141_v29, %v1140_v19 }
 0x228   : > { %927 = vst.msk [vmem:[%s1715_s30 + $0x8] sm:$0xf] %vm924_vm2, %v1088_v30  ;;  %v1089_v33 = vpack.c.bf16 %v1142_v32, %v1142_v32 }
 0x22a   : > { %928 = vst.msk [vmem:[%s1715_s30 + $0xc] sm:$0xf] %vm924_vm2, %v1089_v33  ;;  %v1143_v36 = vpop.f32.mrb[8].mxu1 }
 0x22b   : > { %v1144_v2 = vpop.f32.mrb[9].mxu1 }
 0x22c   : > { %v1145_v38 = vadd.f32 %v1144_v2, %v1143_v36  ;;  %v1146_v14 = vpop.f32.mrb[10].mxu1 }
 0x22d   : > { %v1147_v16 = vpop.f32.mrb[11].mxu1 }
 0x22e   : > { %v1090_v20 = vpack.c.bf16 %v1145_v38, %v1145_v38  ;;  %v1148_v40 = vadd.f32 %v1147_v16, %v1146_v14 }
 0x230   : > { %929 = vst.msk [vmem:[%s1715_s30 + $0x10] sm:$0xf] %vm924_vm2, %v1090_v20  ;;  %v1091_v23 = vpack.c.bf16 %v1148_v40, %v1148_v40 }
 0x232   : > { %930 = vst.msk [vmem:[%s1715_s30 + $0x14] sm:$0xf] %vm924_vm2, %v1091_v23  ;;  %v1149_v44 = vpop.f32.mrb[12].mxu1 }
 0x233   : > { %v1150_v45 = vpop.f32.mrb[13].mxu1 }
 0x234   : > { %v1151_v47 = vadd.f32 %v1150_v45, %v1149_v44  ;;  %v1152_v50 = vpop.f32.mrb[14].mxu1 }
 0x235   : > { %v1153_v35 = vpop.f32.mrb[15].mxu1 }
 0x236   : > { %v1092_v54 = vpack.c.bf16 %v1151_v47, %v1151_v47  ;;  %v1154_v56 = vadd.f32 %v1153_v35, %v1152_v50 }
 0x238   : > { %931 = vst.msk [vmem:[%s1715_s30 + $0x18] sm:$0xf] %vm924_vm2, %v1092_v54  ;;  %v1093_v57 = vpack.c.bf16 %v1154_v56, %v1154_v56 }
 0x23a   : > { %932 = vst.msk [vmem:[%s1715_s30 + $0x1c] sm:$0xf] %vm924_vm2, %v1093_v57 }
 0x23b PF: > { %s14_s15 = sadd.s32 1, %s1309_s15  }
 0x23c   : > { %p11_p5 = scmp.ge.s32.totalorder %s14_s15, 4  }
 0x23e   :  { %13 = sbr.rel (!%p11_p5) target bundleno = 1 (0x1), region = 66 }

// kernel: discriminator_forward.19
= control target key start
LH: loop header
LB: loop body
LE: loop exit
PB: predicated region body
PF: predicated region fallthrough
CT: control target
= control target key end

     0   :  { %v651_v0 = vmov 0   ;;  %vm182_vm0 = vcmask 130048   ;;  %vm464_vm2 = vcmask 125952   ;;  %s915_s1 = inlined_call_operand.vmem [shape: bf16[144,16], index: 1, kind: input, shape index: {}]   ;;  %s916_s0 = inlined_call_operand.vmem [shape: bf16[128,144], index: 0, kind: input, shape index: {}]   ;;  %s917_s2 = inlined_call_operand.vmem [shape: f32[1,16], index: 2, kind: input, shape index: {}]   ;;  %s918_s3 = inlined_call_operand.vmem [shape: bf16[128,16], index: 3, kind: output, shape index: {}]  }
   0x1   :  { %207 = vmatprep.subr.bf16.mxu0 %v651_v0  ;;  %567 = vmatprep.subr.bf16.mxu1 %v651_v0  ;;  %v586_v1 = vld [vmem:[%s915_s1] sm:$0xff]   ;;  %v587_v2 = vld [vmem:[%s915_s1 + $0x8] sm:$0xff]   ;;  %v588_v3 = vld [vmem:[%s915_s1 + $0x10] sm:$0xff]  }
   0x2   :  { %208 = vmatpush1.bf16.msra.mxu0 %v586_v1  ;;  %576 = vmatpush1.bf16.msra.mxu1 %v586_v1  ;;  %v589_v4 = vld [vmem:[%s915_s1 + $0x18] sm:$0xff]   ;;  %v597_v5 = vld [vmem:[%s916_s0 + $0x4] ss:$8 sps:$4 sm:$0xff]   ;;  %v592_v9 = vld [vmem:[%s915_s1 + $0x30] sm:$0xff]  }
   0x3   :  { %209 = vmatprep.subr.bf16.mxu0 %v651_v0  ;;  %568 = vmatprep.subr.bf16.mxu1 %v651_v0  ;;  %v600_v6 = vld [vmem:[%s916_s0 + $0x44] ss:$8 sps:$4 sm:$0xff]   ;;  %v593_v10 = vld [vmem:[%s915_s1 + $0x38] sm:$0xff]   ;;  %v595_v12 = vld [vmem:[%s916_s0] ss:$8 sps:$4 sm:$0xff]  }
   0x4   :  { %511 = vmatprep.mubr.msk.bf16.mxu0 %vm182_vm0, %v597_v5  ;;  %515 = vmatprep.mubr.msk.bf16.mxu1 %vm182_vm0, %v600_v6  ;;  %v590_v7 = vld [vmem:[%s915_s1 + $0x20] sm:$0xff]   ;;  %v591_v8 = vld [vmem:[%s915_s1 + $0x28] sm:$0xff]   ;;  %v601_v14 = vld [vmem:[%s916_s0 + $0x14] ss:$8 sps:$4 sm:$0xff]  }
   0x5   :  { %v594_v11 = vld [vmem:[%s915_s1 + $0x40] sm:$0xff]   ;;  %v603_v15 = vld [vmem:[%s916_s0 + $0x54] ss:$8 sps:$4 sm:$0xff]   ;;  %v605_v16 = vld [vmem:[%s916_s0 + $0x10] ss:$8 sps:$4 sm:$0xff]  }
   0x6   :  { %210 = vmatpush1.bf16.msra.mxu0 %v587_v2  ;;  %577 = vmatpush1.bf16.msra.mxu1 %v587_v2  ;;  %v598_v13 = vld [vmem:[%s916_s0 + $0x40] ss:$8 sps:$4 sm:$0xff]   ;;  %v606_v17 = vld [vmem:[%s916_s0 + $0x50] ss:$8 sps:$4 sm:$0xff]   ;;  %v607_v18 = vld [vmem:[%s916_s0 + $0x24] ss:$8 sps:$4 sm:$0xff]  }
   0x7   :  { %211 = vmatprep.subr.bf16.mxu0 %v651_v0  ;;  %569 = vmatprep.subr.bf16.mxu1 %v651_v0  ;;  %v609_v19 = vld [vmem:[%s916_s0 + $0x64] ss:$8 sps:$4 sm:$0xff]   ;;  %v611_v20 = vld [vmem:[%s916_s0 + $0x20] ss:$8 sps:$4 sm:$0xff]   ;;  %v613_v22 = vld [vmem:[%s916_s0 + $0x34] ss:$8 sps:$4 sm:$0xff]  }
   0x8   :  { %v612_v21 = vld [vmem:[%s916_s0 + $0x60] ss:$8 sps:$4 sm:$0xff]   ;;  %v615_v23 = vld [vmem:[%s916_s0 + $0x74] ss:$8 sps:$4 sm:$0xff]   ;;  %v617_v24 = vld [vmem:[%s916_s0 + $0x30] ss:$8 sps:$4 sm:$0xff]  }
   0x9   :  { %v618_v25 = vld [vmem:[%s916_s0 + $0x70] ss:$8 sps:$4 sm:$0xff]   ;;  %v758_v26 = vld [vmem:[%s917_s2] ss:$0 sm:$0xff] }
   0xa   :  { %212 = vmatpush1.bf16.msra.mxu0 %v588_v3  ;;  %578 = vmatpush1.bf16.msra.mxu1 %v588_v3 }
   0xb   :  { %213 = vmatprep.subr.bf16.mxu0 %v651_v0  ;;  %570 = vmatprep.subr.bf16.mxu1 %v651_v0 }
   0xe   :  { %214 = vmatpush1.bf16.msra.mxu0 %v589_v4  ;;  %579 = vmatpush1.bf16.msra.mxu1 %v589_v4 }
   0xf   :  { %215 = vmatprep.subr.bf16.mxu0 %v651_v0  ;;  %571 = vmatprep.subr.bf16.mxu1 %v651_v0 }
  0x12   :  { %216 = vmatpush1.bf16.msra.mxu0 %v590_v7  ;;  %580 = vmatpush1.bf16.msra.mxu1 %v590_v7 }
  0x13   :  { %217 = vmatprep.subr.bf16.mxu0 %v651_v0  ;;  %572 = vmatprep.subr.bf16.mxu1 %v651_v0 }
  0x16   :  { %218 = vmatpush1.bf16.msra.mxu0 %v591_v8  ;;  %581 = vmatpush1.bf16.msra.mxu1 %v591_v8 }
  0x17   :  { %219 = vmatprep.subr.bf16.mxu0 %v651_v0  ;;  %573 = vmatprep.subr.bf16.mxu1 %v651_v0 }
  0x1a   :  { %220 = vmatpush1.bf16.msra.mxu0 %v592_v9  ;;  %582 = vmatpush1.bf16.msra.mxu1 %v592_v9 }
  0x1b   :  { %221 = vmatprep.subr.bf16.mxu0 %v651_v0  ;;  %574 = vmatprep.subr.bf16.mxu1 %v651_v0 }
  0x1e   :  { %222 = vmatpush1.bf16.msra.mxu0 %v593_v10  ;;  %583 = vmatpush1.bf16.msra.mxu1 %v593_v10 }
  0x1f   :  { %223 = vmatprep.subr.bf16.mxu0 %v651_v0  ;;  %575 = vmatprep.subr.bf16.mxu1 %v651_v0 }
  0x22   :  { %224 = vmatpush1.bf16.msra.mxu0 %v594_v11  ;;  %584 = vmatpush1.bf16.msra.mxu1 %v594_v11 }
  0x25   :  { %240 = vmatmul.mubr.bf16.vlgmr.msra.gmra.mrb[0].mxu0 %v595_v12  ;;  %272 = vmatmul.mubr.bf16.vlgmr.msra.gmra.mrb[0].mxu1 %v598_v13 }
  0x26   :  { %512 = vmatprep.mubr.msk.bf16.mxu0 %vm182_vm0, %v601_v14  ;;  %516 = vmatprep.mubr.msk.bf16.mxu1 %vm182_vm0, %v603_v15 }
  0x2d   :  { %248 = vmatmul.mubr.bf16.gmra.mrb[4].mxu0 %v605_v16  ;;  %280 = vmatmul.mubr.bf16.gmra.mrb[4].mxu1 %v606_v17 }
  0x2e   :  { %513 = vmatprep.mubr.msk.bf16.mxu0 %vm182_vm0, %v607_v18  ;;  %517 = vmatprep.mubr.msk.bf16.mxu1 %vm182_vm0, %v609_v19 }
  0x35   :  { %256 = vmatmul.mubr.bf16.gmra.mrb[8].mxu0 %v611_v20  ;;  %288 = vmatmul.mubr.bf16.gmra.mrb[8].mxu1 %v612_v21 }
  0x36   :  { %514 = vmatprep.mubr.msk.bf16.mxu0 %vm182_vm0, %v613_v22  ;;  %518 = vmatprep.mubr.msk.bf16.mxu1 %vm182_vm0, %v615_v23 }
  0x3d   :  { %264 = vmatmul.mubr.bf16.gmra.mrb[12].mxu0 %v617_v24  ;;  %296 = vmatmul.mubr.bf16.gmra.mrb[12].mxu1 %v618_v25 }
  0xf8   :  { %v241_v27 = vpop.f32.mrb[0].mxu0  ;;  %v273_v28 = vpop.f32.mrb[0].mxu1 }
  0xf9   :  { %v761_v29 = vadd.f32 %v758_v26, %v241_v27  ;;  %v764_v30 = vadd.f32 %v758_v26, %v273_v28  ;;  %v243_v31 = vpop.f32.mrb[1].mxu0  ;;  %v275_v32 = vpop.f32.mrb[1].mxu1 }
  0xfa   :  { %v244_v33 = vpop.f32.mrb[2].mxu0  ;;  %v276_v34 = vpop.f32.mrb[2].mxu1 }
  0xfb   :  { %v320_v35 = vmin.f32 %v761_v29, 0.0  ;;  %v328_v36 = vmin.f32 %v764_v30, 0.0  ;;  %v246_v37 = vpop.f32.mrb[3].mxu0  ;;  %v278_v38 = vpop.f32.mrb[3].mxu1  ;;  %v769_v39 = vadd.f32 %v758_v26, %v244_v33  ;;  %v772_v40 = vadd.f32 %v758_v26, %v276_v34 }
  0xfc   :  { %vm304_vm1 = vcmp.gt.f32.partialorder %v761_v29, 0.0  ;;  %vm312_vm3 = vcmp.gt.f32.partialorder %v764_v30, 0.0 }
  0xfd   :  { %v336_v41 = vmul.f32 1.442695, %v320_v35  ;;  %v352_v42 = vmul.f32 1.442695, %v328_v36  ;;  %v321_v43 = vmin.f32 %v769_v39, 0.0  ;;  %v329_v44 = vmin.f32 %v772_v40, 0.0 }
  0xfe   :  { %vm305_vm4 = vcmp.gt.f32.partialorder %v769_v39, 0.0  ;;  %vm313_vm5 = vcmp.gt.f32.partialorder %v772_v40, 0.0 }
  0xff   :  { %619 = vpow2.f32 %v336_v41  ;;  %v338_v45 = vmul.f32 1.442695, %v321_v43  ;;  %v354_v46 = vmul.f32 1.442695, %v329_v44 }
 0x100   :  { %621 = vpow2.f32 %v352_v42  ;;  %v249_v47 = vpop.f32.mrb[4].mxu0  ;;  %v281_v48 = vpop.f32.mrb[4].mxu1 }
 0x101   :  { %v777_v49 = vadd.f32 %v758_v26, %v249_v47  ;;  %v780_v50 = vadd.f32 %v758_v26, %v281_v48  ;;  %v251_v51 = vpop.f32.mrb[5].mxu0  ;;  %v283_v52 = vpop.f32.mrb[5].mxu1  ;;  %623 = vpow2.f32 %v338_v45 }
 0x102   :  { %v252_v53 = vpop.f32.mrb[6].mxu0  ;;  %v284_v54 = vpop.f32.mrb[6].mxu1  ;;  %625 = vpow2.f32 %v354_v46 }
 0x103   :  { %v322_v55 = vmin.f32 %v777_v49, 0.0  ;;  %v254_v56 = vpop.f32.mrb[7].mxu0  ;;  %v286_v57 = vpop.f32.mrb[7].mxu1  ;;  %v330_v58 = vmin.f32 %v780_v50, 0.0  ;;  %v785_v59 = vadd.f32 %v758_v26, %v252_v53  ;;  %v788_v60 = vadd.f32 %v758_v26, %v284_v54 }
 0x104   :  { %vm306_vm6 = vcmp.gt.f32.partialorder %v777_v49, 0.0  ;;  %vm314_vm7 = vcmp.gt.f32.partialorder %v780_v50, 0.0 }
 0x105   :  { %v340_v61 = vmul.f32 1.442695, %v322_v55  ;;  %v356_v62 = vmul.f32 1.442695, %v330_v58  ;;  %v323_v63 = vmin.f32 %v785_v59, 0.0  ;;  %v331_v0 = vmin.f32 %v788_v60, 0.0 }
 0x106   :  { %vm307_vm8 = vcmp.gt.f32.partialorder %v785_v59, 0.0  ;;  %vm315_vm9 = vcmp.gt.f32.partialorder %v788_v60, 0.0 }
 0x107   :  { %627 = vpow2.f32 %v340_v61  ;;  %v342_v1 = vmul.f32 1.442695, %v323_v63  ;;  %v358_v5 = vmul.f32 1.442695, %v331_v0 }
 0x108   :  { %629 = vpow2.f32 %v356_v62  ;;  %v257_v2 = vpop.f32.mrb[8].mxu0  ;;  %v289_v3 = vpop.f32.mrb[8].mxu1 }
 0x109   :  { %v620_v4 = vpop.eup %619  ;;  %v793_v6 = vadd.f32 %v758_v26, %v257_v2  ;;  %v796_v7 = vadd.f32 %v758_v26, %v289_v3  ;;  %v259_v8 = vpop.f32.mrb[9].mxu0  ;;  %631 = vpow2.f32 %v342_v1 }
 0x10a   :  { %v291_v9 = vpop.f32.mrb[9].mxu1  ;;  %v622_v10 = vpop.eup %621  ;;  %v519_v11 = vadd.f32 -1.0, %v620_v4  ;;  %633 = vpow2.f32 %v358_v5 }
 0x10b   :  { %v260_v12 = vpop.f32.mrb[10].mxu0  ;;  %v292_v13 = vpop.f32.mrb[10].mxu1  ;;  %v527_v14 = vadd.f32 -1.0, %v622_v10  ;;  %v324_v15 = vmin.f32 %v793_v6, 0.0  ;;  %v332_v20 = vmin.f32 %v796_v7, 0.0  ;;  %vm308_vm10 = vcmp.gt.f32.partialorder %v793_v6, 0.0 }
 0x10c   :  { %v262_v16 = vpop.f32.mrb[11].mxu0  ;;  %v294_v17 = vpop.f32.mrb[11].mxu1  ;;  %v384_v19 = vsel %vm304_vm1, %v761_v29, %v519_v11  ;;  %v805_v21 = vadd.f32 %v758_v26, %v260_v12  ;;  %v816_v34 = vadd.f32 %v758_v26, %v292_v13  ;;  %vm316_vm11 = vcmp.gt.f32.partialorder %v796_v7, 0.0 }
 0x10d   :  { %v624_v18 = vpop.eup %623  ;;  %v551_v23 = vpack.c.bf16 %v384_v19, %v384_v19  ;;  %v392_v24 = vsel %vm312_vm3, %v764_v30, %v527_v14  ;;  %v344_v27 = vmul.f32 1.442695, %v324_v15  ;;  %v360_v32 = vmul.f32 1.442695, %v332_v20 }
 0x10e   :  { %v626_v22 = vpop.eup %625  ;;  %v520_v25 = vadd.f32 -1.0, %v624_v18  ;;  %v559_v28 = vpack.c.bf16 %v392_v24, %v392_v24  ;;  %v325_v33 = vmin.f32 %v805_v21, 0.0  ;;  %v333_v42 = vmin.f32 %v816_v34, 0.0 }
 0x10f   :  { %v528_v31 = vadd.f32 -1.0, %v626_v22  ;;  %465 = vst.msk [vmem:[%s918_s3] sm:$0xf] %vm464_vm2, %v551_v23  ;;  %635 = vpow2.f32 %v344_v27  ;;  %vm309_vm12 = vcmp.gt.f32.partialorder %v805_v21, 0.0  ;;  %vm317_vm13 = vcmp.gt.f32.partialorder %v816_v34, 0.0 }
 0x110   :  { %v385_v29 = vsel %vm305_vm4, %v769_v39, %v520_v25  ;;  %473 = vst.msk [vmem:[%s918_s3 + $0x20] sm:$0xf] %vm464_vm2, %v559_v28  ;;  %637 = vpow2.f32 %v360_v32  ;;  %v265_v36 = vpop.f32.mrb[12].mxu0  ;;  %v297_v37 = vpop.f32.mrb[12].mxu1  ;;  %v346_v39 = vmul.f32 1.442695, %v325_v33 }
 0x111   :  { %v552_v30 = vpack.c.bf16 %v385_v29, %v385_v29  ;;  %v393_v35 = vsel %vm313_vm5, %v772_v40, %v528_v31  ;;  %v628_v38 = vpop.eup %627  ;;  %v267_v43 = vpop.f32.mrb[13].mxu0  ;;  %v830_v40 = vadd.f32 %v758_v26, %v265_v36  ;;  %v833_v47 = vadd.f32 %v758_v26, %v297_v37 }
 0x112   :  { %v560_v41 = vpack.c.bf16 %v393_v35, %v393_v35  ;;  %v299_v44 = vpop.f32.mrb[13].mxu1  ;;  %v630_v45 = vpop.eup %629  ;;  %v521_v46 = vadd.f32 -1.0, %v628_v38  ;;  %639 = vpow2.f32 %v346_v39  ;;  %v362_v53 = vmul.f32 1.442695, %v333_v42 }
 0x113   :  { %466 = vst.msk [vmem:[%s918_s3 + $0x4] sm:$0xf] %vm464_vm2, %v552_v30  ;;  %v268_v48 = vpop.f32.mrb[14].mxu0  ;;  %v300_v51 = vpop.f32.mrb[14].mxu1  ;;  %v529_v52 = vadd.f32 -1.0, %v630_v45  ;;  %v326_v61 = vmin.f32 %v830_v40, 0.0 }
 0x114   :  { %474 = vst.msk [vmem:[%s918_s3 + $0x24] sm:$0xf] %vm464_vm2, %v560_v41  ;;  %v840_v54 = vadd.f32 %v758_v26, %v268_v48  ;;  %v270_v55 = vpop.f32.mrb[15].mxu0  ;;  %v302_v56 = vpop.f32.mrb[15].mxu1  ;;  %v386_v58 = vsel %vm306_vm6, %v777_v49, %v521_v46  ;;  %641 = vpow2.f32 %v362_v53  ;;  %v334_v5 = vmin.f32 %v833_v47, 0.0 }
 0x115   :  { %v632_v57 = vpop.eup %631  ;;  %v553_v63 = vpack.c.bf16 %v386_v58, %v386_v58  ;;  %v394_v0 = vsel %vm314_vm7, %v780_v50, %v529_v52  ;;  %v348_v4 = vmul.f32 1.442695, %v326_v61  ;;  %v301_v50 = vadd.f32 %v758_v26, %v300_v51 }
 0x116   :  { %v634_v62 = vpop.eup %633  ;;  %v522_v1 = vadd.f32 -1.0, %v632_v57  ;;  %v561_v2 = vpack.c.bf16 %v394_v0, %v394_v0  ;;  %v327_v8 = vmin.f32 %v840_v54, 0.0  ;;  %v364_v11 = vmul.f32 1.442695, %v334_v5 }
 0x117   :  { %v530_v3 = vadd.f32 -1.0, %v634_v62  ;;  %467 = vst.msk [vmem:[%s918_s3 + $0x8] sm:$0xf] %vm464_vm2, %v553_v63  ;;  %643 = vpow2.f32 %v348_v4  ;;  %vm310_vm14 = vcmp.gt.f32.partialorder %v830_v40, 0.0  ;;  %vm318_vm15 = vcmp.gt.f32.partialorder %v833_v47, 0.0 }
 0x118   :  { %v387_v49 = vsel %vm307_vm8, %v785_v59, %v522_v1  ;;  %475 = vst.msk [vmem:[%s918_s3 + $0x28] sm:$0xf] %vm464_vm2, %v561_v2  ;;  %v350_v14 = vmul.f32 1.442695, %v327_v8  ;;  %v335_v59 = vmin.f32 %v301_v50, 0.0  ;;  %645 = vpow2.f32 %v364_v11 }
 0x119   :  { %v554_v9 = vpack.c.bf16 %v387_v49, %v387_v49  ;;  %v395_v10 = vsel %vm315_vm9, %v788_v60, %v530_v3  ;;  %v636_v12 = vpop.eup %635  ;;  %vm311_vm0 = vcmp.gt.f32.partialorder %v840_v54, 0.0  ;;  %vm319_vm1 = vcmp.gt.f32.partialorder %v301_v50, 0.0 }
 0x11a   :  { %v562_v13 = vpack.c.bf16 %v395_v10, %v395_v10  ;;  %v638_v15 = vpop.eup %637  ;;  %v523_v26 = vadd.f32 -1.0, %v636_v12  ;;  %647 = vpow2.f32 %v350_v14  ;;  %v366_v16 = vmul.f32 1.442695, %v335_v59 }
 0x11b   :  { %468 = vst.msk [vmem:[%s918_s3 + $0xc] sm:$0xf] %vm464_vm2, %v554_v9  ;;  %v531_v60 = vadd.f32 -1.0, %v638_v15 }
 0x11c   :  { %476 = vst.msk [vmem:[%s918_s3 + $0x2c] sm:$0xf] %vm464_vm2, %v562_v13  ;;  %v388_v17 = vsel %vm308_vm10, %v793_v6, %v523_v26  ;;  %v640_v18 = vpop.eup %639  ;;  %649 = vpow2.f32 %v366_v16 }
 0x11d   :  { %v555_v19 = vpack.c.bf16 %v388_v17, %v388_v17  ;;  %v396_v20 = vsel %vm316_vm11, %v796_v7, %v531_v60  ;;  %v524_v23 = vadd.f32 -1.0, %v640_v18 }
 0x11e   :  { %v563_v22 = vpack.c.bf16 %v396_v20, %v396_v20  ;;  %v642_v24 = vpop.eup %641 }
 0x11f   :  { %469 = vst.msk [vmem:[%s918_s3 + $0x10] sm:$0xf] %vm464_vm2, %v555_v19  ;;  %v389_v6 = vsel %vm309_vm12, %v805_v21, %v524_v23  ;;  %v532_v25 = vadd.f32 -1.0, %v642_v24 }
 0x120   :  { %477 = vst.msk [vmem:[%s918_s3 + $0x30] sm:$0xf] %vm464_vm2, %v563_v22  ;;  %v556_v7 = vpack.c.bf16 %v389_v6, %v389_v6 }
 0x121   :  { %v644_v27 = vpop.eup %643  ;;  %v397_v28 = vsel %vm317_vm13, %v816_v34, %v532_v25 }
 0x122   :  { %470 = vst.msk [vmem:[%s918_s3 + $0x14] sm:$0xf] %vm464_vm2, %v556_v7  ;;  %v564_v31 = vpack.c.bf16 %v397_v28, %v397_v28  ;;  %v525_v32 = vadd.f32 -1.0, %v644_v27  ;;  %v646_v29 = vpop.eup %645 }
 0x123   :  { %v533_v30 = vadd.f32 -1.0, %v646_v29 }
 0x124   :  { %v648_v33 = vpop.eup %647  ;;  %478 = vst.msk [vmem:[%s918_s3 + $0x34] sm:$0xf] %vm464_vm2, %v564_v31  ;;  %v390_v21 = vsel %vm310_vm14, %v830_v40, %v525_v32 }
 0x125   :  { %v557_v34 = vpack.c.bf16 %v390_v21, %v390_v21  ;;  %v526_v35 = vadd.f32 -1.0, %v648_v33  ;;  %v398_v37 = vsel %vm318_vm15, %v833_v47, %v533_v30 }
 0x126   :  { %v650_v36 = vpop.eup %649  ;;  %v565_v38 = vpack.c.bf16 %v398_v37, %v398_v37 }
 0x127   :  { %471 = vst.msk [vmem:[%s918_s3 + $0x18] sm:$0xf] %vm464_vm2, %v557_v34  ;;  %v391_v41 = vsel %vm311_vm0, %v840_v54, %v526_v35  ;;  %v534_v39 = vadd.f32 -1.0, %v650_v36 }
 0x128   :  { %v558_v42 = vpack.c.bf16 %v391_v41, %v391_v41  ;;  %479 = vst.msk [vmem:[%s918_s3 + $0x38] sm:$0xf] %vm464_vm2, %v565_v38 }
 0x129   :  { %v399_v43 = vsel %vm319_vm1, %v301_v50, %v534_v39 }
 0x12a   :  { %472 = vst.msk [vmem:[%s918_s3 + $0x1c] sm:$0xf] %vm464_vm2, %v558_v42  ;;  %v566_v44 = vpack.c.bf16 %v399_v43, %v399_v43 }
 0x12c   :  { %480 = vst.msk [vmem:[%s918_s3 + $0x3c] sm:$0xf] %vm464_vm2, %v566_v44 }

// kernel: discriminator_forward.20
= control target key start
LH: loop header
LB: loop body
LE: loop exit
PB: predicated region body
PF: predicated region fallthrough
CT: control target
= control target key end

     0   :  { %s728_s15 = smov 0   ;;  %s801_s0 = inlined_call_operand.vmem [shape: bf16[128,144], index: 0, kind: input, shape index: {}]   ;;  %s802_s1 = inlined_call_operand.vmem [shape: bf16[144,24], index: 1, kind: input, shape index: {}]   ;;  %s803_s2 = inlined_call_operand.vmem [shape: f32[1,24], index: 2, kind: input, shape index: {}]   ;;  %s804_s3 = inlined_call_operand.vmem [shape: bf16[16,64], index: 3, kind: input, shape index: {}]   ;;  %s805_s4 = inlined_call_operand.vmem [shape: bf16[32,24], index: 4, kind: output, shape index: {}]  }
   0x1 LB: > { %s577_s16 = sadd.s32 4294967295, %s698_s15   ;;  %p581_p0 = scmp.ge.s32.totalorder %s698_s15, 1  ;;  %s698_s15 = sphi %s728_s15, %s14_s15  }
   0x2   : > { %p164_p1 = scmp.lt.s32.totalorder %s698_s15, 3 }
   0x4   : > { %p165_p2 = pnand %p581_p0, %p164_p1 }
   0x5   : > { %v654_v0 = vld [vmem:[%s802_s1] sm:$0xff] (!%p165_p2)   ;;  %v700_v1 = vmov (!%p165_p2), 0   ;;  %s582_s19 = sshll.u32 (!%p165_p2), %s577_s16, 3  ;;  %v655_v2 = vld [vmem:[%s802_s1 + $0x8] sm:$0xff] (!%p165_p2)   ;;  %v656_v3 = vld [vmem:[%s802_s1 + $0x10] sm:$0xff] (!%p165_p2)   ;;  %vm328_vm0 = vcmask (!%p165_p2), 130048  }
   0x6   : > { %168 = sbr.rel (%p165_p2) target bundleno = 522 (0x20a), region = 36  ;;  %341 = vmatprep.subr.bf16.mxu0 (!%p165_p2), %v700_v1  ;;  %p192_p3 = scmp.lt.s32.totalorder (!%p165_p2), %s582_s19, 15  ;;  %v657_v4 = vld [vmem:[%s802_s1 + $0x18] sm:$0xff] (!%p165_p2)   ;;  %v658_v6 = vld [vmem:[%s802_s1 + $0x20] sm:$0xff] (!%p165_p2)   ;;  %v659_v7 = vld [vmem:[%s802_s1 + $0x28] sm:$0xff] (!%p165_p2)   ;;  %v701_v18 = vmov (!%p165_p2), 0.0  }
   0x7   : > { %342 = vmatpush1.bf16.msra.mxu0 (!%p165_p2), %v654_v0  ;;  %v660_v8 = vld [vmem:[%s802_s1 + $0x30] sm:$0xff] (!%p165_p2)   ;;  %v661_v9 = vld [vmem:[%s802_s1 + $0x38] sm:$0xff] (!%p165_p2)   ;;  %v662_v10 = vld [vmem:[%s802_s1 + $0x40] sm:$0xff] (!%p165_p2)   ;;  %631 = vmatprep.subr.bf16.mxu1 (!%p165_p2), %v701_v18  ;;  %vm702_vm1 = vmmov (!%p165_p2), 0   ;;  %vm465_vm10 = vcmask (!%p165_p2), 523264   ;;  %s585_s20 = sshll.u32 (!%p165_p2), %s577_s16, 1 }
   0x8   : > { %343 = vmatprep.subr.bf16.mxu0 (!%p165_p2), %v700_v1  ;;  %639 = vmatprep.mubr.msk.bf16.mxu1 (!%p165_p2), %vm702_vm1, %v701_v18  ;;  %v587_v19 = vld [vmem:[%s803_s2] ss:$0 sm:$0xff] (!%p165_p2)  ;;  %p199_p4 = scmp.lt.s32.totalorder (!%p165_p2), %s585_s20, 3  ;;  %vm518_vm11 = vcmask (!%p165_p2), 191488  }
   0xb   : > { %344 = vmatpush1.bf16.msra.mxu0 (!%p165_p2), %v655_v2 }
   0xc   : > { %345 = vmatprep.subr.bf16.mxu0 (!%p165_p2), %v700_v1 }
   0xd   : > { %s807_s19 = smov (!%p192_p3, %s582_s19), 15  ;;  %s809_s20 = smov (!%p199_p4, %s585_s20), 3 }
   0xe   : > { %s623_s24 = sshll.u32 %s807_s19, 3  ;;  %s586_s21 = sshll.u32 %s809_s20, 2 }
   0xf   : > { %s750_s27 = scalar_lea.vmem %s801_s0, %s623_s24  ;;  %346 = vmatpush1.bf16.msra.mxu0 %v656_v3  ;;  %s202_s24 = scalar_lea.vmem %s805_s4, %s586_s21 }
  0x10   : > { %v665_v5 = vld [vmem:[%s750_s27 + $0x4] ss:$8 sps:$4 sm:$0xff]   ;;  %347 = vmatprep.subr.bf16.mxu0 %v700_v1  ;;  %v663_v11 = vld [vmem:[%s750_s27] ss:$8 sps:$4 sm:$0xff]   ;;  %v666_v12 = vld [vmem:[%s750_s27 + $0x14] ss:$8 sps:$4 sm:$0xff]  }
  0x11   : > { %605 = vmatprep.mubr.msk.bf16.mxu0 %vm328_vm0, %v665_v5  ;;  %v668_v13 = vld [vmem:[%s750_s27 + $0x10] ss:$8 sps:$4 sm:$0xff]   ;;  %v669_v14 = vld [vmem:[%s750_s27 + $0x24] ss:$8 sps:$4 sm:$0xff]   ;;  %v671_v15 = vld [vmem:[%s750_s27 + $0x20] ss:$8 sps:$4 sm:$0xff]  }
  0x12   : > { %v672_v16 = vld [vmem:[%s750_s27 + $0x34] ss:$8 sps:$4 sm:$0xff]   ;;  %v674_v17 = vld [vmem:[%s750_s27 + $0x30] ss:$8 sps:$4 sm:$0xff]  }
  0x13   : > { %348 = vmatpush1.bf16.msra.mxu0 %v657_v4 }
  0x14   : > { %349 = vmatprep.subr.bf16.mxu0 %v700_v1 }
  0x17   : > { %350 = vmatpush1.bf16.msra.mxu0 %v658_v6 }
  0x18   : > { %351 = vmatprep.subr.bf16.mxu0 %v700_v1 }
  0x1b   : > { %352 = vmatpush1.bf16.msra.mxu0 %v659_v7 }
  0x1c   : > { %353 = vmatprep.subr.bf16.mxu0 %v700_v1 }
  0x1f   : > { %354 = vmatpush1.bf16.msra.mxu0 %v660_v8 }
  0x20   : > { %355 = vmatprep.subr.bf16.mxu0 %v700_v1 }
  0x23   : > { %356 = vmatpush1.bf16.msra.mxu0 %v661_v9 }
  0x24   : > { %357 = vmatprep.subr.bf16.mxu0 %v700_v1 }
  0x27   : > { %358 = vmatpush1.bf16.msra.mxu0 %v662_v10 }
  0x2a   : > { %374 = vmatmul.mubr.bf16.vlgmr.msra.gmra.mrb[0].mxu0 %v663_v11 }
  0x2b   : > { %606 = vmatprep.mubr.msk.bf16.mxu0 %vm328_vm0, %v666_v12 }
  0x32   : > { %382 = vmatmul.mubr.bf16.gmra.mrb[4].mxu0 %v668_v13 }
  0x33   : > { %607 = vmatprep.mubr.msk.bf16.mxu0 %vm328_vm0, %v669_v14 }
  0x3a   : > { %390 = vmatmul.mubr.bf16.gmra.mrb[8].mxu0 %v671_v15 }
  0x3b   : > { %608 = vmatprep.mubr.msk.bf16.mxu0 %vm328_vm0, %v672_v16 }
  0x42   : > { %398 = vmatmul.mubr.bf16.gmra.mrb[12].mxu0 %v674_v17 }
  0xfd   : > { %v375_v20 = vpop.f32.mrb[0].mxu0 }
  0xfe   : > { %v376_v21 = vadd.f32 %v587_v19, %v375_v20  ;;  %v377_v22 = vpop.f32.mrb[1].mxu0 }
  0xff   : > { %v378_v23 = vpop.f32.mrb[2].mxu0 }
 0x100   : > { %v414_v24 = vmin.f32 %v376_v21, 0.0  ;;  %v379_v25 = vadd.f32 %v587_v19, %v378_v23  ;;  %v380_v26 = vpop.f32.mrb[3].mxu0  ;;  %vm406_vm2 = vcmp.gt.f32.partialorder %v376_v21, 0.0 }
 0x102   : > { %v422_v27 = vmul.f32 1.442695, %v414_v24  ;;  %v415_v28 = vmin.f32 %v379_v25, 0.0  ;;  %vm407_vm3 = vcmp.gt.f32.partialorder %v379_v25, 0.0 }
 0x104   : > { %676 = vpow2.f32 %v422_v27  ;;  %v424_v29 = vmul.f32 1.442695, %v415_v28 }
 0x105   : > { %v383_v30 = vpop.f32.mrb[4].mxu0 }
 0x106   : > { %678 = vpow2.f32 %v424_v29  ;;  %v384_v31 = vadd.f32 %v587_v19, %v383_v30  ;;  %v385_v32 = vpop.f32.mrb[5].mxu0 }
 0x107   : > { %v386_v33 = vpop.f32.mrb[6].mxu0 }
 0x108   : > { %v416_v34 = vmin.f32 %v384_v31, 0.0  ;;  %v387_v35 = vadd.f32 %v587_v19, %v386_v33  ;;  %v388_v36 = vpop.f32.mrb[7].mxu0  ;;  %vm408_vm4 = vcmp.gt.f32.partialorder %v384_v31, 0.0 }
 0x10a   : > { %v426_v37 = vmul.f32 1.442695, %v416_v34  ;;  %v417_v38 = vmin.f32 %v387_v35, 0.0  ;;  %vm409_vm5 = vcmp.gt.f32.partialorder %v387_v35, 0.0 }
 0x10c   : > { %680 = vpow2.f32 %v426_v37  ;;  %v428_v39 = vmul.f32 1.442695, %v417_v38 }
 0x10d   : > { %v391_v40 = vpop.f32.mrb[8].mxu0 }
 0x10e   : > { %v677_v41 = vpop.eup %676  ;;  %682 = vpow2.f32 %v428_v39  ;;  %v392_v42 = vadd.f32 %v587_v19, %v391_v40  ;;  %v393_v43 = vpop.f32.mrb[9].mxu0 }
 0x10f   : > { %v394_v44 = vpop.f32.mrb[10].mxu0  ;;  %v609_v45 = vadd.f32 -1.0, %v677_v41 }
 0x110   : > { %v679_v46 = vpop.eup %678  ;;  %v418_v47 = vmin.f32 %v392_v42, 0.0  ;;  %v395_v48 = vadd.f32 %v587_v19, %v394_v44  ;;  %v396_v49 = vpop.f32.mrb[11].mxu0  ;;  %vm410_vm6 = vcmp.gt.f32.partialorder %v392_v42, 0.0 }
 0x111   : > { %v610_v50 = vadd.f32 -1.0, %v679_v46  ;;  %v446_v53 = vsel %vm406_vm2, %v376_v21, %v609_v45 }
 0x112   : > { %v430_v51 = vmul.f32 1.442695, %v418_v47  ;;  %v419_v52 = vmin.f32 %v395_v48, 0.0  ;;  %vm411_vm7 = vcmp.gt.f32.partialorder %v395_v48, 0.0 }
 0x113   : > { %v447_v54 = vsel %vm407_vm3, %v379_v25, %v610_v50  ;;  %v675_v25 = vld [vmem:[%s804_s3] sm:$0xff]  }
 0x114   : > { %684 = vpow2.f32 %v430_v51  ;;  %v432_v55 = vmul.f32 1.442695, %v419_v52  ;;  %v456_v56 = vpack.c.bf16 %v447_v54, %v446_v53 }
 0x115   : > { %v399_v57 = vpop.f32.mrb[12].mxu0 }
 0x116   : > { %v681_v58 = vpop.eup %680  ;;  %686 = vpow2.f32 %v432_v55  ;;  %v400_v59 = vadd.f32 %v587_v19, %v399_v57  ;;  %v401_v60 = vpop.f32.mrb[13].mxu0  ;;  %632 = vmatpush3.bf16.msra.mxu1 %v456_v56 }
 0x117   : > { %v611_v61 = vadd.f32 -1.0, %v681_v58  ;;  %v402_v62 = vpop.f32.mrb[14].mxu0  ;;  %633 = vmatprep.subr.bf16.mxu1 %v701_v18 }
 0x118   : > { %v683_v63 = vpop.eup %682  ;;  %v420_v0 = vmin.f32 %v400_v59, 0.0  ;;  %v403_v1 = vadd.f32 %v587_v19, %v402_v62  ;;  %v404_v2 = vpop.f32.mrb[15].mxu0  ;;  %vm412_vm8 = vcmp.gt.f32.partialorder %v400_v59, 0.0 }
 0x119   : > { %v612_v3 = vadd.f32 -1.0, %v683_v63  ;;  %v448_v6 = vsel %vm408_vm4, %v384_v31, %v611_v61 }
 0x11a   : > { %v434_v4 = vmul.f32 1.442695, %v420_v0  ;;  %v421_v5 = vmin.f32 %v403_v1, 0.0  ;;  %vm413_vm9 = vcmp.gt.f32.partialorder %v403_v1, 0.0 }
 0x11b   : > { %v449_v7 = vsel %vm409_vm5, %v387_v35, %v612_v3 }
 0x11c   : > { %688 = vpow2.f32 %v434_v4  ;;  %v436_v8 = vmul.f32 1.442695, %v421_v5  ;;  %v457_v9 = vpack.c.bf16 %v449_v7, %v448_v6 }
 0x11e   : > { %v685_v10 = vpop.eup %684  ;;  %690 = vpow2.f32 %v436_v8  ;;  %634 = vmatpush3.bf16.msra.mxu1 %v457_v9 }
 0x11f   : > { %v613_v11 = vadd.f32 -1.0, %v685_v10  ;;  %635 = vmatprep.subr.bf16.mxu1 %v701_v18 }
 0x120   : > { %v687_v12 = vpop.eup %686 }
 0x121   : > { %v614_v13 = vadd.f32 -1.0, %v687_v12  ;;  %v450_v14 = vsel %vm410_vm6, %v392_v42, %v613_v11 }
 0x123   : > { %v451_v15 = vsel %vm411_vm7, %v395_v48, %v614_v13 }
 0x124   : > { %v458_v16 = vpack.c.bf16 %v451_v15, %v450_v14 }
 0x126   : > { %v689_v17 = vpop.eup %688  ;;  %636 = vmatpush3.bf16.msra.mxu1 %v458_v16 }
 0x127   : > { %v615_v19 = vadd.f32 -1.0, %v689_v17  ;;  %637 = vmatprep.subr.bf16.mxu1 %v701_v18 }
 0x128   : > { %v691_v20 = vpop.eup %690 }
 0x129   : > { %v616_v21 = vadd.f32 -1.0, %v691_v20  ;;  %v452_v22 = vsel %vm412_vm8, %v400_v59, %v615_v19 }
 0x12b   : > { %v453_v23 = vsel %vm413_vm9, %v403_v1, %v616_v21 }
 0x12c   : > { %v459_v24 = vpack.c.bf16 %v453_v23, %v452_v22 }
 0x12e   : > { %638 = vmatpush3.bf16.msra.mxu1 %v459_v24 }
 0x131   : > { %640 = vmatmul.mubr.msk.bf16.vlgmr.msra.gmra.mrb[0].mxu1 %vm465_vm10, %v675_v25 }
 0x204   : > { %v503_v18 = vpop.f32.mrb[0].mxu1 }
 0x205   : > { %v624_v26 = vpack.c.bf16 %v503_v18, %v503_v18  ;;  %v641_v27 = vpop.f32.mrb[1].mxu1 }
 0x206   : > { %v506_v28 = vpop.f32.mrb[2].mxu1 }
 0x207   : > { %519 = vst.msk [vmem:[%s202_s24] sm:$0xf] %vm518_vm11, %v624_v26  ;;  %v625_v29 = vpack.c.bf16 %v506_v28, %v506_v28  ;;  %v642_v30 = vpop.f32.mrb[3].mxu1 }
 0x209   : > { %520 = vst.msk [vmem:[%s202_s24 + $0x4] sm:$0xf] %vm518_vm11, %v625_v29 }
 0x20a PF: > { %s14_s15 = sadd.s32 1, %s698_s15  }
 0x20b   : > { %p11_p5 = scmp.ge.s32.totalorder %s14_s15, 4  }
 0x20d   :  { %13 = sbr.rel (!%p11_p5) target bundleno = 1 (0x1), region = 66 }

// kernel: discriminator_forward.21
= control target key start
LH: loop header
LB: loop body
LE: loop exit
PB: predicated region body
PF: predicated region fallthrough
CT: control target
= control target key end

     0   :  { %v351_v0 = vmov 0   ;;  %vm152_vm0 = vcmask 719872   ;;  %vm159_vm1 = vcmask 1043456   ;;  %vm252_vm3 = vcmask 191488   ;;  %s473_s1 = inlined_call_operand.vmem [shape: bf16[216,24], index: 1, kind: input, shape index: {}]   ;;  %s474_s0 = inlined_call_operand.vmem [shape: bf16[32,216], index: 0, kind: input, shape index: {}]   ;;  %s475_s2 = inlined_call_operand.vmem [shape: f32[1,24], index: 2, kind: input, shape index: {}]   ;;  %s476_s3 = inlined_call_operand.vmem [shape: bf16[32,24], index: 3, kind: output, shape index: {}]  }
   0x1   :  { %163 = vmatprep.subr.bf16.mxu0 %v351_v0  ;;  %294 = vmatprep.subr.bf16.mxu1 %v351_v0  ;;  %v323_v1 = vld [vmem:[%s473_s1] sm:$0xff]   ;;  %v324_v2 = vld [vmem:[%s473_s1 + $0x8] sm:$0xff]   ;;  %v325_v3 = vld [vmem:[%s473_s1 + $0x10] sm:$0xff]  }
   0x2   :  { %164 = vmatpush1.bf16.msra.mxu0 %v323_v1  ;;  %308 = vmatpush1.bf16.msra.mxu1 %v323_v1  ;;  %v326_v4 = vld [vmem:[%s473_s1 + $0x18] sm:$0xff]   ;;  %v327_v5 = vld [vmem:[%s473_s1 + $0x20] sm:$0xff]   ;;  %v328_v8 = vld [vmem:[%s473_s1 + $0x28] sm:$0xff]  }
   0x3   :  { %165 = vmatprep.subr.bf16.mxu0 %v351_v0  ;;  %295 = vmatprep.subr.bf16.mxu1 %v351_v0  ;;  %v339_v6 = vld [vmem:[%s474_s0 + $0x4] ss:$8 sps:$4 sm:$0xff]   ;;  %v342_v7 = vld [vmem:[%s474_s0 + $0x14] ss:$8 sps:$4 sm:$0xff]   ;;  %v336_v16 = vld [vmem:[%s473_s1 + $0x68] ss:$0 sps:$4 sm:$0xff]  }
   0x4   :  { %280 = vmatprep.mubr.msk.bf16.mxu0 %vm152_vm0, %v339_v6  ;;  %281 = vmatprep.mubr.msk.bf16.mxu1 %vm152_vm0, %v342_v7  ;;  %v329_v9 = vld [vmem:[%s473_s1 + $0x30] sm:$0xff]   ;;  %v330_v10 = vld [vmem:[%s473_s1 + $0x38] sm:$0xff]   ;;  %v331_v11 = vld [vmem:[%s473_s1 + $0x40] sm:$0xff]   ;;  %v161_v17 = vsel %vm159_vm1, %v336_v16, 0 }
   0x5   :  { %v332_v12 = vld [vmem:[%s473_s1 + $0x48] sm:$0xff]   ;;  %v333_v13 = vld [vmem:[%s473_s1 + $0x50] sm:$0xff]   ;;  %v334_v14 = vld [vmem:[%s473_s1 + $0x58] sm:$0xff]  }
   0x6   :  { %166 = vmatpush1.bf16.msra.mxu0 %v324_v2  ;;  %309 = vmatpush1.bf16.msra.mxu1 %v324_v2  ;;  %v335_v15 = vld [vmem:[%s473_s1 + $0x60] sm:$0xff]   ;;  %v340_v19 = vld [vmem:[%s474_s0 + $0x10] ss:$8 sps:$4 sm:$0xff]  }
   0x7   :  { %167 = vmatprep.subr.bf16.mxu0 %v351_v0  ;;  %296 = vmatprep.subr.bf16.mxu1 %v351_v0  ;;  %v337_v18 = vld [vmem:[%s474_s0] ss:$8 sps:$4 sm:$0xff]  }
   0x8   :  { %v261_v20 = vld [vmem:[%s475_s2] ss:$0 sm:$0xff] }
   0xa   :  { %168 = vmatpush1.bf16.msra.mxu0 %v325_v3  ;;  %310 = vmatpush1.bf16.msra.mxu1 %v325_v3 }
   0xb   :  { %169 = vmatprep.subr.bf16.mxu0 %v351_v0  ;;  %297 = vmatprep.subr.bf16.mxu1 %v351_v0 }
   0xe   :  { %170 = vmatpush1.bf16.msra.mxu0 %v326_v4  ;;  %311 = vmatpush1.bf16.msra.mxu1 %v326_v4 }
   0xf   :  { %171 = vmatprep.subr.bf16.mxu0 %v351_v0  ;;  %298 = vmatprep.subr.bf16.mxu1 %v351_v0 }
  0x12   :  { %172 = vmatpush1.bf16.msra.mxu0 %v327_v5  ;;  %312 = vmatpush1.bf16.msra.mxu1 %v327_v5 }
  0x13   :  { %173 = vmatprep.subr.bf16.mxu0 %v351_v0  ;;  %299 = vmatprep.subr.bf16.mxu1 %v351_v0 }
  0x16   :  { %174 = vmatpush1.bf16.msra.mxu0 %v328_v8  ;;  %313 = vmatpush1.bf16.msra.mxu1 %v328_v8 }
  0x17   :  { %175 = vmatprep.subr.bf16.mxu0 %v351_v0  ;;  %300 = vmatprep.subr.bf16.mxu1 %v351_v0 }
  0x1a   :  { %176 = vmatpush1.bf16.msra.mxu0 %v329_v9  ;;  %314 = vmatpush1.bf16.msra.mxu1 %v329_v9 }
  0x1b   :  { %177 = vmatprep.subr.bf16.mxu0 %v351_v0  ;;  %301 = vmatprep.subr.bf16.mxu1 %v351_v0 }
  0x1e   :  { %178 = vmatpush1.bf16.msra.mxu0 %v330_v10  ;;  %315 = vmatpush1.bf16.msra.mxu1 %v330_v10 }
  0x1f   :  { %179 = vmatprep.subr.bf16.mxu0 %v351_v0  ;;  %302 = vmatprep.subr.bf16.mxu1 %v351_v0 }
  0x22   :  { %180 = vmatpush1.bf16.msra.mxu0 %v331_v11  ;;  %316 = vmatpush1.bf16.msra.mxu1 %v331_v11 }
  0x23   :  { %181 = vmatprep.subr.bf16.mxu0 %v351_v0  ;;  %303 = vmatprep.subr.bf16.mxu1 %v351_v0 }
  0x26   :  { %182 = vmatpush1.bf16.msra.mxu0 %v332_v12  ;;  %317 = vmatpush1.bf16.msra.mxu1 %v332_v12 }
  0x27   :  { %183 = vmatprep.subr.bf16.mxu0 %v351_v0  ;;  %304 = vmatprep.subr.bf16.mxu1 %v351_v0 }
  0x2a   :  { %184 = vmatpush1.bf16.msra.mxu0 %v333_v13  ;;  %318 = vmatpush1.bf16.msra.mxu1 %v333_v13 }
  0x2b   :  { %185 = vmatprep.subr.bf16.mxu0 %v351_v0  ;;  %305 = vmatprep.subr.bf16.mxu1 %v351_v0 }
  0x2e   :  { %186 = vmatpush1.bf16.msra.mxu0 %v334_v14  ;;  %319 = vmatpush1.bf16.msra.mxu1 %v334_v14 }
  0x2f   :  { %187 = vmatprep.subr.bf16.mxu0 %v351_v0  ;;  %306 = vmatprep.subr.bf16.mxu1 %v351_v0 }
  0x32   :  { %188 = vmatpush1.bf16.msra.mxu0 %v335_v15  ;;  %320 = vmatpush1.bf16.msra.mxu1 %v335_v15 }
  0x33   :  { %189 = vmatprep.subr.bf16.mxu0 %v351_v0  ;;  %307 = vmatprep.subr.bf16.mxu1 %v351_v0 }
  0x36   :  { %190 = vmatpush1.bf16.msra.mxu0 %v161_v17  ;;  %321 = vmatpush1.bf16.msra.mxu1 %v161_v17 }
  0x39   :  { %196 = vmatmul.mubr.bf16.vlgmr.msra.gmra.mrb[0].mxu0 %v337_v18  ;;  %204 = vmatmul.mubr.bf16.vlgmr.msra.gmra.mrb[0].mxu1 %v340_v19 }
 0x10c   :  { %v197_v21 = vpop.f32.mrb[0].mxu0  ;;  %v205_v22 = vpop.f32.mrb[0].mxu1 }
 0x10d   :  { %v198_v23 = vadd.f32 %v261_v20, %v197_v21  ;;  %v206_v24 = vadd.f32 %v261_v20, %v205_v22  ;;  %v199_v25 = vpop.f32.mrb[1].mxu0  ;;  %v207_v26 = vpop.f32.mrb[1].mxu1 }
 0x10e   :  { %v200_v27 = vpop.f32.mrb[2].mxu0  ;;  %v208_v28 = vpop.f32.mrb[2].mxu1 }
 0x10f   :  { %v216_v29 = vmin.f32 %v198_v23, 0.0  ;;  %v218_v30 = vmin.f32 %v206_v24, 0.0  ;;  %v202_v31 = vpop.f32.mrb[3].mxu0  ;;  %v210_v32 = vpop.f32.mrb[3].mxu1  ;;  %v201_v33 = vadd.f32 %v261_v20, %v200_v27  ;;  %v209_v34 = vadd.f32 %v261_v20, %v208_v28 }
 0x110   :  { %vm212_vm2 = vcmp.gt.f32.partialorder %v198_v23, 0.0  ;;  %vm214_vm4 = vcmp.gt.f32.partialorder %v206_v24, 0.0 }
 0x111   :  { %v220_v35 = vmul.f32 1.442695, %v216_v29  ;;  %v224_v36 = vmul.f32 1.442695, %v218_v30  ;;  %v217_v37 = vmin.f32 %v201_v33, 0.0  ;;  %v219_v38 = vmin.f32 %v209_v34, 0.0 }
 0x112   :  { %vm213_vm5 = vcmp.gt.f32.partialorder %v201_v33, 0.0  ;;  %vm215_vm6 = vcmp.gt.f32.partialorder %v209_v34, 0.0 }
 0x113   :  { %343 = vpow2.f32 %v220_v35  ;;  %v222_v39 = vmul.f32 1.442695, %v217_v37  ;;  %v226_v40 = vmul.f32 1.442695, %v219_v38 }
 0x114   :  { %345 = vpow2.f32 %v224_v36 }
 0x115   :  { %347 = vpow2.f32 %v222_v39 }
 0x116   :  { %349 = vpow2.f32 %v226_v40 }
 0x11d   :  { %v344_v41 = vpop.eup %343 }
 0x11e   :  { %v346_v42 = vpop.eup %345  ;;  %v282_v43 = vadd.f32 -1.0, %v344_v41 }
 0x11f   :  { %v284_v44 = vadd.f32 -1.0, %v346_v42  ;;  %v348_v45 = vpop.eup %347 }
 0x120   :  { %v232_v46 = vsel %vm212_vm2, %v198_v23, %v282_v43  ;;  %v350_v47 = vpop.eup %349  ;;  %v283_v50 = vadd.f32 -1.0, %v348_v45 }
 0x121   :  { %v290_v48 = vpack.c.bf16 %v232_v46, %v232_v46  ;;  %v234_v49 = vsel %vm214_vm4, %v206_v24, %v284_v44  ;;  %v285_v52 = vadd.f32 -1.0, %v350_v47 }
 0x122   :  { %v292_v51 = vpack.c.bf16 %v234_v49, %v234_v49  ;;  %v233_v53 = vsel %vm213_vm5, %v201_v33, %v283_v50 }
 0x123   :  { %253 = vst.msk [vmem:[%s476_s3] sm:$0xf] %vm252_vm3, %v290_v48  ;;  %v291_v54 = vpack.c.bf16 %v233_v53, %v233_v53  ;;  %v235_v55 = vsel %vm215_vm6, %v209_v34, %v285_v52 }
 0x124   :  { %255 = vst.msk [vmem:[%s476_s3 + $0x8] sm:$0xf] %vm252_vm3, %v292_v51  ;;  %v293_v56 = vpack.c.bf16 %v235_v55, %v235_v55 }
 0x125   :  { %254 = vst.msk [vmem:[%s476_s3 + $0x4] sm:$0xf] %vm252_vm3, %v291_v54 }
 0x126   :  { %256 = vst.msk [vmem:[%s476_s3 + $0xc] sm:$0xf] %vm252_vm3, %v293_v56 }

// kernel: discriminator_forward.24
= control target key start
LH: loop header
LB: loop body
LE: loop exit
PB: predicated region body
PF: predicated region fallthrough
CT: control target
= control target key end

     0   :  { %v95_v0 = vmov 0.0   ;;  %vm96_vm0 = vmmov 0   ;;  %vm31_vm1 = vcmask 130048   ;;  %s129_s1 = inlined_call_operand.vmem [shape: bf16[16,128], index: 1, kind: input, shape index: {}]   ;;  %s130_s0 = inlined_call_operand.vmem [shape: bf16[2,16], index: 0, kind: input, shape index: {}]   ;;  %s131_s2 = inlined_call_operand.vmem [shape: f32[1,128], index: 2, kind: input, shape index: {}]   ;;  %s132_s3 = inlined_call_operand.vmem [shape: bf16[2,128], index: 3, kind: output, shape index: {}]  }
   0x1   :  { %86 = vmatprep.subr.bf16.mxu0 %v95_v0  ;;  %v94_v1 = vld [vmem:[%s129_s1] sm:$0xff]   ;;  %88 = vmatprep.mubr.msk.bf16.mxu0 %vm96_vm0, %v95_v0 }
   0x2   :  { %87 = vmatpush3.bf16.msra.mxu0 %v94_v1  ;;  %v15_v2 = vld [vmem:[%s130_s0] sm:$0x1] }
   0x3   :  { %v81_v3 = vld [vmem:[%s131_s2] ss:$0 sm:$0xff] }
   0x5   :  { %89 = vmatmul.mubr.msk.bf16.vlgmr.msra.gmra.mrb[0].mxu0 %vm31_vm1, %v15_v2 }
  0xd8   :  { %v69_v4 = vpop.f32.mrb[0].mxu0 }
  0xd9   :  { %v70_v5 = vadd.f32 %v81_v3, %v69_v4  ;;  %v90_v6 = vpop.f32.mrb[1].mxu0 }
  0xda   :  { %v72_v7 = vpop.f32.mrb[2].mxu0 }
  0xdb   :  { %v75_v8 = vpack.c.bf16 %v70_v5, %v70_v5  ;;  %v91_v9 = vpop.f32.mrb[3].mxu0 }
  0xdd   :  { %76 = vst [vmem:[%s132_s3] sm:$0x1] %v75_v8 }

// kernel: discriminator_forward.23
= control target key start
LH: loop header
LB: loop body
LE: loop exit
PB: predicated region body
PF: predicated region fallthrough
CT: control target
= control target key end

     0   :  { %v433_v1 = vmov 0.0   ;;  %vm434_vm0 = vmmov 0   ;;  %v435_v15 = vmov 1966171168   ;;  %v83_v17 = vlaneseq  ;;  %s546_s1 = inlined_call_operand.vmem [shape: bf16[384,16], index: 1, kind: input, shape index: {}]   ;;  %s547_s0 = inlined_call_operand.vmem [shape: bf16[2,384], index: 0, kind: input, shape index: {}]   ;;  %s548_s2 = inlined_call_operand.vmem [shape: f32[1,16], index: 2, kind: input, shape index: {}]   ;;  %s549_s3 = inlined_call_operand.vmem [shape: bf16[2,16], index: 3, kind: output, shape index: {}]  }
   0x1   :  { %v409_v0 = vld [vmem:[%s546_s1 + $0x40] sm:$0xff]   ;;  %386 = vmatprep.subr.bf16.mxu1 %v433_v1  ;;  %402 = vmatprep.mubr.msk.bf16.mxu1 %vm434_vm0, %v433_v1  ;;  %v412_v4 = vld [vmem:[%s546_s1 + $0x48] sm:$0xff]   ;;  %v415_v7 = vld [vmem:[%s546_s1 + $0x50] sm:$0xff]   ;;  %v81_v16 = vunpack.c.l.s4 %v435_v15  ;;  %vm323_vm1 = vcmask 122880  }
   0x2   :  { %v410_v2 = vld [vmem:[%s546_s1] sm:$0xff]   ;;  %355 = vmatprep.subr.bf16.mxu0 %v409_v0  ;;  %v413_v5 = vld [vmem:[%s546_s1 + $0x8] sm:$0xff]   ;;  %v416_v8 = vld [vmem:[%s546_s1 + $0x10] sm:$0xff]   ;;  %v84_v22 = vshrl.u32 %v83_v17, 7 }
   0x3   :  { %v411_v3 = vld [vmem:[%s546_s1 + $0x80] sm:$0xff]   ;;  %356 = vmatpush3.bf16.msra.mxu0 %v410_v2  ;;  %v414_v6 = vld [vmem:[%s546_s1 + $0x88] sm:$0xff]   ;;  %v417_v9 = vld [vmem:[%s546_s1 + $0x90] sm:$0xff]   ;;  %v82_v21 = vunpack.c.0.s8 %v81_v16 }
   0x4   :  { %387 = vmatpush3.bf16.msra.mxu1 %v411_v3  ;;  %357 = vmatprep.subr.bf16.mxu0 %v412_v4  ;;  %v418_v10 = vld [vmem:[%s546_s1 + $0x58] sm:$0xff]   ;;  %v421_v13 = vld [vmem:[%s546_s1 + $0x60] sm:$0xff]   ;;  %v424_v19 = vld [vmem:[%s546_s1 + $0x68] sm:$0xff]  }
   0x5   :  { %388 = vmatprep.subr.bf16.mxu1 %v433_v1  ;;  %v419_v11 = vld [vmem:[%s546_s1 + $0x18] sm:$0xff]   ;;  %v422_v14 = vld [vmem:[%s546_s1 + $0x20] sm:$0xff]   ;;  %v425_v20 = vld [vmem:[%s546_s1 + $0x28] sm:$0xff]   ;;  %v85_v26 = vsub.s32 %v82_v21, %v84_v22 }
   0x6   :  { %v420_v12 = vld [vmem:[%s546_s1 + $0x98] sm:$0xff]   ;;  %v423_v18 = vld [vmem:[%s546_s1 + $0xa0] sm:$0xff]   ;;  %v426_v23 = vld [vmem:[%s546_s1 + $0xa8] sm:$0xff]  }
   0x7   :  { %358 = vmatpush3.bf16.msra.mxu0 %v413_v5  ;;  %v427_v24 = vld [vmem:[%s546_s1 + $0x70] sm:$0xff]   ;;  %v330_v27 = vld.sshfl [vmem:[%s547_s0] sm:$0x13 pattern:$0x75316420]  ;;  %v430_v29 = vld [vmem:[%s546_s1 + $0x78] sm:$0xff]  }
   0x8   :  { %389 = vmatpush3.bf16.msra.mxu1 %v414_v6  ;;  %359 = vmatprep.subr.bf16.mxu0 %v415_v7  ;;  %v428_v25 = vld [vmem:[%s546_s1 + $0x30] sm:$0xff]   ;;  %v79_v30 = vcombine.high %v330_v27, %v330_v27  ;;  %v431_v32 = vld [vmem:[%s546_s1 + $0x38] sm:$0xff]   ;;  %v86_v33 = vrot.slane %v330_v27, %v85_v26  ;;  %v329_v38 = vld [vmem:[%s548_s2] ss:$0 sm:$0xff] }
   0x9   :  { %390 = vmatprep.subr.bf16.mxu1 %v433_v1  ;;  %v429_v28 = vld [vmem:[%s546_s1 + $0xb0] sm:$0xff]   ;;  %v432_v34 = vld [vmem:[%s546_s1 + $0xb8] sm:$0xff]  }
   0xa   :  { %v93_v31 = vrot.slane %v79_v30, %v85_v26  ;;  %v94_v35 = vcombine.high %v86_v33, %v86_v33 }
   0xb   :  { %360 = vmatpush3.bf16.msra.mxu0 %v416_v8 }
   0xc   :  { %391 = vmatpush3.bf16.msra.mxu1 %v417_v9  ;;  %361 = vmatprep.subr.bf16.mxu0 %v418_v10 }
   0xd   :  { %392 = vmatprep.subr.bf16.mxu1 %v433_v1  ;;  %274 = vmatprep.mubr.bf16.mxu0 %v93_v31 }
   0xf   :  { %362 = vmatpush3.bf16.msra.mxu0 %v419_v11 }
  0x10   :  { %393 = vmatpush3.bf16.msra.mxu1 %v420_v12  ;;  %363 = vmatprep.subr.bf16.mxu0 %v421_v13 }
  0x11   :  { %394 = vmatprep.subr.bf16.mxu1 %v433_v1 }
  0x13   :  { %364 = vmatpush3.bf16.msra.mxu0 %v422_v14 }
  0x14   :  { %395 = vmatpush3.bf16.msra.mxu1 %v423_v18  ;;  %365 = vmatprep.subr.bf16.mxu0 %v424_v19 }
  0x15   :  { %396 = vmatprep.subr.bf16.mxu1 %v433_v1 }
  0x17   :  { %366 = vmatpush3.bf16.msra.mxu0 %v425_v20 }
  0x18   :  { %397 = vmatpush3.bf16.msra.mxu1 %v426_v23  ;;  %367 = vmatprep.subr.bf16.mxu0 %v427_v24 }
  0x19   :  { %398 = vmatprep.subr.bf16.mxu1 %v433_v1 }
  0x1b   :  { %368 = vmatpush3.bf16.msra.mxu0 %v428_v25 }
  0x1c   :  { %399 = vmatpush3.bf16.msra.mxu1 %v429_v28  ;;  %369 = vmatprep.subr.bf16.mxu0 %v430_v29 }
  0x1d   :  { %400 = vmatprep.subr.bf16.mxu1 %v433_v1 }
  0x1f   :  { %370 = vmatpush3.bf16.msra.mxu0 %v431_v32 }
  0x20   :  { %401 = vmatpush3.bf16.msra.mxu1 %v432_v34 }
  0x22   :  { %275 = vmatmul.mubr.bf16.vlgmr.msra.gmra.mrb[0].mxu0 %v86_v33 }
  0x23   :  { %403 = vmatmul.mubr.bf16.vlgmr.msra.gmra.mrb[0].mxu1 %v94_v35 }
  0xf5   :  { %v371_v36 = vpop.f32.mrb[0].mxu0 }
  0xf6   :  { %v372_v37 = vpop.f32.mrb[1].mxu0  ;;  %v316_v39 = vpop.f32.mrb[0].mxu1 }
  0xf7   :  { %v373_v40 = vadd.f32 %v372_v37, %v371_v36  ;;  %v374_v41 = vpop.f32.mrb[2].mxu0  ;;  %v404_v42 = vpop.f32.mrb[1].mxu1 }
  0xf8   :  { %v375_v43 = vpop.f32.mrb[3].mxu0  ;;  %v319_v44 = vpop.f32.mrb[2].mxu1 }
  0xf9   :  { %v277_v45 = vadd.f32 %v373_v40, %v329_v38  ;;  %v405_v46 = vpop.f32.mrb[3].mxu1 }
  0xfb   :  { %v317_v47 = vadd.f32 %v316_v39, %v277_v45 }
  0xfd   :  { %v322_v48 = vpack.c.bf16 %v317_v47, %v317_v47 }
  0xff   :  { %324 = vst.msk [vmem:[%s549_s3] sm:$0x1] %vm323_vm1, %v322_v48 }

// kernel: discriminator_forward.25
= control target key start
LH: loop header
LB: loop body
LE: loop exit
PB: predicated region body
PF: predicated region fallthrough
CT: control target
= control target key end

     0   :  { %vm72_vm0 = vcmask 588800   ;;  %vm79_vm1 = vcmask 1043456   ;;  %vm172_vm3 = vcmask 60416   ;;  %s300_s1 = inlined_call_operand.vmem [shape: bf16[72,8], index: 1, kind: input, shape index: {}]   ;;  %s301_s0 = inlined_call_operand.vmem [shape: bf16[32,72], index: 0, kind: input, shape index: {}]   ;;  %s302_s2 = inlined_call_operand.vmem [shape: f32[1,8], index: 2, kind: input, shape index: {}]   ;;  %s303_s3 = inlined_call_operand.vmem [shape: bf16[32,8], index: 3, kind: output, shape index: {}]  }
   0x1   :  { %v225_v0 = vld [vmem:[%s300_s1] sm:$0xff]   ;;  %v226_v1 = vld [vmem:[%s300_s1 + $0x8] sm:$0xff]   ;;  %v227_v2 = vld [vmem:[%s300_s1 + $0x10] sm:$0xff]  }
   0x2   :  { %210 = vmatprep.subr.bf16.mxu0 %v225_v0  ;;  %v230_v3 = vld [vmem:[%s301_s0] sm:$0xff]   ;;  %v228_v4 = vld [vmem:[%s300_s1 + $0x18] sm:$0xff]   ;;  %v231_v7 = vld [vmem:[%s301_s0 + $0x8] sm:$0xff]  }
   0x3   :  { %211 = vmatpush3.bf16.msra.mxu0 %v225_v0  ;;  %220 = vmatprep.mubr.msk.bf16.mxu0 %vm72_vm0, %v230_v3  ;;  %v229_v5 = vld [vmem:[%s300_s1 + $0x20] ss:$0 sps:$4 sm:$0xff]  }
   0x4   :  { %212 = vmatprep.subr.bf16.mxu0 %v226_v1  ;;  %v81_v6 = vsel %vm79_vm1, %v229_v5, 0  ;;  %v181_v8 = vld [vmem:[%s302_s2] ss:$0 sm:$0xff] }
   0x7   :  { %213 = vmatpush3.bf16.msra.mxu0 %v226_v1 }
   0x8   :  { %214 = vmatprep.subr.bf16.mxu0 %v227_v2 }
   0xb   :  { %215 = vmatpush3.bf16.msra.mxu0 %v227_v2 }
   0xc   :  { %216 = vmatprep.subr.bf16.mxu0 %v228_v4 }
   0xf   :  { %217 = vmatpush3.bf16.msra.mxu0 %v228_v4 }
  0x10   :  { %224 = vmatprep.subr.msk.bf16.mxu0 %vm79_vm1, %v229_v5 }
  0x13   :  { %219 = vmatpush3.bf16.msra.mxu0 %v81_v6 }
  0x16   :  { %221 = vmatmul.mubr.msk.bf16.vlgmr.msra.gmra.mrb[0].mxu0 %vm72_vm0, %v231_v7 }
  0xe9   :  { %v222_v9 = vpop.f32.mrb[0].mxu0 }
  0xea   :  { %v126_v10 = vadd.f32 %v222_v9, %v181_v8  ;;  %v117_v11 = vpop.f32.mrb[1].mxu0 }
  0xeb   :  { %v118_v12 = vadd.f32 %v181_v8, %v117_v11  ;;  %v223_v13 = vpop.f32.mrb[2].mxu0 }
  0xec   :  { %v138_v14 = vmin.f32 %v126_v10, 0.0  ;;  %v129_v15 = vadd.f32 %v223_v13, %v181_v8  ;;  %v120_v16 = vpop.f32.mrb[3].mxu0  ;;  %vm134_vm2 = vcmp.gt.f32.partialorder %v126_v10, 0.0 }
  0xed   :  { %v136_v17 = vmin.f32 %v118_v12, 0.0  ;;  %v121_v18 = vadd.f32 %v181_v8, %v120_v16  ;;  %vm132_vm4 = vcmp.gt.f32.partialorder %v118_v12, 0.0 }
  0xee   :  { %v144_v19 = vmul.f32 1.442695, %v138_v14  ;;  %v139_v20 = vmin.f32 %v129_v15, 0.0  ;;  %vm135_vm5 = vcmp.gt.f32.partialorder %v129_v15, 0.0 }
  0xef   :  { %v140_v21 = vmul.f32 1.442695, %v136_v17  ;;  %v137_v22 = vmin.f32 %v121_v18, 0.0  ;;  %vm133_vm6 = vcmp.gt.f32.partialorder %v121_v18, 0.0 }
  0xf0   :  { %232 = vpow2.f32 %v144_v19  ;;  %v146_v23 = vmul.f32 1.442695, %v139_v20 }
  0xf1   :  { %234 = vpow2.f32 %v140_v21  ;;  %v142_v24 = vmul.f32 1.442695, %v137_v22 }
  0xf2   :  { %236 = vpow2.f32 %v146_v23 }
  0xf3   :  { %238 = vpow2.f32 %v142_v24 }
  0xfa   :  { %v233_v25 = vpop.eup %232 }
  0xfb   :  { %v235_v26 = vpop.eup %234  ;;  %v193_v27 = vadd.f32 -1.0, %v233_v25 }
  0xfc   :  { %v237_v28 = vpop.eup %236  ;;  %v191_v29 = vadd.f32 -1.0, %v235_v26 }
  0xfd   :  { %v239_v30 = vpop.eup %238  ;;  %v154_v31 = vsel %vm134_vm2, %v126_v10, %v193_v27  ;;  %v194_v32 = vadd.f32 -1.0, %v237_v28 }
  0xfe   :  { %v201_v33 = vpack.c.bf16 %v154_v31, %v154_v31  ;;  %v152_v34 = vsel %vm132_vm4, %v118_v12, %v191_v29  ;;  %v192_v35 = vadd.f32 -1.0, %v239_v30 }
  0xff   :  { %v199_v36 = vpack.c.bf16 %v152_v34, %v152_v34  ;;  %v155_v37 = vsel %vm135_vm5, %v129_v15, %v194_v32 }
 0x100   :  { %175 = vst.msk [vmem:[%s303_s3 + $0x8] sm:$0xf] %vm172_vm3, %v201_v33  ;;  %v202_v38 = vpack.c.bf16 %v155_v37, %v155_v37  ;;  %v153_v39 = vsel %vm133_vm6, %v121_v18, %v192_v35 }
 0x101   :  { %173 = vst.msk [vmem:[%s303_s3] sm:$0xf] %vm172_vm3, %v199_v36  ;;  %v200_v40 = vpack.c.bf16 %v153_v39, %v153_v39 }
 0x102   :  { %176 = vst.msk [vmem:[%s303_s3 + $0xc] sm:$0xf] %vm172_vm3, %v202_v38 }
 0x103   :  { %174 = vst.msk [vmem:[%s303_s3 + $0x4] sm:$0xf] %vm172_vm3, %v200_v40 }

// kernel: discriminator_forward.27
= control target key start
LH: loop header
LB: loop body
LE: loop exit
PB: predicated region body
PF: predicated region fallthrough
CT: control target
= control target key end

     0   :  { %vm114_vm0 = vcmask 588800   ;;  %vm139_vm1 = vcmask 1043456   ;;  %vm400_vm2 = vcmask 60416   ;;  %s831_s1 = inlined_call_operand.vmem [shape: bf16[72,8], index: 1, kind: input, shape index: {}]   ;;  %s832_s0 = inlined_call_operand.vmem [shape: bf16[128,72], index: 0, kind: input, shape index: {}]   ;;  %s833_s2 = inlined_call_operand.vmem [shape: f32[1,8], index: 2, kind: input, shape index: {}]   ;;  %s834_s3 = inlined_call_operand.vmem [shape: bf16[128,8], index: 3, kind: output, shape index: {}]  }
   0x1   :  { %v542_v0 = vld [vmem:[%s831_s1] sm:$0xff]   ;;  %v543_v1 = vld [vmem:[%s831_s1 + $0x8] sm:$0xff]   ;;  %v544_v2 = vld [vmem:[%s831_s1 + $0x10] sm:$0xff]  }
   0x2   :  { %504 = vmatprep.subr.bf16.mxu0 %v542_v0  ;;  %530 = vmatprep.subr.bf16.mxu1 %v542_v0  ;;  %v547_v3 = vld [vmem:[%s832_s0] sm:$0xff]   ;;  %v545_v5 = vld [vmem:[%s831_s1 + $0x18] sm:$0xff]   ;;  %v549_v8 = vld [vmem:[%s832_s0 + $0x8] sm:$0xff]  }
   0x3   :  { %505 = vmatpush3.bf16.msra.mxu0 %v542_v0  ;;  %535 = vmatpush3.bf16.msra.mxu1 %v542_v0  ;;  %v548_v4 = vld [vmem:[%s832_s0 + $0x20] sm:$0xff]   ;;  %v550_v9 = vld [vmem:[%s832_s0 + $0x28] sm:$0xff]   ;;  %v551_v10 = vld [vmem:[%s832_s0 + $0x10] sm:$0xff]  }
   0x4   :  { %506 = vmatprep.subr.bf16.mxu0 %v543_v1  ;;  %531 = vmatprep.subr.bf16.mxu1 %v543_v1  ;;  %v546_v6 = vld [vmem:[%s831_s1 + $0x20] ss:$0 sps:$4 sm:$0xff]   ;;  %v552_v11 = vld [vmem:[%s832_s0 + $0x30] sm:$0xff]   ;;  %v553_v12 = vld [vmem:[%s832_s0 + $0x18] sm:$0xff]  }
   0x5   :  { %514 = vmatprep.mubr.msk.bf16.mxu0 %vm114_vm0, %v547_v3  ;;  %522 = vmatprep.mubr.msk.bf16.mxu1 %vm114_vm0, %v548_v4  ;;  %v141_v7 = vsel %vm139_vm1, %v546_v6, 0  ;;  %v554_v13 = vld [vmem:[%s832_s0 + $0x38] sm:$0xff]   ;;  %v657_v14 = vld [vmem:[%s833_s2] ss:$0 sm:$0xff] }
   0x7   :  { %507 = vmatpush3.bf16.msra.mxu0 %v543_v1  ;;  %536 = vmatpush3.bf16.msra.mxu1 %v543_v1 }
   0x8   :  { %508 = vmatprep.subr.bf16.mxu0 %v544_v2  ;;  %532 = vmatprep.subr.bf16.mxu1 %v544_v2 }
   0xb   :  { %509 = vmatpush3.bf16.msra.mxu0 %v544_v2  ;;  %537 = vmatpush3.bf16.msra.mxu1 %v544_v2 }
   0xc   :  { %510 = vmatprep.subr.bf16.mxu0 %v545_v5  ;;  %533 = vmatprep.subr.bf16.mxu1 %v545_v5 }
   0xf   :  { %511 = vmatpush3.bf16.msra.mxu0 %v545_v5  ;;  %538 = vmatpush3.bf16.msra.mxu1 %v545_v5 }
  0x10   :  { %540 = vmatprep.subr.msk.bf16.mxu0 %vm139_vm1, %v546_v6  ;;  %541 = vmatprep.subr.msk.bf16.mxu1 %vm139_vm1, %v546_v6 }
  0x13   :  { %513 = vmatpush3.bf16.msra.mxu0 %v141_v7  ;;  %539 = vmatpush3.bf16.msra.mxu1 %v141_v7 }
  0x16   :  { %515 = vmatmul.mubr.msk.bf16.vlgmr.msra.gmra.mrb[0].mxu0 %vm114_vm0, %v549_v8  ;;  %523 = vmatmul.mubr.msk.bf16.vlgmr.msra.gmra.mrb[0].mxu1 %vm114_vm0, %v550_v9 }
  0x17   :  { %518 = vmatprep.mubr.msk.bf16.mxu0 %vm114_vm0, %v551_v10  ;;  %526 = vmatprep.mubr.msk.bf16.mxu1 %vm114_vm0, %v552_v11 }
  0x1e   :  { %519 = vmatmul.mubr.msk.bf16.gmra.mrb[4].mxu0 %vm114_vm0, %v553_v12  ;;  %527 = vmatmul.mubr.msk.bf16.gmra.mrb[4].mxu1 %vm114_vm0, %v554_v13 }
  0xe9   :  { %v516_v15 = vpop.f32.mrb[0].mxu0  ;;  %v524_v16 = vpop.f32.mrb[0].mxu1 }
  0xea   :  { %v660_v17 = vadd.f32 %v516_v15, %v657_v14  ;;  %v663_v18 = vadd.f32 %v524_v16, %v657_v14  ;;  %v177_v19 = vpop.f32.mrb[1].mxu0  ;;  %v209_v20 = vpop.f32.mrb[1].mxu1 }
  0xeb   :  { %v666_v21 = vadd.f32 %v657_v14, %v177_v19  ;;  %v669_v22 = vadd.f32 %v657_v14, %v209_v20  ;;  %v517_v23 = vpop.f32.mrb[2].mxu0  ;;  %v525_v24 = vpop.f32.mrb[2].mxu1 }
  0xec   :  { %v258_v25 = vmin.f32 %v660_v17, 0.0  ;;  %v266_v26 = vmin.f32 %v663_v18, 0.0  ;;  %v180_v27 = vpop.f32.mrb[3].mxu0  ;;  %v212_v28 = vpop.f32.mrb[3].mxu1  ;;  %v676_v33 = vadd.f32 %v517_v23, %v657_v14  ;;  %v679_v34 = vadd.f32 %v525_v24, %v657_v14 }
  0xed   :  { %v256_v29 = vmin.f32 %v666_v21, 0.0  ;;  %v264_v30 = vmin.f32 %v669_v22, 0.0  ;;  %v682_v37 = vadd.f32 %v657_v14, %v180_v27  ;;  %v685_v38 = vadd.f32 %v657_v14, %v212_v28 }
  0xee   :  { %v276_v31 = vmul.f32 1.442695, %v258_v25  ;;  %v292_v32 = vmul.f32 1.442695, %v266_v26  ;;  %v259_v39 = vmin.f32 %v676_v33, 0.0  ;;  %v267_v40 = vmin.f32 %v679_v34, 0.0 }
  0xef   :  { %v272_v35 = vmul.f32 1.442695, %v256_v29  ;;  %v288_v36 = vmul.f32 1.442695, %v264_v30  ;;  %v257_v41 = vmin.f32 %v682_v37, 0.0  ;;  %v265_v45 = vmin.f32 %v685_v38, 0.0 }
  0xf0   :  { %555 = vpow2.f32 %v276_v31  ;;  %v278_v44 = vmul.f32 1.442695, %v259_v39  ;;  %v294_v48 = vmul.f32 1.442695, %v267_v40  ;;  %vm242_vm3 = vcmp.gt.f32.partialorder %v660_v17, 0.0 }
  0xf1   :  { %557 = vpow2.f32 %v292_v32  ;;  %v520_v42 = vpop.f32.mrb[4].mxu0  ;;  %v528_v43 = vpop.f32.mrb[4].mxu1  ;;  %v274_v49 = vmul.f32 1.442695, %v257_v41  ;;  %v290_v53 = vmul.f32 1.442695, %v265_v45 }
  0xf2   :  { %559 = vpow2.f32 %v272_v35  ;;  %v193_v46 = vpop.f32.mrb[5].mxu0  ;;  %v225_v47 = vpop.f32.mrb[5].mxu1  ;;  %v692_v50 = vadd.f32 %v520_v42, %v657_v14  ;;  %v695_v54 = vadd.f32 %v528_v43, %v657_v14  ;;  %vm250_vm4 = vcmp.gt.f32.partialorder %v663_v18, 0.0 }
  0xf3   :  { %561 = vpow2.f32 %v288_v36  ;;  %v521_v51 = vpop.f32.mrb[6].mxu0  ;;  %v529_v52 = vpop.f32.mrb[6].mxu1  ;;  %v698_v55 = vadd.f32 %v657_v14, %v193_v46  ;;  %v702_v59 = vadd.f32 %v657_v14, %v225_v47  ;;  %vm240_vm5 = vcmp.gt.f32.partialorder %v666_v21, 0.0 }
  0xf4   :  { %563 = vpow2.f32 %v278_v44  ;;  %v196_v56 = vpop.f32.mrb[7].mxu0  ;;  %v228_v57 = vpop.f32.mrb[7].mxu1  ;;  %v262_v58 = vmin.f32 %v692_v50, 0.0  ;;  %v270_v60 = vmin.f32 %v695_v54, 0.0  ;;  %v711_v1 = vadd.f32 %v521_v51, %v657_v14 }
  0xf5   :  { %565 = vpow2.f32 %v294_v48  ;;  %v260_v62 = vmin.f32 %v698_v55, 0.0  ;;  %v268_v0 = vmin.f32 %v702_v59, 0.0  ;;  %v714_v2 = vadd.f32 %v529_v52, %v657_v14 }
  0xf6   :  { %567 = vpow2.f32 %v274_v49  ;;  %v284_v61 = vmul.f32 1.442695, %v262_v58  ;;  %v300_v63 = vmul.f32 1.442695, %v270_v60  ;;  %vm248_vm6 = vcmp.gt.f32.partialorder %v669_v22, 0.0 }
  0xf7   :  { %569 = vpow2.f32 %v290_v53  ;;  %v280_v3 = vmul.f32 1.442695, %v260_v62  ;;  %v718_v4 = vadd.f32 %v657_v14, %v196_v56  ;;  %vm243_vm7 = vcmp.gt.f32.partialorder %v676_v33, 0.0 }
  0xf8   :  { %571 = vpow2.f32 %v284_v61  ;;  %v296_v6 = vmul.f32 1.442695, %v268_v0  ;;  %v263_v7 = vmin.f32 %v711_v1, 0.0  ;;  %vm251_vm8 = vcmp.gt.f32.partialorder %v679_v34, 0.0 }
  0xf9   :  { %573 = vpow2.f32 %v300_v63  ;;  %v271_v10 = vmin.f32 %v714_v2, 0.0  ;;  %v725_v15 = vadd.f32 %v657_v14, %v228_v57  ;;  %v261_v24 = vmin.f32 %v718_v4, 0.0 }
  0xfa   :  { %v556_v5 = vpop.eup %555  ;;  %575 = vpow2.f32 %v280_v3  ;;  %v286_v13 = vmul.f32 1.442695, %v263_v7  ;;  %vm241_vm9 = vcmp.gt.f32.partialorder %v682_v37, 0.0  ;;  %vm249_vm10 = vcmp.gt.f32.partialorder %v685_v38, 0.0 }
  0xfb   :  { %v558_v8 = vpop.eup %557  ;;  %v445_v9 = vadd.f32 -1.0, %v556_v5  ;;  %577 = vpow2.f32 %v296_v6  ;;  %v302_v23 = vmul.f32 1.442695, %v271_v10  ;;  %v282_v36 = vmul.f32 1.442695, %v261_v24 }
  0xfc   :  { %v560_v11 = vpop.eup %559  ;;  %v453_v12 = vadd.f32 -1.0, %v558_v8  ;;  %579 = vpow2.f32 %v286_v13  ;;  %v269_v46 = vmin.f32 %v725_v15, 0.0  ;;  %vm246_vm11 = vcmp.gt.f32.partialorder %v692_v50, 0.0 }
  0xfd   :  { %v562_v16 = vpop.eup %561  ;;  %v322_v19 = vsel %vm242_vm3, %v660_v17, %v445_v9  ;;  %v443_v20 = vadd.f32 -1.0, %v560_v11  ;;  %581 = vpow2.f32 %v302_v23  ;;  %vm254_vm12 = vcmp.gt.f32.partialorder %v695_v54, 0.0 }
  0xfe   :  { %v564_v25 = vpop.eup %563  ;;  %v477_v26 = vpack.c.bf16 %v322_v19, %v322_v19  ;;  %v330_v27 = vsel %vm250_vm4, %v663_v18, %v453_v12  ;;  %v451_v28 = vadd.f32 -1.0, %v562_v16  ;;  %583 = vpow2.f32 %v282_v36 }
  0xff   :  { %v566_v29 = vpop.eup %565  ;;  %v485_v14 = vpack.c.bf16 %v330_v27, %v330_v27  ;;  %v320_v30 = vsel %vm240_vm5, %v666_v21, %v443_v20  ;;  %v446_v31 = vadd.f32 -1.0, %v564_v25  ;;  %v298_v53 = vmul.f32 1.442695, %v269_v46 }
 0x100   :  { %v568_v17 = vpop.eup %567  ;;  %403 = vst.msk [vmem:[%s834_s3 + $0x8] sm:$0xf] %vm400_vm2, %v477_v26  ;;  %v475_v32 = vpack.c.bf16 %v320_v30, %v320_v30  ;;  %v328_v18 = vsel %vm248_vm6, %v669_v22, %v451_v28  ;;  %v454_v35 = vadd.f32 -1.0, %v566_v29  ;;  %vm244_vm13 = vcmp.gt.f32.partialorder %v698_v55, 0.0 }
 0x101   :  { %v570_v39 = vpop.eup %569  ;;  %411 = vst.msk [vmem:[%s834_s3 + $0x28] sm:$0xf] %vm400_vm2, %v485_v14  ;;  %v483_v21 = vpack.c.bf16 %v328_v18, %v328_v18  ;;  %v323_v40 = vsel %vm243_vm7, %v676_v33, %v446_v31  ;;  %v444_v41 = vadd.f32 -1.0, %v568_v17  ;;  %585 = vpow2.f32 %v298_v53 }
 0x102   :  { %401 = vst.msk [vmem:[%s834_s3] sm:$0xf] %vm400_vm2, %v475_v32  ;;  %v478_v22 = vpack.c.bf16 %v323_v40, %v323_v40  ;;  %v331_v42 = vsel %vm251_vm8, %v679_v34, %v454_v35  ;;  %v452_v43 = vadd.f32 -1.0, %v570_v39  ;;  %v572_v44 = vpop.eup %571  ;;  %vm252_vm14 = vcmp.gt.f32.partialorder %v702_v59, 0.0 }
 0x103   :  { %409 = vst.msk [vmem:[%s834_s3 + $0x20] sm:$0xf] %vm400_vm2, %v483_v21  ;;  %v486_v33 = vpack.c.bf16 %v331_v42, %v331_v42  ;;  %v321_v45 = vsel %vm241_vm9, %v682_v37, %v444_v41  ;;  %v574_v47 = vpop.eup %573  ;;  %v449_v49 = vadd.f32 -1.0, %v572_v44  ;;  %vm247_vm15 = vcmp.gt.f32.partialorder %v711_v1, 0.0 }
 0x104   :  { %404 = vst.msk [vmem:[%s834_s3 + $0xc] sm:$0xf] %vm400_vm2, %v478_v22  ;;  %v476_v34 = vpack.c.bf16 %v321_v45, %v321_v45  ;;  %v329_v48 = vsel %vm249_vm10, %v685_v38, %v452_v43  ;;  %v576_v51 = vpop.eup %575  ;;  %v457_v52 = vadd.f32 -1.0, %v574_v47  ;;  %vm255_vm0 = vcmp.gt.f32.partialorder %v714_v2, 0.0 }
 0x105   :  { %412 = vst.msk [vmem:[%s834_s3 + $0x2c] sm:$0xf] %vm400_vm2, %v486_v33  ;;  %v484_v37 = vpack.c.bf16 %v329_v48, %v329_v48  ;;  %v578_v56 = vpop.eup %577  ;;  %v326_v38 = vsel %vm246_vm11, %v692_v50, %v449_v49  ;;  %v447_v57 = vadd.f32 -1.0, %v576_v51  ;;  %vm245_vm1 = vcmp.gt.f32.partialorder %v718_v4, 0.0 }
 0x106   :  { %402 = vst.msk [vmem:[%s834_s3 + $0x4] sm:$0xf] %vm400_vm2, %v476_v34  ;;  %v481_v58 = vpack.c.bf16 %v326_v38, %v326_v38  ;;  %v334_v60 = vsel %vm254_vm12, %v695_v54, %v457_v52  ;;  %v455_v61 = vadd.f32 -1.0, %v578_v56  ;;  %v580_v62 = vpop.eup %579  ;;  %vm253_vm3 = vcmp.gt.f32.partialorder %v725_v15, 0.0 }
 0x107   :  { %410 = vst.msk [vmem:[%s834_s3 + $0x24] sm:$0xf] %vm400_vm2, %v484_v37  ;;  %v489_v63 = vpack.c.bf16 %v334_v60, %v334_v60  ;;  %v324_v0 = vsel %vm244_vm13, %v698_v55, %v447_v57  ;;  %v582_v50 = vpop.eup %581  ;;  %v450_v6 = vadd.f32 -1.0, %v580_v62 }
 0x108   :  { %407 = vst.msk [vmem:[%s834_s3 + $0x18] sm:$0xf] %vm400_vm2, %v481_v58  ;;  %v479_v3 = vpack.c.bf16 %v324_v0, %v324_v0  ;;  %v332_v5 = vsel %vm252_vm14, %v702_v59, %v455_v61  ;;  %v458_v55 = vadd.f32 -1.0, %v582_v50  ;;  %v584_v59 = vpop.eup %583 }
 0x109   :  { %415 = vst.msk [vmem:[%s834_s3 + $0x38] sm:$0xf] %vm400_vm2, %v489_v63  ;;  %v487_v54 = vpack.c.bf16 %v332_v5, %v332_v5  ;;  %v327_v7 = vsel %vm247_vm15, %v711_v1, %v450_v6  ;;  %v448_v11 = vadd.f32 -1.0, %v584_v59 }
 0x10a   :  { %405 = vst.msk [vmem:[%s834_s3 + $0x10] sm:$0xf] %vm400_vm2, %v479_v3  ;;  %v482_v8 = vpack.c.bf16 %v327_v7, %v327_v7  ;;  %v335_v9 = vsel %vm255_vm0, %v714_v2, %v458_v55 }
 0x10b   :  { %413 = vst.msk [vmem:[%s834_s3 + $0x30] sm:$0xf] %vm400_vm2, %v487_v54  ;;  %v490_v10 = vpack.c.bf16 %v335_v9, %v335_v9  ;;  %v325_v1 = vsel %vm245_vm1, %v718_v4, %v448_v11  ;;  %v586_v13 = vpop.eup %585 }
 0x10c   :  { %408 = vst.msk [vmem:[%s834_s3 + $0x1c] sm:$0xf] %vm400_vm2, %v482_v8  ;;  %v480_v12 = vpack.c.bf16 %v325_v1, %v325_v1  ;;  %v456_v2 = vadd.f32 -1.0, %v586_v13 }
 0x10d   :  { %416 = vst.msk [vmem:[%s834_s3 + $0x3c] sm:$0xf] %vm400_vm2, %v490_v10 }
 0x10e   :  { %406 = vst.msk [vmem:[%s834_s3 + $0x14] sm:$0xf] %vm400_vm2, %v480_v12  ;;  %v333_v16 = vsel %vm253_vm3, %v725_v15, %v456_v2 }
 0x10f   :  { %v488_v19 = vpack.c.bf16 %v333_v16, %v333_v16 }
 0x111   :  { %414 = vst.msk [vmem:[%s834_s3 + $0x34] sm:$0xf] %vm400_vm2, %v488_v19 }

// kernel: discriminator_forward.31
= control target key start
LH: loop header
LB: loop body
LE: loop exit
PB: predicated region body
PF: predicated region fallthrough
CT: control target
= control target key end

     0   :  { %s910_s12 = smov 0   ;;  %s1083_s0 = inlined_call_operand.vmem [shape: bf16[512,72], index: 0, kind: input, shape index: {}]   ;;  %s1084_s1 = inlined_call_operand.vmem [shape: bf16[72,4], index: 1, kind: input, shape index: {}]   ;;  %s1085_s2 = inlined_call_operand.vmem [shape: f32[1,4], index: 2, kind: input, shape index: {}]   ;;  %s1086_s3 = inlined_call_operand.vmem [shape: f32[512,4], index: 3, kind: output, shape index: {}]  }
   0x1 LB: > { %s665_s13 = sadd.s32 4294967295, %s888_s12   ;;  %p669_p0 = scmp.ge.s32.totalorder %s888_s12, 1  ;;  %s888_s12 = sphi %s910_s12, %s13_s12  }
   0x2   : > { %p138_p1 = scmp.lt.s32.totalorder %s888_s12, 3 }
   0x4   : > { %p139_p2 = pnand %p669_p0, %p138_p1 }
   0x5   : > { %v797_v0 = vld [vmem:[%s1084_s1] sm:$0xff] (!%p139_p2)   ;;  %v798_v1 = vld [vmem:[%s1084_s1 + $0x8] sm:$0xff] (!%p139_p2)   ;;  %s670_s18 = sshll.u32 (!%p139_p2), %s665_s13, 5  ;;  %v799_v2 = vld [vmem:[%s1084_s1 + $0x10] sm:$0xff] (!%p139_p2)   ;;  %vm330_vm0 = vcmask (!%p139_p2), 588800   ;;  %vm379_vm1 = vcmask (!%p139_p2), 1043456  }
   0x6   : > { %142 = sbr.rel (%p139_p2) target bundleno = 286 (0x11e), region = 32  ;;  %735 = vmatprep.subr.bf16.mxu0 (!%p139_p2), %v797_v0  ;;  %777 = vmatprep.subr.bf16.mxu1 (!%p139_p2), %v797_v0  ;;  %p163_p3 = scmp.lt.s32.totalorder (!%p139_p2), %s670_s18, 63  ;;  %v800_v3 = vld [vmem:[%s1084_s1 + $0x18] sm:$0xff] (!%p139_p2)   ;;  %v801_v6 = vld [vmem:[%s1084_s1 + $0x20] ss:$0 sps:$4 sm:$0xff] (!%p139_p2)   ;;  %vm576_vm2 = vcmask (!%p139_p2), 31744  }
   0x7   : > { %736 = vmatpush3.bf16.msra.mxu0 (!%p139_p2), %v797_v0  ;;  %782 = vmatpush3.bf16.msra.mxu1 (!%p139_p2), %v797_v0  ;;  %v381_v7 = vsel (!%p139_p2), %vm379_vm1, %v801_v6, 0  ;;  %v976_v22 = vld [vmem:[%s1085_s2] ss:$0 sm:$0xff] (!%p139_p2) }
   0x8   : > { %737 = vmatprep.subr.bf16.mxu0 (!%p139_p2), %v798_v1  ;;  %778 = vmatprep.subr.bf16.mxu1 (!%p139_p2), %v798_v1 }
   0xb   : > { %738 = vmatpush3.bf16.msra.mxu0 (!%p139_p2), %v798_v1  ;;  %783 = vmatpush3.bf16.msra.mxu1 (!%p139_p2), %v798_v1 }
   0xc   : > { %739 = vmatprep.subr.bf16.mxu0 (!%p139_p2), %v799_v2  ;;  %779 = vmatprep.subr.bf16.mxu1 (!%p139_p2), %v799_v2 }
   0xd   : > { %s1088_s18 = smov (!%p163_p3, %s670_s18), 63 }
   0xe   : > { %s671_s21 = sshll.u32 %s1088_s18, 2  ;;  %s673_s4 = sshll.u32 %s1088_s18, 3 }
   0xf   : > { %s936_s26 = scalar_lea.vmem %s1083_s0, %s671_s21  ;;  %740 = vmatpush3.bf16.msra.mxu0 %v799_v2  ;;  %784 = vmatpush3.bf16.msra.mxu1 %v799_v2  ;;  %s994_s7 = scalar_lea.vmem %s1086_s3, %s673_s4 }
  0x10   : > { %v802_v4 = vld [vmem:[%s936_s26] sm:$0xff]   ;;  %741 = vmatprep.subr.bf16.mxu0 %v800_v3  ;;  %780 = vmatprep.subr.bf16.mxu1 %v800_v3  ;;  %v804_v8 = vld [vmem:[%s936_s26 + $0x8] sm:$0xff]   ;;  %v806_v10 = vld [vmem:[%s936_s26 + $0x10] sm:$0xff]  }
  0x11   : > { %v803_v5 = vld [vmem:[%s936_s26 + $0x40] sm:$0xff]   ;;  %745 = vmatprep.mubr.msk.bf16.mxu0 %vm330_vm0, %v802_v4  ;;  %v805_v9 = vld [vmem:[%s936_s26 + $0x48] sm:$0xff]   ;;  %v807_v11 = vld [vmem:[%s936_s26 + $0x50] sm:$0xff]  }
  0x12   : > { %761 = vmatprep.mubr.msk.bf16.mxu1 %vm330_vm0, %v803_v5  ;;  %v808_v12 = vld [vmem:[%s936_s26 + $0x18] sm:$0xff]   ;;  %v810_v14 = vld [vmem:[%s936_s26 + $0x20] sm:$0xff]   ;;  %v812_v16 = vld [vmem:[%s936_s26 + $0x28] sm:$0xff]  }
  0x13   : > { %742 = vmatpush3.bf16.msra.mxu0 %v800_v3  ;;  %785 = vmatpush3.bf16.msra.mxu1 %v800_v3  ;;  %v809_v13 = vld [vmem:[%s936_s26 + $0x58] sm:$0xff]   ;;  %v811_v15 = vld [vmem:[%s936_s26 + $0x60] sm:$0xff]   ;;  %v813_v17 = vld [vmem:[%s936_s26 + $0x68] sm:$0xff]  }
  0x14   : > { %787 = vmatprep.subr.msk.bf16.mxu0 %vm379_vm1, %v801_v6  ;;  %788 = vmatprep.subr.msk.bf16.mxu1 %vm379_vm1, %v801_v6  ;;  %v814_v18 = vld [vmem:[%s936_s26 + $0x30] sm:$0xff]   ;;  %v816_v20 = vld [vmem:[%s936_s26 + $0x38] sm:$0xff]  }
  0x15   : > { %v815_v19 = vld [vmem:[%s936_s26 + $0x70] sm:$0xff]   ;;  %v817_v21 = vld [vmem:[%s936_s26 + $0x78] sm:$0xff]  }
  0x17   : > { %744 = vmatpush3.bf16.msra.mxu0 %v381_v7  ;;  %786 = vmatpush3.bf16.msra.mxu1 %v381_v7 }
  0x1a   : > { %746 = vmatmul.mubr.msk.bf16.vlgmr.msra.gmra.mrb[0].mxu0 %vm330_vm0, %v804_v8  ;;  %762 = vmatmul.mubr.msk.bf16.vlgmr.msra.gmra.mrb[0].mxu1 %vm330_vm0, %v805_v9 }
  0x1b   : > { %749 = vmatprep.mubr.msk.bf16.mxu0 %vm330_vm0, %v806_v10  ;;  %765 = vmatprep.mubr.msk.bf16.mxu1 %vm330_vm0, %v807_v11 }
  0x22   : > { %750 = vmatmul.mubr.msk.bf16.gmra.mrb[4].mxu0 %vm330_vm0, %v808_v12  ;;  %766 = vmatmul.mubr.msk.bf16.gmra.mrb[4].mxu1 %vm330_vm0, %v809_v13 }
  0x23   : > { %753 = vmatprep.mubr.msk.bf16.mxu0 %vm330_vm0, %v810_v14  ;;  %769 = vmatprep.mubr.msk.bf16.mxu1 %vm330_vm0, %v811_v15 }
  0x2a   : > { %754 = vmatmul.mubr.msk.bf16.gmra.mrb[8].mxu0 %vm330_vm0, %v812_v16  ;;  %770 = vmatmul.mubr.msk.bf16.gmra.mrb[8].mxu1 %vm330_vm0, %v813_v17 }
  0x2b   : > { %757 = vmatprep.mubr.msk.bf16.mxu0 %vm330_vm0, %v814_v18  ;;  %773 = vmatprep.mubr.msk.bf16.mxu1 %vm330_vm0, %v815_v19 }
  0x32   : > { %758 = vmatmul.mubr.msk.bf16.gmra.mrb[12].mxu0 %vm330_vm0, %v816_v20  ;;  %774 = vmatmul.mubr.msk.bf16.gmra.mrb[12].mxu1 %vm330_vm0, %v817_v21 }
  0xed   : > { %v747_v23 = vpop.f32.mrb[0].mxu0  ;;  %v763_v24 = vpop.f32.mrb[0].mxu1 }
  0xee   : > { %v426_v25 = vadd.f32 %v747_v23, %v976_v22  ;;  %v490_v26 = vadd.f32 %v763_v24, %v976_v22  ;;  %v417_v27 = vpop.f32.mrb[1].mxu0  ;;  %v481_v28 = vpop.f32.mrb[1].mxu1 }
  0xef   : > { %v418_v29 = vadd.f32 %v976_v22, %v417_v27  ;;  %v482_v30 = vadd.f32 %v976_v22, %v481_v28  ;;  %v748_v31 = vpop.f32.mrb[2].mxu0  ;;  %v764_v32 = vpop.f32.mrb[2].mxu1 }
  0xf0   : > { %818 = vtanh.f32 %v426_v25  ;;  %v429_v33 = vadd.f32 %v748_v31, %v976_v22  ;;  %v420_v34 = vpop.f32.mrb[3].mxu0  ;;  %v484_v35 = vpop.f32.mrb[3].mxu1  ;;  %v493_v36 = vadd.f32 %v764_v32, %v976_v22 }
  0xf1   : > { %820 = vtanh.f32 %v490_v26  ;;  %v421_v37 = vadd.f32 %v976_v22, %v420_v34  ;;  %v485_v38 = vadd.f32 %v976_v22, %v484_v35 }
  0xf2   : > { %822 = vtanh.f32 %v418_v29 }
  0xf3   : > { %824 = vtanh.f32 %v482_v30 }
  0xf4   : > { %826 = vtanh.f32 %v429_v33 }
  0xf5   : > { %828 = vtanh.f32 %v493_v36  ;;  %v751_v39 = vpop.f32.mrb[4].mxu0  ;;  %v767_v40 = vpop.f32.mrb[4].mxu1 }
  0xf6   : > { %830 = vtanh.f32 %v421_v37  ;;  %v442_v41 = vadd.f32 %v751_v39, %v976_v22  ;;  %v506_v42 = vadd.f32 %v767_v40, %v976_v22  ;;  %v433_v43 = vpop.f32.mrb[5].mxu0  ;;  %v497_v44 = vpop.f32.mrb[5].mxu1 }
  0xf7   : > { %832 = vtanh.f32 %v485_v38  ;;  %v434_v45 = vadd.f32 %v976_v22, %v433_v43  ;;  %v498_v46 = vadd.f32 %v976_v22, %v497_v44  ;;  %v752_v47 = vpop.f32.mrb[6].mxu0  ;;  %v768_v48 = vpop.f32.mrb[6].mxu1 }
  0xf8   : > { %834 = vtanh.f32 %v442_v41  ;;  %v445_v49 = vadd.f32 %v752_v47, %v976_v22  ;;  %v436_v50 = vpop.f32.mrb[7].mxu0  ;;  %v500_v51 = vpop.f32.mrb[7].mxu1  ;;  %v509_v52 = vadd.f32 %v768_v48, %v976_v22 }
  0xf9   : > { %836 = vtanh.f32 %v506_v42  ;;  %v437_v54 = vadd.f32 %v976_v22, %v436_v50  ;;  %v501_v56 = vadd.f32 %v976_v22, %v500_v51 }
  0xfa   : > { %v819_v53 = vpop.eup %818  ;;  %838 = vtanh.f32 %v434_v45 }
  0xfb   : > { %v821_v55 = vpop.eup %820  ;;  %579 = vst.msk [vmem:[%s994_s7 + $0x10] sm:$0xff] %vm576_vm2, %v819_v53  ;;  %840 = vtanh.f32 %v498_v46 }
  0xfc   : > { %v823_v57 = vpop.eup %822  ;;  %595 = vst.msk [vmem:[%s994_s7 + $0x90] sm:$0xff] %vm576_vm2, %v821_v55  ;;  %842 = vtanh.f32 %v445_v49 }
  0xfd   : > { %v825_v58 = vpop.eup %824  ;;  %577 = vst.msk [vmem:[%s994_s7] sm:$0xff] %vm576_vm2, %v823_v57  ;;  %844 = vtanh.f32 %v509_v52  ;;  %v755_v59 = vpop.f32.mrb[8].mxu0 }
  0xfe   : > { %v771_v60 = vpop.f32.mrb[8].mxu1  ;;  %v827_v61 = vpop.eup %826  ;;  %593 = vst.msk [vmem:[%s994_s7 + $0x80] sm:$0xff] %vm576_vm2, %v825_v58  ;;  %846 = vtanh.f32 %v437_v54  ;;  %v458_v62 = vadd.f32 %v755_v59, %v976_v22 }
  0xff   : > { %v522_v63 = vadd.f32 %v771_v60, %v976_v22  ;;  %v449_v0 = vpop.f32.mrb[9].mxu0  ;;  %v513_v1 = vpop.f32.mrb[9].mxu1  ;;  %580 = vst.msk [vmem:[%s994_s7 + $0x18] sm:$0xff] %vm576_vm2, %v827_v61  ;;  %848 = vtanh.f32 %v501_v56 }
 0x100   : > { %v829_v2 = vpop.eup %828  ;;  %v450_v3 = vadd.f32 %v976_v22, %v449_v0  ;;  %v514_v4 = vadd.f32 %v976_v22, %v513_v1  ;;  %v756_v5 = vpop.f32.mrb[10].mxu0  ;;  %850 = vtanh.f32 %v458_v62 }
 0x101   : > { %v772_v6 = vpop.f32.mrb[10].mxu1  ;;  %v831_v7 = vpop.eup %830  ;;  %596 = vst.msk [vmem:[%s994_s7 + $0x98] sm:$0xff] %vm576_vm2, %v829_v2  ;;  %v461_v8 = vadd.f32 %v756_v5, %v976_v22  ;;  %852 = vtanh.f32 %v522_v63 }
 0x102   : > { %v452_v9 = vpop.f32.mrb[11].mxu0  ;;  %v516_v10 = vpop.f32.mrb[11].mxu1  ;;  %578 = vst.msk [vmem:[%s994_s7 + $0x8] sm:$0xff] %vm576_vm2, %v831_v7  ;;  %v525_v12 = vadd.f32 %v772_v6, %v976_v22  ;;  %854 = vtanh.f32 %v450_v3 }
 0x103   : > { %v833_v11 = vpop.eup %832  ;;  %v453_v14 = vadd.f32 %v976_v22, %v452_v9  ;;  %856 = vtanh.f32 %v514_v4  ;;  %v517_v16 = vadd.f32 %v976_v22, %v516_v10 }
 0x104   : > { %v835_v13 = vpop.eup %834  ;;  %594 = vst.msk [vmem:[%s994_s7 + $0x88] sm:$0xff] %vm576_vm2, %v833_v11  ;;  %858 = vtanh.f32 %v461_v8 }
 0x105   : > { %v837_v15 = vpop.eup %836  ;;  %583 = vst.msk [vmem:[%s994_s7 + $0x30] sm:$0xff] %vm576_vm2, %v835_v13  ;;  %860 = vtanh.f32 %v525_v12  ;;  %v759_v19 = vpop.f32.mrb[12].mxu0 }
 0x106   : > { %v839_v17 = vpop.eup %838  ;;  %599 = vst.msk [vmem:[%s994_s7 + $0xb0] sm:$0xff] %vm576_vm2, %v837_v15  ;;  %v775_v20 = vpop.f32.mrb[12].mxu1  ;;  %862 = vtanh.f32 %v453_v14  ;;  %v474_v23 = vadd.f32 %v759_v19, %v976_v22 }
 0x107   : > { %v841_v18 = vpop.eup %840  ;;  %581 = vst.msk [vmem:[%s994_s7 + $0x20] sm:$0xff] %vm576_vm2, %v839_v17  ;;  %v538_v24 = vadd.f32 %v775_v20, %v976_v22  ;;  %v465_v25 = vpop.f32.mrb[13].mxu0  ;;  %864 = vtanh.f32 %v517_v16 }
 0x108   : > { %v843_v21 = vpop.eup %842  ;;  %597 = vst.msk [vmem:[%s994_s7 + $0xa0] sm:$0xff] %vm576_vm2, %v841_v18  ;;  %v529_v26 = vpop.f32.mrb[13].mxu1  ;;  %v466_v28 = vadd.f32 %v976_v22, %v465_v25  ;;  %866 = vtanh.f32 %v474_v23 }
 0x109   : > { %v845_v27 = vpop.eup %844  ;;  %584 = vst.msk [vmem:[%s994_s7 + $0x38] sm:$0xff] %vm576_vm2, %v843_v21  ;;  %v530_v29 = vadd.f32 %v976_v22, %v529_v26  ;;  %v760_v30 = vpop.f32.mrb[14].mxu0  ;;  %868 = vtanh.f32 %v538_v24 }
 0x10a   : > { %v776_v31 = vpop.f32.mrb[14].mxu1  ;;  %v847_v32 = vpop.eup %846  ;;  %600 = vst.msk [vmem:[%s994_s7 + $0xb8] sm:$0xff] %vm576_vm2, %v845_v27  ;;  %v477_v33 = vadd.f32 %v760_v30, %v976_v22  ;;  %870 = vtanh.f32 %v466_v28 }
 0x10b   : > { %v468_v34 = vpop.f32.mrb[15].mxu0  ;;  %v532_v35 = vpop.f32.mrb[15].mxu1  ;;  %582 = vst.msk [vmem:[%s994_s7 + $0x28] sm:$0xff] %vm576_vm2, %v847_v32  ;;  %v541_v37 = vadd.f32 %v776_v31, %v976_v22  ;;  %872 = vtanh.f32 %v530_v29 }
 0x10c   : > { %v849_v36 = vpop.eup %848  ;;  %v469_v39 = vadd.f32 %v976_v22, %v468_v34  ;;  %v533_v41 = vadd.f32 %v976_v22, %v532_v35  ;;  %874 = vtanh.f32 %v477_v33 }
 0x10d   : > { %v851_v38 = vpop.eup %850  ;;  %598 = vst.msk [vmem:[%s994_s7 + $0xa8] sm:$0xff] %vm576_vm2, %v849_v36  ;;  %876 = vtanh.f32 %v541_v37 }
 0x10e   : > { %v853_v40 = vpop.eup %852  ;;  %587 = vst.msk [vmem:[%s994_s7 + $0x50] sm:$0xff] %vm576_vm2, %v851_v38  ;;  %878 = vtanh.f32 %v469_v39 }
 0x10f   : > { %v855_v42 = vpop.eup %854  ;;  %603 = vst.msk [vmem:[%s994_s7 + $0xd0] sm:$0xff] %vm576_vm2, %v853_v40  ;;  %880 = vtanh.f32 %v533_v41 }
 0x110   : > { %v857_v43 = vpop.eup %856  ;;  %585 = vst.msk [vmem:[%s994_s7 + $0x40] sm:$0xff] %vm576_vm2, %v855_v42 }
 0x111   : > { %v859_v44 = vpop.eup %858  ;;  %601 = vst.msk [vmem:[%s994_s7 + $0xc0] sm:$0xff] %vm576_vm2, %v857_v43 }
 0x112   : > { %v861_v45 = vpop.eup %860  ;;  %588 = vst.msk [vmem:[%s994_s7 + $0x58] sm:$0xff] %vm576_vm2, %v859_v44 }
 0x113   : > { %v863_v22 = vpop.eup %862  ;;  %604 = vst.msk [vmem:[%s994_s7 + $0xd8] sm:$0xff] %vm576_vm2, %v861_v45 }
 0x114   : > { %v865_v46 = vpop.eup %864  ;;  %586 = vst.msk [vmem:[%s994_s7 + $0x48] sm:$0xff] %vm576_vm2, %v863_v22 }
 0x115   : > { %v867_v47 = vpop.eup %866  ;;  %602 = vst.msk [vmem:[%s994_s7 + $0xc8] sm:$0xff] %vm576_vm2, %v865_v46 }
 0x116   : > { %v869_v48 = vpop.eup %868  ;;  %591 = vst.msk [vmem:[%s994_s7 + $0x70] sm:$0xff] %vm576_vm2, %v867_v47 }
 0x117   : > { %v871_v49 = vpop.eup %870  ;;  %607 = vst.msk [vmem:[%s994_s7 + $0xf0] sm:$0xff] %vm576_vm2, %v869_v48 }
 0x118   : > { %v873_v50 = vpop.eup %872  ;;  %589 = vst.msk [vmem:[%s994_s7 + $0x60] sm:$0xff] %vm576_vm2, %v871_v49 }
 0x119   : > { %v875_v51 = vpop.eup %874  ;;  %605 = vst.msk [vmem:[%s994_s7 + $0xe0] sm:$0xff] %vm576_vm2, %v873_v50 }
 0x11a   : > { %v877_v52 = vpop.eup %876  ;;  %592 = vst.msk [vmem:[%s994_s7 + $0x78] sm:$0xff] %vm576_vm2, %v875_v51 }
 0x11b   : > { %v879_v53 = vpop.eup %878  ;;  %608 = vst.msk [vmem:[%s994_s7 + $0xf8] sm:$0xff] %vm576_vm2, %v877_v52 }
 0x11c   : > { %v881_v54 = vpop.eup %880  ;;  %590 = vst.msk [vmem:[%s994_s7 + $0x68] sm:$0xff] %vm576_vm2, %v879_v53 }
 0x11d   : > { %606 = vst.msk [vmem:[%s994_s7 + $0xe8] sm:$0xff] %vm576_vm2, %v881_v54 }
 0x11e PF: > { %s13_s12 = sadd.s32 1, %s888_s12  }
 0x11f   : > { %p10_p4 = scmp.ge.s32.totalorder %s13_s12, 4  }
 0x121   :  { %12 = sbr.rel (!%p10_p4) target bundleno = 1 (0x1), region = 62 }

</bundles_post_ra>
